<compile_context>
chip_gen: v5e
topology: v5e:2x2
jax: 0.10.0
libtpu: 0.0.40
codegen_flags: <defaults>
</compile_context>

<pallas_src>
import functools

import numpy as np
import jax
import jax.numpy as jnp
from jax.experimental import pallas as pl
from jax.experimental.pallas import tpu as pltpu

_NPAD = 128      # lane-dense padded output width of the fused per-stage linear
_HW_TILE = 2048  # in-kernel chunk of the flattened spatial axis for the aggregation


# ----------------------------------------------------------------------------
# Fused Pallas kernel: all deformable-attention stages for G (b*F + f) slices.
# ----------------------------------------------------------------------------
def _fused_stages_kernel(cur_ref, val_ref, idx_ref, w_ref, b_ref, out_ref, *,
                         n_points, H, W, hw_chunk, linear_in_bf16):
    """cur_ref : (G, Nq, C)    f32   query features (stage-0 input)
       val_ref : (G, HW, Cv)   bf16  densified previous-frame features (flat = y*W + x)
       idx_ref : (G, Nq, 2)    f32   integer (y, x) coords of the queries
       w_ref   : (S, C, 128)   f32   fused per-stage weights  [est_y | est_x | attn | 0-pad]
       b_ref   : (S, 1, 128)   f32   fused per-stage biases
       out_ref : (G, Nq, 128)  f32   packed output: lanes 0:Cv features, Cv:Cv+2 speed
    """
    G, Nq, C = cur_ref.shape
    Cv = val_ref.shape[-1]
    OUT_PAD = out_ref.shape[-1]
    HW = H * W
    GNq = G * Nq
    n_chunks = HW // hw_chunk

    cur = cur_ref[...].reshape(GNq, C)     # (GNq, C)  f32
    idx = idx_ref[...].reshape(GNq, 2)     # (GNq, 2)

    # speed_est starts at zero (reference calls the nonexistent `.new_features(...)`).
    spd_y = jnp.zeros((GNq, 1), jnp.float32)
    spd_x = jnp.zeros((GNq, 1), jnp.float32)
    ref_y = idx[:, 0:1] * (1.0 / H)        # ref_points = idx / (H, W)
    ref_x = idx[:, 1:2] * (1.0 / W)

    # Single 2-D iota, hoisted out of the stage loop and reused by every
    # (stage, g, chunk, corner, point) pass of the one-hot construction.
    hw_iota = jax.lax.broadcasted_iota(jnp.int32, (Nq, hw_chunk), 1)

    for s, P in enumerate(n_points):
        # Single lane-dense MXU matmul producing est_y / est_x / attn logits as lane
        # slices.  bf16 operands (f32 accumulation) once C is production-sized.
        w_s = w_ref[s]
        b_s = b_ref[s]
        if linear_in_bf16:
            fused = jnp.dot(cur.astype(jnp.bfloat16), w_s.astype(jnp.bfloat16),
                            preferred_element_type=jnp.float32) + b_s
        else:
            fused = jnp.dot(cur, w_s, preferred_element_type=jnp.float32) + b_s
        est_y = fused[:, 0:P]                      # (GNq, P)
        est_x = fused[:, P:2 * P]
        logits = fused[:, 2 * P:3 * P]

        # softmax over the P sampling points (reciprocal on the otherwise-idle EUP)
        logits = logits - jnp.max(logits, axis=-1, keepdims=True)
        e = jnp.exp(logits)
        attn_w = e * pl.reciprocal(jnp.sum(e, axis=-1, keepdims=True), approx=True)

        # sampling locations (normalized; (y, x) convention of the module's indices)
        off_y = spd_y + est_y                      # sampling_offset
        off_x = spd_x + est_x
        loc_y = ref_y + off_y * (0.1 / H)          # sampling_locations
        loc_x = ref_x + off_x * (0.1 / W)

        # bilinear corners (grid_sample align_corners=False convention)
        y_im = loc_y * H - 0.5
        x_im = loc_x * W - 0.5
        y0f = jnp.floor(y_im)
        x0f = jnp.floor(x_im)
        dy = y_im - y0f
        dx = x_im - x0f
        y0 = y0f.astype(jnp.int32)
        x0 = x0f.astype(jnp.int32)
        y1 = y0 + 1
        x1 = x0 + 1

        corner_flat, corner_w = [], []
        for yc, xc, wc in ((y0, x0, (1.0 - dy) * (1.0 - dx)),
                           (y0, x1, (1.0 - dy) * dx),
                           (y1, x0, dy * (1.0 - dx)),
                           (y1, x1, dy * dx)):
            valid = (yc >= 0) & (yc < H) & (xc >= 0) & (xc < W)
            corner_w.append(jnp.where(valid, wc * attn_w, 0.0))   # (GNq, P) f32
            corner_flat.append(yc * W + xc)                       # (GNq, P) int32

        # MSDeformAttn aggregation per (b, f) slice: build the combined sampling
        # matrix A chunk-by-chunk over HW (only a (Nq, hw_chunk) 2-D intermediate
        # is ever live) and accumulate (Nq, hw_chunk) @ (hw_chunk, Cv) on the MXU
        # with bf16 operands / f32 accumulation.
        # TODO(synk): replace this dense one-hot path with a weighted gather of
        # the 4*P corner rows (indices staged through SMEM or DMA-gathered) for
        # O(Nq*4P*Cv) work instead of O(Nq*HW*Cv).
        new_cur = []
        for g in range(G):
            r0 = g * Nq
            acc = jnp.zeros((Nq, Cv), jnp.float32)
            for c0 in range(n_chunks):
                base = c0 * hw_chunk
                A = jnp.zeros((Nq, hw_chunk), jnp.float32)
                for j in range(4):
                    fl = corner_flat[j][r0:r0 + Nq, :] - base     # (Nq, P) int32
                    cw = corner_w[j][r0:r0 + Nq, :]               # (Nq, P) f32
                    for p in range(P):
                        A = A + jnp.where(hw_iota == fl[:, p:p + 1],
                                          cw[:, p:p + 1], 0.0)
                val_chunk = val_ref[g, base:base + hw_chunk, :]   # (hw_chunk, Cv) bf16
                acc = acc + jnp.dot(A.astype(val_chunk.dtype), val_chunk,
                                    preferred_element_type=jnp.float32)
            new_cur.append(acc)

        # speed_est update: gather speed_delta at the (first-occurrence) argmax
        # of the attention weights.
        p_iota = jax.lax.broadcasted_iota(jnp.int32, (GNq, P), 1)
        m = jnp.max(attn_w, axis=-1, keepdims=True)
        masked_idx = jnp.where(attn_w == m, p_iota, P)
        amin = jnp.min(masked_idx, axis=-1, keepdims=True)
        sel = (p_iota == amin).astype(jnp.float32)
        spd_y = spd_y + jnp.sum(est_y * sel, axis=-1, keepdims=True)
        spd_x = spd_x + jnp.sum(est_x * sel, axis=-1, keepdims=True)

        # stage i+1 consumes the aggregated features (stays in VMEM/vregs)
        cur = new_cur[0] if G == 1 else jnp.concatenate(new_cur, axis=0)

    # Pack features + speed into one lane-dense 128-wide slab and store it in a
    # single full-width write (no masked 32-lane / 2-lane partial stores).
    lane = jax.lax.broadcasted_iota(jnp.int32, (GNq, OUT_PAD), 1)
    sel_r = jax.lax.broadcasted_iota(jnp.int32, (Cv, OUT_PAD), 0)
    sel_c = jax.lax.broadcasted_iota(jnp.int32, (Cv, OUT_PAD), 1)
    widen = (sel_r == sel_c).astype(jnp.float32)          # (Cv, OUT_PAD) selection
    slab = jnp.dot(cur, widen, preferred_element_type=jnp.float32)
    slab = jnp.where(lane == Cv, spd_y, slab)
    slab = jnp.where(lane == Cv + 1, spd_x, slab)
    out_ref[...] = slab.reshape(G, Nq, OUT_PAD).astype(out_ref.dtype)


# ----------------------------------------------------------------------------
# Pallas wrapper: one call for ALL stages, gridded over BF_pad // G.
# ----------------------------------------------------------------------------
def fused_attention_stages(cur_dense, value, idx_dense, w_all, b_all, *,
                           n_points, H, W, group):
    BF_pad, Nq, C = cur_dense.shape
    HW = H * W
    Cv = value.shape[-1]
    S = w_all.shape[0]
    NPAD = w_all.shape[-1]
    G = group
    assert BF_pad % G == 0

    OUT_PAD = max(128, -(-(Cv + 2) // 128) * 128)
    hw_chunk = HW if HW <= _HW_TILE else _HW_TILE
    assert HW % hw_chunk == 0, "TODO(synk): handle ragged HW chunking"
    linear_in_bf16 = C >= 128   # bf16 MXU path only pays off at production C

    kernel = functools.partial(
        _fused_stages_kernel, n_points=tuple(int(p) for p in n_points), H=H, W=W,
        hw_chunk=hw_chunk, linear_in_bf16=linear_in_bf16)

    # Explicit scoped-VMEM budget with headroom (v5e default is only 16 MiB).
    blk_bytes = (G * Nq * C * 4 + G * HW * Cv * 2 + G * Nq * 2 * 4
                 + G * Nq * OUT_PAD * 4)
    const_bytes = S * C * NPAD * 4 + S * NPAD * 4
    need = 2 * blk_bytes + const_bytes          # double-buffered blocks + constants
    vmem_limit = int(max(32 * 2**20, min(64 * 2**20, 4 * need + (1 << 20))))

    out_packed = pl.pallas_call(
        kernel,
        grid=(BF_pad // G,),
        in_specs=[
            pl.BlockSpec((G, Nq, C), lambda i: (i, 0, 0)),
            pl.BlockSpec((G, HW, Cv), lambda i: (i, 0, 0)),
            pl.BlockSpec((G, Nq, 2), lambda i: (i, 0, 0)),
            pl.BlockSpec((S, C, NPAD), lambda i: (0, 0, 0)),   # resident (constant index)
            pl.BlockSpec((S, 1, NPAD), lambda i: (0, 0, 0)),
        ],
        out_specs=pl.BlockSpec((G, Nq, OUT_PAD), lambda i: (i, 0, 0)),
        out_shape=jax.ShapeDtypeStruct((BF_pad, Nq, OUT_PAD), jnp.float32),
        compiler_params=pltpu.CompilerParams(
            dimension_semantics=("parallel",),
            vmem_limit_bytes=vmem_limit),
    )(cur_dense, value, idx_dense, w_all, b_all)
    return out_packed


def _choose_group(BF, HW, Cv):
    """Batch G (b,f) slices per grid step: fill the MXU / amortize per-step overhead,
    but cap the bf16 value block (~4 MiB) and keep >= 2 grid steps for v7x's 2 TCs."""
    mem_cap = max(1, (4 * 1024 * 1024) // max(1, HW * Cv * 2))
    return max(1, min(8, mem_cap, max(1, BF // 2)))


# ----------------------------------------------------------------------------
# Host-side weight fusion: [est_y | est_x | attn] per stage, padded to 128 lanes.
# ----------------------------------------------------------------------------
def build_fused_weights(params, n_points, C):
    S = len(n_points)
    assert 3 * max(n_points) <= _NPAD, "n_points too large for fused 128-lane weight"
    w_all = np.zeros((S, C, _NPAD), np.float32)
    b_all = np.zeros((S, 1, _NPAD), np.float32)
    for i, P in enumerate(n_points):
        w_est = np.asarray(params["est_w%d" % (i + 1)], np.float32)   # (C, 2P), x@W layout
        b_est = np.asarray(params["est_b%d" % (i + 1)], np.float32)   # (2P,)
        w_w = np.asarray(params["wgt_w%d" % (i + 1)], np.float32)     # (C, P)
        b_w = np.asarray(params["wgt_b%d" % (i + 1)], np.float32)     # (P,)
        assert w_est.shape == (C, 2 * P) and w_w.shape == (C, P)
        # deinterleave speed_est columns: col 2p -> y offset, col 2p+1 -> x offset
        w_all[i, :, 0:P] = w_est[:, 0::2]
        w_all[i, :, P:2 * P] = w_est[:, 1::2]
        w_all[i, :, 2 * P:3 * P] = w_w
        b_all[i, 0, 0:P] = b_est[0::2]
        b_all[i, 0, P:2 * P] = b_est[1::2]
        b_all[i, 0, 2 * P:3 * P] = b_w
    return jnp.asarray(w_all), jnp.asarray(b_all)


# ----------------------------------------------------------------------------
# Vectorized sparse -> dense packing (host does index bookkeeping only;
# feature data stays on device via XLA scatter/gather).
# ----------------------------------------------------------------------------
def densify(cur_features, pre_features, cur_indices, pre_indices, H, W, B, F, BF_pad):
    cur_idx = np.asarray(cur_indices).astype(np.int64)
    pre_idx = np.asarray(pre_indices).astype(np.int64)
    BF = B * F

    bf_cur = cur_idx[:, 0] * F + cur_idx[:, 1]
    counts = np.bincount(bf_cur, minlength=BF)
    # order-preserving rank of each row inside its (b, f) group
    order = np.argsort(bf_cur, kind="stable")
    starts = np.concatenate([[0], np.cumsum(counts)[:-1]])
    rank = np.empty(bf_cur.shape[0], np.int64)
    rank[order] = np.arange(bf_cur.shape[0]) - starts[bf_cur[order]]

    max_num_cur = int(counts.max())
    Nq = max(8, ((max_num_cur + 7) // 8) * 8)   # pad query rows to a sublane multiple

    C = int(np.shape(cur_features)[-1])
    Cv = int(np.shape(pre_features)[-1])

    bf_d = jnp.asarray(bf_cur, jnp.int32)
    rank_d = jnp.asarray(rank, jnp.int32)
    cur_dense = jnp.zeros((BF_pad, Nq, C), jnp.float32).at[bf_d, rank_d].set(
        jnp.asarray(cur_features, jnp.float32))
    idx_dense = jnp.zeros((BF_pad, Nq, 2), jnp.float32).at[bf_d, rank_d].set(
        jnp.asarray(cur_idx[:, -2:], jnp.float32))

    # previous frame f+1 feeds current frame f (rows outside [1, F] are dropped);
    # duplicate (b, f, y, x) pre rows (if any) resolve nondeterministically, as
    # the reference's in-place assignment order is also unspecified.
    pf = pre_idx[:, 1] - 1
    valid = (pf >= 0) & (pf < F) & (pre_idx[:, 0] >= 0) & (pre_idx[:, 0] < B)
    sel = np.nonzero(valid)[0]
    bf_pre = pre_idx[sel, 0] * F + pf[sel]
    ys = pre_idx[sel, -2]
    xs = pre_idx[sel, -1]
    # bf16 scattered directly into a bf16 buffer: no f32 round-trip of the largest
    # tensor through HBM; the MXU still accumulates in f32 inside the kernel.
    pre_vals = jnp.asarray(pre_features, jnp.float32)[
        jnp.asarray(sel, jnp.int32)].astype(jnp.bfloat16)
    pre_dense = jnp.zeros((BF_pad, H, W, Cv), jnp.bfloat16).at[
        jnp.asarray(bf_pre, jnp.int32), jnp.asarray(ys, jnp.int32),
        jnp.asarray(xs, jnp.int32)].set(pre_vals)
    value = pre_dense.reshape(BF_pad, H * W, Cv)
    return cur_dense, value, idx_dense, bf_cur, rank, counts, Nq


def attention_aggregation_forward(cur_features, pre_features, cur_indices, pre_indices,
                                  spatial_shape, params, n_points=(4, 2, 1)):
    H, W = int(spatial_shape[-2]), int(spatial_shape[-1])
    cur_idx_np = np.asarray(cur_indices)
    B = int(cur_idx_np[:, 0].max()) + 1
    F = int(cur_idx_np[:, 1].max()) + 1
    BF = B * F
    Cv = int(np.shape(pre_features)[-1])

    G = _choose_group(BF, H * W, Cv)
    BF_pad = ((BF + G - 1) // G) * G

    cur_dense, value, idx_dense, bf_cur, rank, counts, Nq = densify(
        cur_features, pre_features, cur_indices, pre_indices, H, W, B, F, BF_pad)
    C = cur_dense.shape[-1]
    # Stage i+1 linears consume the MSDeformAttn output (Cv channels) and the
    # result is scattered back over cur_features, so all channel counts must match.
    assert C == Cv, "AttentionAggregation requires in_channels == out_channels == value channels"

    w_all, b_all = build_fused_weights(params, n_points, C)
    out_packed = fused_attention_stages(
        cur_dense, value, idx_dense, w_all, b_all,
        n_points=n_points, H=H, W=W, group=G)

    # Unpack the lane-dense slab: lanes 0:Cv = features, lanes Cv:Cv+2 = speed.
    out_feat = out_packed[..., :Cv]
    out_spd = out_packed[..., Cv:Cv + 2]

    # Scatter the refined dense features back into the sparse layout (device gather).
    bf_d = jnp.asarray(bf_cur, jnp.int32)
    rank_d = jnp.asarray(rank, jnp.int32)
    cur_out = out_feat[bf_d, rank_d]

    # speed output follows the reference concat order: f-major, b-minor.
    gb, gr = [], []
    for f in range(F):
        for b in range(B):
            n = int(counts[b * F + f])
            gb.append(np.full(n, b * F + f, np.int32))
            gr.append(np.arange(n, dtype=np.int32))
    gb = np.concatenate(gb) if gb else np.zeros((0,), np.int32)
    gr = np.concatenate(gr) if gr else np.zeros((0,), np.int32)
    speed_out = out_spd[jnp.asarray(gb), jnp.asarray(gr)]
    return cur_out, speed_out


# ----------------------------------------------------------------------------
# Deterministic synthetic parameters (shapes match the module __init__;
# weights stored transposed, i.e. (C, out), so the kernel does x @ W + b).
# ----------------------------------------------------------------------------
def init_params(key, in_channels, out_channels, n_points, n_heads=1, n_levels=1):
    params = {}
    chans = [in_channels, out_channels, out_channels]
    for i, (P, C) in enumerate(zip(n_points, chans)):
        key, k1, k2, k3, k4 = jax.random.split(key, 5)
        params["est_w%d" % (i + 1)] = (0.02 * jax.random.normal(
            k1, (C, 2 * P * n_levels * n_heads))).astype(jnp.float32)
        params["est_b%d" % (i + 1)] = (0.02 * jax.random.normal(
            k2, (2 * P * n_levels * n_heads,))).astype(jnp.float32)
        params["wgt_w%d" % (i + 1)] = (0.02 * jax.random.normal(
            k3, (C, P * n_levels * n_heads))).astype(jnp.float32)
        params["wgt_b%d" % (i + 1)] = (0.02 * jax.random.normal(
            k4, (P * n_levels * n_heads,))).astype(jnp.float32)
    return params


if __name__ == "__main__":
    B, F = 2, 2
    C = 32
    H = W = 16
    Nq = 8          # current-frame points per (b, f)
    Npre = 12       # previous-frame points per (b, f)
    n_points = (4, 2, 1)

    key = jax.random.PRNGKey(0)
    k_cur, k_pre, k_par = jax.random.split(key, 3)

    # Deterministic, collision-free sparse indices [b, f, y, x].
    cur_rows, pre_rows = [], []
    for b in range(B):
        for f in range(F):
            flat_c = (np.arange(Nq) * 13 + 3 + 5 * b + 11 * f) % (H * W)
            cur_rows.append(np.stack(
                [np.full(Nq, b), np.full(Nq, f), flat_c // W, flat_c % W], axis=1))
            flat_p = (np.arange(Npre) * 7 + 1 + 3 * b + 2 * f) % (H * W)  # gcd(7,256)=1 -> unique
            pre_rows.append(np.stack(
                [np.full(Npre, b), np.full(Npre, f + 1), flat_p // W, flat_p % W], axis=1))
    cur_indices = np.concatenate(cur_rows).astype(np.int32)
    pre_indices = np.concatenate(pre_rows).astype(np.int32)

    cur_features = jax.random.normal(k_cur, (cur_indices.shape[0], C), jnp.float32)
    pre_features = jax.random.normal(k_pre, (pre_indices.shape[0], C), jnp.float32)
    spatial_shape = np.array([H, W], np.int32)

    params = init_params(k_par, C, C, n_points)

    out_features, speed_est = attention_aggregation_forward(
        cur_features, pre_features, cur_indices, pre_indices, spatial_shape, params,
        n_points=n_points)

    jax.block_until_ready(out_features)
    jax.block_until_ready(speed_est)
    assert out_features.shape == (cur_indices.shape[0], C)
    assert speed_est.shape == (cur_indices.shape[0], 2)
    assert bool(jnp.all(jnp.isfinite(out_features)))
    assert bool(jnp.all(jnp.isfinite(speed_est)))
    print("KERNEL_OK")
</pallas_src>

<mosaic_0001>
module attributes {stable_mosaic.version = 11 : i64} {
  func.func @_fused_stages_kernel(%arg0: i32, %arg1: memref<2x8x32xf32, #tpu.memory_space<vmem>>, %arg2: memref<2x256x32xbf16, #tpu.memory_space<vmem>>, %arg3: memref<2x8x2xf32, #tpu.memory_space<vmem>>, %arg4: memref<3x32x128xf32, #tpu.memory_space<vmem>>, %arg5: memref<3x1x128xf32, #tpu.memory_space<vmem>>, %arg6: memref<2x8x128xf32, #tpu.memory_space<vmem>>) attributes {dimension_semantics = [#tpu.dimension_semantics<parallel>], iteration_bounds = array<i64: 2>, scalar_prefetch = 0 : i64, scratch_operands = 0 : i64, tpu.core_type = #tpu.core_type<tc>, window_params = [{transform_indices = @transform_0, window_bounds = array<i64: 2, 8, 32>}, {transform_indices = @transform_1, window_bounds = array<i64: 2, 256, 32>}, {transform_indices = @transform_2, window_bounds = array<i64: 2, 8, 2>}, {pipeline_mode = #tpu.pipeline_mode<synchronous>, transform_indices = @transform_3, window_bounds = array<i64: 3, 32, 128>}, {pipeline_mode = #tpu.pipeline_mode<synchronous>, transform_indices = @transform_4, window_bounds = array<i64: 3, 1, 128>}, {transform_indices = @transform_5, window_bounds = array<i64: 2, 8, 128>}]} {
    %c0 = arith.constant 0 : index
    %c0_0 = arith.constant 0 : index
    %c0_1 = arith.constant 0 : index
    %0 = vector.load %arg1[%c0, %c0_0, %c0_1] : memref<2x8x32xf32, #tpu.memory_space<vmem>>, vector<2x8x32xf32>
    %1 = vector.shape_cast %0 : vector<2x8x32xf32> to vector<16x32xf32>
    %c0_2 = arith.constant 0 : index
    %c0_3 = arith.constant 0 : index
    %c0_4 = arith.constant 0 : index
    %2 = vector.load %arg3[%c0_2, %c0_3, %c0_4] : memref<2x8x2xf32, #tpu.memory_space<vmem>>, vector<2x8x2xf32>
    %3 = vector.shape_cast %2 : vector<2x8x2xf32> to vector<16x2xf32>
    %cst = arith.constant 0.000000e+00 : f32
    %4 = vector.broadcast %cst : f32 to vector<16x1xf32>
    %cst_5 = arith.constant 0.000000e+00 : f32
    %5 = vector.broadcast %cst_5 : f32 to vector<16x1xf32>
    %6 = vector.extract_strided_slice %3 {offsets = [0, 0], sizes = [16, 1], strides = [1, 1]} : vector<16x2xf32> to vector<16x1xf32>
    %cst_6 = arith.constant 6.250000e-02 : f32
    %7 = vector.broadcast %cst_6 : f32 to vector<16x1xf32>
    %8 = arith.mulf %6, %7 : vector<16x1xf32>
    %9 = vector.extract_strided_slice %3 {offsets = [0, 1], sizes = [16, 1], strides = [1, 1]} : vector<16x2xf32> to vector<16x1xf32>
    %cst_7 = arith.constant 6.250000e-02 : f32
    %10 = vector.broadcast %cst_7 : f32 to vector<16x1xf32>
    %11 = arith.mulf %9, %10 : vector<16x1xf32>
    %12 = tpu.iota {dimensions = array<i32: 1>} : vector<8x256xi32>
    %c0_8 = arith.constant 0 : index
    %c0_9 = arith.constant 0 : index
    %c0_10 = arith.constant 0 : index
    %13 = vector.load %arg4[%c0_8, %c0_9, %c0_10] : memref<3x32x128xf32, #tpu.memory_space<vmem>>, vector<1x32x128xf32>
    %14 = vector.shape_cast %13 : vector<1x32x128xf32> to vector<32x128xf32>
    %c0_11 = arith.constant 0 : index
    %c0_12 = arith.constant 0 : index
    %c0_13 = arith.constant 0 : index
    %15 = vector.load %arg5[%c0_11, %c0_12, %c0_13] : memref<3x1x128xf32, #tpu.memory_space<vmem>>, vector<1x1x128xf32>
    %16 = vector.shape_cast %15 : vector<1x1x128xf32> to vector<1x128xf32>
    %cst_14 = arith.constant dense<0.000000e+00> : vector<16x128xf32>
    %17 = tpu.matmul %1, %14, %cst_14 {dimension_numbers = #tpu.dot_dimension_numbers<[1], [0], [0], [1], [0, 0, 1, 1], [], []>} : vector<16x32xf32>, vector<32x128xf32>, vector<16x128xf32> -> vector<16x128xf32>
    %18 = vector.broadcast %16 : vector<1x128xf32> to vector<16x128xf32>
    %19 = arith.addf %17, %18 : vector<16x128xf32>
    %20 = vector.extract_strided_slice %19 {offsets = [0, 0], sizes = [16, 4], strides = [1, 1]} : vector<16x128xf32> to vector<16x4xf32>
    %21 = vector.extract_strided_slice %19 {offsets = [0, 4], sizes = [16, 4], strides = [1, 1]} : vector<16x128xf32> to vector<16x4xf32>
    %22 = vector.extract_strided_slice %19 {offsets = [0, 8], sizes = [16, 4], strides = [1, 1]} : vector<16x128xf32> to vector<16x4xf32>
    %cst_15 = arith.constant dense<0xFF800000> : vector<16xf32>
    %23 = vector.multi_reduction <maximumf>, %22, %cst_15 [1] : vector<16x4xf32> to vector<16xf32>
    %24 = vector.shape_cast %23 : vector<16xf32> to vector<16x1xf32>
    %25 = vector.broadcast %24 : vector<16x1xf32> to vector<16x4xf32>
    %26 = arith.subf %22, %25 : vector<16x4xf32>
    %27 = math.exp %26 : vector<16x4xf32>
    %cst_16 = arith.constant dense<0.000000e+00> : vector<16xf32>
    %28 = vector.multi_reduction <add>, %27, %cst_16 [1] : vector<16x4xf32> to vector<16xf32>
    %29 = vector.shape_cast %28 : vector<16xf32> to vector<16x1xf32>
    %30 = tpu.reciprocal %29 {approx = true} : vector<16x1xf32> -> vector<16x1xf32>
    %31 = vector.broadcast %30 : vector<16x1xf32> to vector<16x4xf32>
    %32 = arith.mulf %27, %31 : vector<16x4xf32>
    %33 = vector.broadcast %4 : vector<16x1xf32> to vector<16x4xf32>
    %34 = arith.addf %33, %20 : vector<16x4xf32>
    %35 = vector.broadcast %5 : vector<16x1xf32> to vector<16x4xf32>
    %36 = arith.addf %35, %21 : vector<16x4xf32>
    %cst_17 = arith.constant 6.250000e-03 : f32
    %37 = vector.broadcast %cst_17 : f32 to vector<16x4xf32>
    %38 = arith.mulf %34, %37 : vector<16x4xf32>
    %39 = vector.broadcast %8 : vector<16x1xf32> to vector<16x4xf32>
    %40 = arith.addf %39, %38 : vector<16x4xf32>
    %cst_18 = arith.constant 6.250000e-03 : f32
    %41 = vector.broadcast %cst_18 : f32 to vector<16x4xf32>
    %42 = arith.mulf %36, %41 : vector<16x4xf32>
    %43 = vector.broadcast %11 : vector<16x1xf32> to vector<16x4xf32>
    %44 = arith.addf %43, %42 : vector<16x4xf32>
    %cst_19 = arith.constant 1.600000e+01 : f32
    %45 = vector.broadcast %cst_19 : f32 to vector<16x4xf32>
    %46 = arith.mulf %40, %45 : vector<16x4xf32>
    %cst_20 = arith.constant 5.000000e-01 : f32
    %47 = vector.broadcast %cst_20 : f32 to vector<16x4xf32>
    %48 = arith.subf %46, %47 : vector<16x4xf32>
    %cst_21 = arith.constant 1.600000e+01 : f32
    %49 = vector.broadcast %cst_21 : f32 to vector<16x4xf32>
    %50 = arith.mulf %44, %49 : vector<16x4xf32>
    %cst_22 = arith.constant 5.000000e-01 : f32
    %51 = vector.broadcast %cst_22 : f32 to vector<16x4xf32>
    %52 = arith.subf %50, %51 : vector<16x4xf32>
    %53 = math.floor %48 : vector<16x4xf32>
    %54 = math.floor %52 : vector<16x4xf32>
    %55 = arith.subf %48, %53 : vector<16x4xf32>
    %56 = arith.subf %52, %54 : vector<16x4xf32>
    %57 = arith.fptosi %53 : vector<16x4xf32> to vector<16x4xi32>
    %58 = arith.fptosi %54 : vector<16x4xf32> to vector<16x4xi32>
    %c1_i32 = arith.constant 1 : i32
    %59 = vector.broadcast %c1_i32 : i32 to vector<16x4xi32>
    %60 = arith.addi %57, %59 : vector<16x4xi32>
    %c1_i32_23 = arith.constant 1 : i32
    %61 = vector.broadcast %c1_i32_23 : i32 to vector<16x4xi32>
    %62 = arith.addi %58, %61 : vector<16x4xi32>
    %cst_24 = arith.constant 1.000000e+00 : f32
    %63 = vector.broadcast %cst_24 : f32 to vector<16x4xf32>
    %64 = arith.subf %63, %55 : vector<16x4xf32>
    %cst_25 = arith.constant 1.000000e+00 : f32
    %65 = vector.broadcast %cst_25 : f32 to vector<16x4xf32>
    %66 = arith.subf %65, %56 : vector<16x4xf32>
    %67 = arith.mulf %64, %66 : vector<16x4xf32>
    %cst_26 = arith.constant 1.000000e+00 : f32
    %68 = vector.broadcast %cst_26 : f32 to vector<16x4xf32>
    %69 = arith.subf %68, %55 : vector<16x4xf32>
    %70 = arith.mulf %69, %56 : vector<16x4xf32>
    %cst_27 = arith.constant 1.000000e+00 : f32
    %71 = vector.broadcast %cst_27 : f32 to vector<16x4xf32>
    %72 = arith.subf %71, %56 : vector<16x4xf32>
    %73 = arith.mulf %55, %72 : vector<16x4xf32>
    %74 = arith.mulf %55, %56 : vector<16x4xf32>
    %c0_i32 = arith.constant 0 : i32
    %75 = vector.broadcast %c0_i32 : i32 to vector<16x4xi32>
    %76 = arith.cmpi sge, %57, %75 : vector<16x4xi32>
    %c16_i32 = arith.constant 16 : i32
    %77 = vector.broadcast %c16_i32 : i32 to vector<16x4xi32>
    %78 = arith.cmpi slt, %57, %77 : vector<16x4xi32>
    %79 = arith.andi %76, %78 : vector<16x4xi1>
    %c0_i32_28 = arith.constant 0 : i32
    %80 = vector.broadcast %c0_i32_28 : i32 to vector<16x4xi32>
    %81 = arith.cmpi sge, %58, %80 : vector<16x4xi32>
    %82 = arith.andi %79, %81 : vector<16x4xi1>
    %c16_i32_29 = arith.constant 16 : i32
    %83 = vector.broadcast %c16_i32_29 : i32 to vector<16x4xi32>
    %84 = arith.cmpi slt, %58, %83 : vector<16x4xi32>
    %85 = arith.andi %82, %84 : vector<16x4xi1>
    %86 = arith.mulf %67, %32 : vector<16x4xf32>
    %cst_30 = arith.constant 0.000000e+00 : f32
    %87 = vector.broadcast %cst_30 : f32 to vector<16x4xf32>
    %88 = arith.select %85, %86, %87 : vector<16x4xi1>, vector<16x4xf32>
    %c16_i32_31 = arith.constant 16 : i32
    %89 = vector.broadcast %c16_i32_31 : i32 to vector<16x4xi32>
    %90 = arith.muli %57, %89 : vector<16x4xi32>
    %91 = arith.addi %90, %58 : vector<16x4xi32>
    %c0_i32_32 = arith.constant 0 : i32
    %92 = vector.broadcast %c0_i32_32 : i32 to vector<16x4xi32>
    %93 = arith.cmpi sge, %57, %92 : vector<16x4xi32>
    %c16_i32_33 = arith.constant 16 : i32
    %94 = vector.broadcast %c16_i32_33 : i32 to vector<16x4xi32>
    %95 = arith.cmpi slt, %57, %94 : vector<16x4xi32>
    %96 = arith.andi %93, %95 : vector<16x4xi1>
    %c0_i32_34 = arith.constant 0 : i32
    %97 = vector.broadcast %c0_i32_34 : i32 to vector<16x4xi32>
    %98 = arith.cmpi sge, %62, %97 : vector<16x4xi32>
    %99 = arith.andi %96, %98 : vector<16x4xi1>
    %c16_i32_35 = arith.constant 16 : i32
    %100 = vector.broadcast %c16_i32_35 : i32 to vector<16x4xi32>
    %101 = arith.cmpi slt, %62, %100 : vector<16x4xi32>
    %102 = arith.andi %99, %101 : vector<16x4xi1>
    %103 = arith.mulf %70, %32 : vector<16x4xf32>
    %cst_36 = arith.constant 0.000000e+00 : f32
    %104 = vector.broadcast %cst_36 : f32 to vector<16x4xf32>
    %105 = arith.select %102, %103, %104 : vector<16x4xi1>, vector<16x4xf32>
    %c16_i32_37 = arith.constant 16 : i32
    %106 = vector.broadcast %c16_i32_37 : i32 to vector<16x4xi32>
    %107 = arith.muli %57, %106 : vector<16x4xi32>
    %108 = arith.addi %107, %62 : vector<16x4xi32>
    %c0_i32_38 = arith.constant 0 : i32
    %109 = vector.broadcast %c0_i32_38 : i32 to vector<16x4xi32>
    %110 = arith.cmpi sge, %60, %109 : vector<16x4xi32>
    %c16_i32_39 = arith.constant 16 : i32
    %111 = vector.broadcast %c16_i32_39 : i32 to vector<16x4xi32>
    %112 = arith.cmpi slt, %60, %111 : vector<16x4xi32>
    %113 = arith.andi %110, %112 : vector<16x4xi1>
    %c0_i32_40 = arith.constant 0 : i32
    %114 = vector.broadcast %c0_i32_40 : i32 to vector<16x4xi32>
    %115 = arith.cmpi sge, %58, %114 : vector<16x4xi32>
    %116 = arith.andi %113, %115 : vector<16x4xi1>
    %c16_i32_41 = arith.constant 16 : i32
    %117 = vector.broadcast %c16_i32_41 : i32 to vector<16x4xi32>
    %118 = arith.cmpi slt, %58, %117 : vector<16x4xi32>
    %119 = arith.andi %116, %118 : vector<16x4xi1>
    %120 = arith.mulf %73, %32 : vector<16x4xf32>
    %cst_42 = arith.constant 0.000000e+00 : f32
    %121 = vector.broadcast %cst_42 : f32 to vector<16x4xf32>
    %122 = arith.select %119, %120, %121 : vector<16x4xi1>, vector<16x4xf32>
    %c16_i32_43 = arith.constant 16 : i32
    %123 = vector.broadcast %c16_i32_43 : i32 to vector<16x4xi32>
    %124 = arith.muli %60, %123 : vector<16x4xi32>
    %125 = arith.addi %124, %58 : vector<16x4xi32>
    %c0_i32_44 = arith.constant 0 : i32
    %126 = vector.broadcast %c0_i32_44 : i32 to vector<16x4xi32>
    %127 = arith.cmpi sge, %60, %126 : vector<16x4xi32>
    %c16_i32_45 = arith.constant 16 : i32
    %128 = vector.broadcast %c16_i32_45 : i32 to vector<16x4xi32>
    %129 = arith.cmpi slt, %60, %128 : vector<16x4xi32>
    %130 = arith.andi %127, %129 : vector<16x4xi1>
    %c0_i32_46 = arith.constant 0 : i32
    %131 = vector.broadcast %c0_i32_46 : i32 to vector<16x4xi32>
    %132 = arith.cmpi sge, %62, %131 : vector<16x4xi32>
    %133 = arith.andi %130, %132 : vector<16x4xi1>
    %c16_i32_47 = arith.constant 16 : i32
    %134 = vector.broadcast %c16_i32_47 : i32 to vector<16x4xi32>
    %135 = arith.cmpi slt, %62, %134 : vector<16x4xi32>
    %136 = arith.andi %133, %135 : vector<16x4xi1>
    %137 = arith.mulf %74, %32 : vector<16x4xf32>
    %cst_48 = arith.constant 0.000000e+00 : f32
    %138 = vector.broadcast %cst_48 : f32 to vector<16x4xf32>
    %139 = arith.select %136, %137, %138 : vector<16x4xi1>, vector<16x4xf32>
    %c16_i32_49 = arith.constant 16 : i32
    %140 = vector.broadcast %c16_i32_49 : i32 to vector<16x4xi32>
    %141 = arith.muli %60, %140 : vector<16x4xi32>
    %142 = arith.addi %141, %62 : vector<16x4xi32>
    %cst_50 = arith.constant 0.000000e+00 : f32
    %143 = vector.broadcast %cst_50 : f32 to vector<8x32xf32>
    %cst_51 = arith.constant 0.000000e+00 : f32
    %144 = vector.broadcast %cst_51 : f32 to vector<8x256xf32>
    %145 = vector.extract_strided_slice %91 {offsets = [0, 0], sizes = [8, 4], strides = [1, 1]} : vector<16x4xi32> to vector<8x4xi32>
    %c0_i32_52 = arith.constant 0 : i32
    %146 = vector.broadcast %c0_i32_52 : i32 to vector<8x4xi32>
    %147 = arith.subi %145, %146 : vector<8x4xi32>
    %148 = vector.extract_strided_slice %88 {offsets = [0, 0], sizes = [8, 4], strides = [1, 1]} : vector<16x4xf32> to vector<8x4xf32>
    %149 = vector.extract_strided_slice %147 {offsets = [0, 0], sizes = [8, 1], strides = [1, 1]} : vector<8x4xi32> to vector<8x1xi32>
    %150 = vector.broadcast %149 : vector<8x1xi32> to vector<8x256xi32>
    %151 = arith.cmpi eq, %12, %150 : vector<8x256xi32>
    %152 = vector.extract_strided_slice %148 {offsets = [0, 0], sizes = [8, 1], strides = [1, 1]} : vector<8x4xf32> to vector<8x1xf32>
    %cst_53 = arith.constant 0.000000e+00 : f32
    %153 = vector.shape_cast %152 : vector<8x1xf32> to vector<8x1xf32>
    %154 = vector.broadcast %153 : vector<8x1xf32> to vector<8x256xf32>
    %155 = vector.broadcast %cst_53 : f32 to vector<8x256xf32>
    %156 = arith.select %151, %154, %155 : vector<8x256xi1>, vector<8x256xf32>
    %157 = arith.addf %144, %156 : vector<8x256xf32>
    %158 = vector.extract_strided_slice %147 {offsets = [0, 1], sizes = [8, 1], strides = [1, 1]} : vector<8x4xi32> to vector<8x1xi32>
    %159 = vector.broadcast %158 : vector<8x1xi32> to vector<8x256xi32>
    %160 = arith.cmpi eq, %12, %159 : vector<8x256xi32>
    %161 = vector.extract_strided_slice %148 {offsets = [0, 1], sizes = [8, 1], strides = [1, 1]} : vector<8x4xf32> to vector<8x1xf32>
    %cst_54 = arith.constant 0.000000e+00 : f32
    %162 = vector.shape_cast %161 : vector<8x1xf32> to vector<8x1xf32>
    %163 = vector.broadcast %162 : vector<8x1xf32> to vector<8x256xf32>
    %164 = vector.broadcast %cst_54 : f32 to vector<8x256xf32>
    %165 = arith.select %160, %163, %164 : vector<8x256xi1>, vector<8x256xf32>
    %166 = arith.addf %157, %165 : vector<8x256xf32>
    %167 = vector.extract_strided_slice %147 {offsets = [0, 2], sizes = [8, 1], strides = [1, 1]} : vector<8x4xi32> to vector<8x1xi32>
    %168 = vector.broadcast %167 : vector<8x1xi32> to vector<8x256xi32>
    %169 = arith.cmpi eq, %12, %168 : vector<8x256xi32>
    %170 = vector.extract_strided_slice %148 {offsets = [0, 2], sizes = [8, 1], strides = [1, 1]} : vector<8x4xf32> to vector<8x1xf32>
    %cst_55 = arith.constant 0.000000e+00 : f32
    %171 = vector.shape_cast %170 : vector<8x1xf32> to vector<8x1xf32>
    %172 = vector.broadcast %171 : vector<8x1xf32> to vector<8x256xf32>
    %173 = vector.broadcast %cst_55 : f32 to vector<8x256xf32>
    %174 = arith.select %169, %172, %173 : vector<8x256xi1>, vector<8x256xf32>
    %175 = arith.addf %166, %174 : vector<8x256xf32>
    %176 = vector.extract_strided_slice %147 {offsets = [0, 3], sizes = [8, 1], strides = [1, 1]} : vector<8x4xi32> to vector<8x1xi32>
    %177 = vector.broadcast %176 : vector<8x1xi32> to vector<8x256xi32>
    %178 = arith.cmpi eq, %12, %177 : vector<8x256xi32>
    %179 = vector.extract_strided_slice %148 {offsets = [0, 3], sizes = [8, 1], strides = [1, 1]} : vector<8x4xf32> to vector<8x1xf32>
    %cst_56 = arith.constant 0.000000e+00 : f32
    %180 = vector.shape_cast %179 : vector<8x1xf32> to vector<8x1xf32>
    %181 = vector.broadcast %180 : vector<8x1xf32> to vector<8x256xf32>
    %182 = vector.broadcast %cst_56 : f32 to vector<8x256xf32>
    %183 = arith.select %178, %181, %182 : vector<8x256xi1>, vector<8x256xf32>
    %184 = arith.addf %175, %183 : vector<8x256xf32>
    %185 = vector.extract_strided_slice %108 {offsets = [0, 0], sizes = [8, 4], strides = [1, 1]} : vector<16x4xi32> to vector<8x4xi32>
    %c0_i32_57 = arith.constant 0 : i32
    %186 = vector.broadcast %c0_i32_57 : i32 to vector<8x4xi32>
    %187 = arith.subi %185, %186 : vector<8x4xi32>
    %188 = vector.extract_strided_slice %105 {offsets = [0, 0], sizes = [8, 4], strides = [1, 1]} : vector<16x4xf32> to vector<8x4xf32>
    %189 = vector.extract_strided_slice %187 {offsets = [0, 0], sizes = [8, 1], strides = [1, 1]} : vector<8x4xi32> to vector<8x1xi32>
    %190 = vector.broadcast %189 : vector<8x1xi32> to vector<8x256xi32>
    %191 = arith.cmpi eq, %12, %190 : vector<8x256xi32>
    %192 = vector.extract_strided_slice %188 {offsets = [0, 0], sizes = [8, 1], strides = [1, 1]} : vector<8x4xf32> to vector<8x1xf32>
    %cst_58 = arith.constant 0.000000e+00 : f32
    %193 = vector.shape_cast %192 : vector<8x1xf32> to vector<8x1xf32>
    %194 = vector.broadcast %193 : vector<8x1xf32> to vector<8x256xf32>
    %195 = vector.broadcast %cst_58 : f32 to vector<8x256xf32>
    %196 = arith.select %191, %194, %195 : vector<8x256xi1>, vector<8x256xf32>
    %197 = arith.addf %184, %196 : vector<8x256xf32>
    %198 = vector.extract_strided_slice %187 {offsets = [0, 1], sizes = [8, 1], strides = [1, 1]} : vector<8x4xi32> to vector<8x1xi32>
    %199 = vector.broadcast %198 : vector<8x1xi32> to vector<8x256xi32>
    %200 = arith.cmpi eq, %12, %199 : vector<8x256xi32>
    %201 = vector.extract_strided_slice %188 {offsets = [0, 1], sizes = [8, 1], strides = [1, 1]} : vector<8x4xf32> to vector<8x1xf32>
    %cst_59 = arith.constant 0.000000e+00 : f32
    %202 = vector.shape_cast %201 : vector<8x1xf32> to vector<8x1xf32>
    %203 = vector.broadcast %202 : vector<8x1xf32> to vector<8x256xf32>
    %204 = vector.broadcast %cst_59 : f32 to vector<8x256xf32>
    %205 = arith.select %200, %203, %204 : vector<8x256xi1>, vector<8x256xf32>
    %206 = arith.addf %197, %205 : vector<8x256xf32>
    %207 = vector.extract_strided_slice %187 {offsets = [0, 2], sizes = [8, 1], strides = [1, 1]} : vector<8x4xi32> to vector<8x1xi32>
    %208 = vector.broadcast %207 : vector<8x1xi32> to vector<8x256xi32>
    %209 = arith.cmpi eq, %12, %208 : vector<8x256xi32>
    %210 = vector.extract_strided_slice %188 {offsets = [0, 2], sizes = [8, 1], strides = [1, 1]} : vector<8x4xf32> to vector<8x1xf32>
    %cst_60 = arith.constant 0.000000e+00 : f32
    %211 = vector.shape_cast %210 : vector<8x1xf32> to vector<8x1xf32>
    %212 = vector.broadcast %211 : vector<8x1xf32> to vector<8x256xf32>
    %213 = vector.broadcast %cst_60 : f32 to vector<8x256xf32>
    %214 = arith.select %209, %212, %213 : vector<8x256xi1>, vector<8x256xf32>
    %215 = arith.addf %206, %214 : vector<8x256xf32>
    %216 = vector.extract_strided_slice %187 {offsets = [0, 3], sizes = [8, 1], strides = [1, 1]} : vector<8x4xi32> to vector<8x1xi32>
    %217 = vector.broadcast %216 : vector<8x1xi32> to vector<8x256xi32>
    %218 = arith.cmpi eq, %12, %217 : vector<8x256xi32>
    %219 = vector.extract_strided_slice %188 {offsets = [0, 3], sizes = [8, 1], strides = [1, 1]} : vector<8x4xf32> to vector<8x1xf32>
    %cst_61 = arith.constant 0.000000e+00 : f32
    %220 = vector.shape_cast %219 : vector<8x1xf32> to vector<8x1xf32>
    %221 = vector.broadcast %220 : vector<8x1xf32> to vector<8x256xf32>
    %222 = vector.broadcast %cst_61 : f32 to vector<8x256xf32>
    %223 = arith.select %218, %221, %222 : vector<8x256xi1>, vector<8x256xf32>
    %224 = arith.addf %215, %223 : vector<8x256xf32>
    %225 = vector.extract_strided_slice %125 {offsets = [0, 0], sizes = [8, 4], strides = [1, 1]} : vector<16x4xi32> to vector<8x4xi32>
    %c0_i32_62 = arith.constant 0 : i32
    %226 = vector.broadcast %c0_i32_62 : i32 to vector<8x4xi32>
    %227 = arith.subi %225, %226 : vector<8x4xi32>
    %228 = vector.extract_strided_slice %122 {offsets = [0, 0], sizes = [8, 4], strides = [1, 1]} : vector<16x4xf32> to vector<8x4xf32>
    %229 = vector.extract_strided_slice %227 {offsets = [0, 0], sizes = [8, 1], strides = [1, 1]} : vector<8x4xi32> to vector<8x1xi32>
    %230 = vector.broadcast %229 : vector<8x1xi32> to vector<8x256xi32>
    %231 = arith.cmpi eq, %12, %230 : vector<8x256xi32>
    %232 = vector.extract_strided_slice %228 {offsets = [0, 0], sizes = [8, 1], strides = [1, 1]} : vector<8x4xf32> to vector<8x1xf32>
    %cst_63 = arith.constant 0.000000e+00 : f32
    %233 = vector.shape_cast %232 : vector<8x1xf32> to vector<8x1xf32>
    %234 = vector.broadcast %233 : vector<8x1xf32> to vector<8x256xf32>
    %235 = vector.broadcast %cst_63 : f32 to vector<8x256xf32>
    %236 = arith.select %231, %234, %235 : vector<8x256xi1>, vector<8x256xf32>
    %237 = arith.addf %224, %236 : vector<8x256xf32>
    %238 = vector.extract_strided_slice %227 {offsets = [0, 1], sizes = [8, 1], strides = [1, 1]} : vector<8x4xi32> to vector<8x1xi32>
    %239 = vector.broadcast %238 : vector<8x1xi32> to vector<8x256xi32>
    %240 = arith.cmpi eq, %12, %239 : vector<8x256xi32>
    %241 = vector.extract_strided_slice %228 {offsets = [0, 1], sizes = [8, 1], strides = [1, 1]} : vector<8x4xf32> to vector<8x1xf32>
    %cst_64 = arith.constant 0.000000e+00 : f32
    %242 = vector.shape_cast %241 : vector<8x1xf32> to vector<8x1xf32>
    %243 = vector.broadcast %242 : vector<8x1xf32> to vector<8x256xf32>
    %244 = vector.broadcast %cst_64 : f32 to vector<8x256xf32>
    %245 = arith.select %240, %243, %244 : vector<8x256xi1>, vector<8x256xf32>
    %246 = arith.addf %237, %245 : vector<8x256xf32>
    %247 = vector.extract_strided_slice %227 {offsets = [0, 2], sizes = [8, 1], strides = [1, 1]} : vector<8x4xi32> to vector<8x1xi32>
    %248 = vector.broadcast %247 : vector<8x1xi32> to vector<8x256xi32>
    %249 = arith.cmpi eq, %12, %248 : vector<8x256xi32>
    %250 = vector.extract_strided_slice %228 {offsets = [0, 2], sizes = [8, 1], strides = [1, 1]} : vector<8x4xf32> to vector<8x1xf32>
    %cst_65 = arith.constant 0.000000e+00 : f32
    %251 = vector.shape_cast %250 : vector<8x1xf32> to vector<8x1xf32>
    %252 = vector.broadcast %251 : vector<8x1xf32> to vector<8x256xf32>
    %253 = vector.broadcast %cst_65 : f32 to vector<8x256xf32>
    %254 = arith.select %249, %252, %253 : vector<8x256xi1>, vector<8x256xf32>
    %255 = arith.addf %246, %254 : vector<8x256xf32>
    %256 = vector.extract_strided_slice %227 {offsets = [0, 3], sizes = [8, 1], strides = [1, 1]} : vector<8x4xi32> to vector<8x1xi32>
    %257 = vector.broadcast %256 : vector<8x1xi32> to vector<8x256xi32>
    %258 = arith.cmpi eq, %12, %257 : vector<8x256xi32>
    %259 = vector.extract_strided_slice %228 {offsets = [0, 3], sizes = [8, 1], strides = [1, 1]} : vector<8x4xf32> to vector<8x1xf32>
    %cst_66 = arith.constant 0.000000e+00 : f32
    %260 = vector.shape_cast %259 : vector<8x1xf32> to vector<8x1xf32>
    %261 = vector.broadcast %260 : vector<8x1xf32> to vector<8x256xf32>
    %262 = vector.broadcast %cst_66 : f32 to vector<8x256xf32>
    %263 = arith.select %258, %261, %262 : vector<8x256xi1>, vector<8x256xf32>
    %264 = arith.addf %255, %263 : vector<8x256xf32>
    %265 = vector.extract_strided_slice %142 {offsets = [0, 0], sizes = [8, 4], strides = [1, 1]} : vector<16x4xi32> to vector<8x4xi32>
    %c0_i32_67 = arith.constant 0 : i32
    %266 = vector.broadcast %c0_i32_67 : i32 to vector<8x4xi32>
    %267 = arith.subi %265, %266 : vector<8x4xi32>
    %268 = vector.extract_strided_slice %139 {offsets = [0, 0], sizes = [8, 4], strides = [1, 1]} : vector<16x4xf32> to vector<8x4xf32>
    %269 = vector.extract_strided_slice %267 {offsets = [0, 0], sizes = [8, 1], strides = [1, 1]} : vector<8x4xi32> to vector<8x1xi32>
    %270 = vector.broadcast %269 : vector<8x1xi32> to vector<8x256xi32>
    %271 = arith.cmpi eq, %12, %270 : vector<8x256xi32>
    %272 = vector.extract_strided_slice %268 {offsets = [0, 0], sizes = [8, 1], strides = [1, 1]} : vector<8x4xf32> to vector<8x1xf32>
    %cst_68 = arith.constant 0.000000e+00 : f32
    %273 = vector.shape_cast %272 : vector<8x1xf32> to vector<8x1xf32>
    %274 = vector.broadcast %273 : vector<8x1xf32> to vector<8x256xf32>
    %275 = vector.broadcast %cst_68 : f32 to vector<8x256xf32>
    %276 = arith.select %271, %274, %275 : vector<8x256xi1>, vector<8x256xf32>
    %277 = arith.addf %264, %276 : vector<8x256xf32>
    %278 = vector.extract_strided_slice %267 {offsets = [0, 1], sizes = [8, 1], strides = [1, 1]} : vector<8x4xi32> to vector<8x1xi32>
    %279 = vector.broadcast %278 : vector<8x1xi32> to vector<8x256xi32>
    %280 = arith.cmpi eq, %12, %279 : vector<8x256xi32>
    %281 = vector.extract_strided_slice %268 {offsets = [0, 1], sizes = [8, 1], strides = [1, 1]} : vector<8x4xf32> to vector<8x1xf32>
    %cst_69 = arith.constant 0.000000e+00 : f32
    %282 = vector.shape_cast %281 : vector<8x1xf32> to vector<8x1xf32>
    %283 = vector.broadcast %282 : vector<8x1xf32> to vector<8x256xf32>
    %284 = vector.broadcast %cst_69 : f32 to vector<8x256xf32>
    %285 = arith.select %280, %283, %284 : vector<8x256xi1>, vector<8x256xf32>
    %286 = arith.addf %277, %285 : vector<8x256xf32>
    %287 = vector.extract_strided_slice %267 {offsets = [0, 2], sizes = [8, 1], strides = [1, 1]} : vector<8x4xi32> to vector<8x1xi32>
    %288 = vector.broadcast %287 : vector<8x1xi32> to vector<8x256xi32>
    %289 = arith.cmpi eq, %12, %288 : vector<8x256xi32>
    %290 = vector.extract_strided_slice %268 {offsets = [0, 2], sizes = [8, 1], strides = [1, 1]} : vector<8x4xf32> to vector<8x1xf32>
    %cst_70 = arith.constant 0.000000e+00 : f32
    %291 = vector.shape_cast %290 : vector<8x1xf32> to vector<8x1xf32>
    %292 = vector.broadcast %291 : vector<8x1xf32> to vector<8x256xf32>
    %293 = vector.broadcast %cst_70 : f32 to vector<8x256xf32>
    %294 = arith.select %289, %292, %293 : vector<8x256xi1>, vector<8x256xf32>
    %295 = arith.addf %286, %294 : vector<8x256xf32>
    %296 = vector.extract_strided_slice %267 {offsets = [0, 3], sizes = [8, 1], strides = [1, 1]} : vector<8x4xi32> to vector<8x1xi32>
    %297 = vector.broadcast %296 : vector<8x1xi32> to vector<8x256xi32>
    %298 = arith.cmpi eq, %12, %297 : vector<8x256xi32>
    %299 = vector.extract_strided_slice %268 {offsets = [0, 3], sizes = [8, 1], strides = [1, 1]} : vector<8x4xf32> to vector<8x1xf32>
    %cst_71 = arith.constant 0.000000e+00 : f32
    %300 = vector.shape_cast %299 : vector<8x1xf32> to vector<8x1xf32>
    %301 = vector.broadcast %300 : vector<8x1xf32> to vector<8x256xf32>
    %302 = vector.broadcast %cst_71 : f32 to vector<8x256xf32>
    %303 = arith.select %298, %301, %302 : vector<8x256xi1>, vector<8x256xf32>
    %304 = arith.addf %295, %303 : vector<8x256xf32>
    %c0_72 = arith.constant 0 : index
    %c0_73 = arith.constant 0 : index
    %c0_74 = arith.constant 0 : index
    %305 = vector.load %arg2[%c0_72, %c0_73, %c0_74] : memref<2x256x32xbf16, #tpu.memory_space<vmem>>, vector<1x256x32xbf16>
    %306 = vector.shape_cast %305 : vector<1x256x32xbf16> to vector<256x32xbf16>
    %307 = arith.truncf %304 : vector<8x256xf32> to vector<8x256xbf16>
    %cst_75 = arith.constant dense<0.000000e+00> : vector<8x32xf32>
    %308 = tpu.matmul %307, %306, %cst_75 {dimension_numbers = #tpu.dot_dimension_numbers<[1], [0], [0], [1], [0, 0, 1, 1], [], []>} : vector<8x256xbf16>, vector<256x32xbf16>, vector<8x32xf32> -> vector<8x32xf32>
    %309 = arith.addf %143, %308 : vector<8x32xf32>
    %cst_76 = arith.constant 0.000000e+00 : f32
    %310 = vector.broadcast %cst_76 : f32 to vector<8x32xf32>
    %cst_77 = arith.constant 0.000000e+00 : f32
    %311 = vector.broadcast %cst_77 : f32 to vector<8x256xf32>
    %312 = vector.extract_strided_slice %91 {offsets = [8, 0], sizes = [8, 4], strides = [1, 1]} : vector<16x4xi32> to vector<8x4xi32>
    %c0_i32_78 = arith.constant 0 : i32
    %313 = vector.broadcast %c0_i32_78 : i32 to vector<8x4xi32>
    %314 = arith.subi %312, %313 : vector<8x4xi32>
    %315 = vector.extract_strided_slice %88 {offsets = [8, 0], sizes = [8, 4], strides = [1, 1]} : vector<16x4xf32> to vector<8x4xf32>
    %316 = vector.extract_strided_slice %314 {offsets = [0, 0], sizes = [8, 1], strides = [1, 1]} : vector<8x4xi32> to vector<8x1xi32>
    %317 = vector.broadcast %316 : vector<8x1xi32> to vector<8x256xi32>
    %318 = arith.cmpi eq, %12, %317 : vector<8x256xi32>
    %319 = vector.extract_strided_slice %315 {offsets = [0, 0], sizes = [8, 1], strides = [1, 1]} : vector<8x4xf32> to vector<8x1xf32>
    %cst_79 = arith.constant 0.000000e+00 : f32
    %320 = vector.shape_cast %319 : vector<8x1xf32> to vector<8x1xf32>
    %321 = vector.broadcast %320 : vector<8x1xf32> to vector<8x256xf32>
    %322 = vector.broadcast %cst_79 : f32 to vector<8x256xf32>
    %323 = arith.select %318, %321, %322 : vector<8x256xi1>, vector<8x256xf32>
    %324 = arith.addf %311, %323 : vector<8x256xf32>
    %325 = vector.extract_strided_slice %314 {offsets = [0, 1], sizes = [8, 1], strides = [1, 1]} : vector<8x4xi32> to vector<8x1xi32>
    %326 = vector.broadcast %325 : vector<8x1xi32> to vector<8x256xi32>
    %327 = arith.cmpi eq, %12, %326 : vector<8x256xi32>
    %328 = vector.extract_strided_slice %315 {offsets = [0, 1], sizes = [8, 1], strides = [1, 1]} : vector<8x4xf32> to vector<8x1xf32>
    %cst_80 = arith.constant 0.000000e+00 : f32
    %329 = vector.shape_cast %328 : vector<8x1xf32> to vector<8x1xf32>
    %330 = vector.broadcast %329 : vector<8x1xf32> to vector<8x256xf32>
    %331 = vector.broadcast %cst_80 : f32 to vector<8x256xf32>
    %332 = arith.select %327, %330, %331 : vector<8x256xi1>, vector<8x256xf32>
    %333 = arith.addf %324, %332 : vector<8x256xf32>
    %334 = vector.extract_strided_slice %314 {offsets = [0, 2], sizes = [8, 1], strides = [1, 1]} : vector<8x4xi32> to vector<8x1xi32>
    %335 = vector.broadcast %334 : vector<8x1xi32> to vector<8x256xi32>
    %336 = arith.cmpi eq, %12, %335 : vector<8x256xi32>
    %337 = vector.extract_strided_slice %315 {offsets = [0, 2], sizes = [8, 1], strides = [1, 1]} : vector<8x4xf32> to vector<8x1xf32>
    %cst_81 = arith.constant 0.000000e+00 : f32
    %338 = vector.shape_cast %337 : vector<8x1xf32> to vector<8x1xf32>
    %339 = vector.broadcast %338 : vector<8x1xf32> to vector<8x256xf32>
    %340 = vector.broadcast %cst_81 : f32 to vector<8x256xf32>
    %341 = arith.select %336, %339, %340 : vector<8x256xi1>, vector<8x256xf32>
    %342 = arith.addf %333, %341 : vector<8x256xf32>
    %343 = vector.extract_strided_slice %314 {offsets = [0, 3], sizes = [8, 1], strides = [1, 1]} : vector<8x4xi32> to vector<8x1xi32>
    %344 = vector.broadcast %343 : vector<8x1xi32> to vector<8x256xi32>
    %345 = arith.cmpi eq, %12, %344 : vector<8x256xi32>
    %346 = vector.extract_strided_slice %315 {offsets = [0, 3], sizes = [8, 1], strides = [1, 1]} : vector<8x4xf32> to vector<8x1xf32>
    %cst_82 = arith.constant 0.000000e+00 : f32
    %347 = vector.shape_cast %346 : vector<8x1xf32> to vector<8x1xf32>
    %348 = vector.broadcast %347 : vector<8x1xf32> to vector<8x256xf32>
    %349 = vector.broadcast %cst_82 : f32 to vector<8x256xf32>
    %350 = arith.select %345, %348, %349 : vector<8x256xi1>, vector<8x256xf32>
    %351 = arith.addf %342, %350 : vector<8x256xf32>
    %352 = vector.extract_strided_slice %108 {offsets = [8, 0], sizes = [8, 4], strides = [1, 1]} : vector<16x4xi32> to vector<8x4xi32>
    %c0_i32_83 = arith.constant 0 : i32
    %353 = vector.broadcast %c0_i32_83 : i32 to vector<8x4xi32>
    %354 = arith.subi %352, %353 : vector<8x4xi32>
    %355 = vector.extract_strided_slice %105 {offsets = [8, 0], sizes = [8, 4], strides = [1, 1]} : vector<16x4xf32> to vector<8x4xf32>
    %356 = vector.extract_strided_slice %354 {offsets = [0, 0], sizes = [8, 1], strides = [1, 1]} : vector<8x4xi32> to vector<8x1xi32>
    %357 = vector.broadcast %356 : vector<8x1xi32> to vector<8x256xi32>
    %358 = arith.cmpi eq, %12, %357 : vector<8x256xi32>
    %359 = vector.extract_strided_slice %355 {offsets = [0, 0], sizes = [8, 1], strides = [1, 1]} : vector<8x4xf32> to vector<8x1xf32>
    %cst_84 = arith.constant 0.000000e+00 : f32
    %360 = vector.shape_cast %359 : vector<8x1xf32> to vector<8x1xf32>
    %361 = vector.broadcast %360 : vector<8x1xf32> to vector<8x256xf32>
    %362 = vector.broadcast %cst_84 : f32 to vector<8x256xf32>
    %363 = arith.select %358, %361, %362 : vector<8x256xi1>, vector<8x256xf32>
    %364 = arith.addf %351, %363 : vector<8x256xf32>
    %365 = vector.extract_strided_slice %354 {offsets = [0, 1], sizes = [8, 1], strides = [1, 1]} : vector<8x4xi32> to vector<8x1xi32>
    %366 = vector.broadcast %365 : vector<8x1xi32> to vector<8x256xi32>
    %367 = arith.cmpi eq, %12, %366 : vector<8x256xi32>
    %368 = vector.extract_strided_slice %355 {offsets = [0, 1], sizes = [8, 1], strides = [1, 1]} : vector<8x4xf32> to vector<8x1xf32>
    %cst_85 = arith.constant 0.000000e+00 : f32
    %369 = vector.shape_cast %368 : vector<8x1xf32> to vector<8x1xf32>
    %370 = vector.broadcast %369 : vector<8x1xf32> to vector<8x256xf32>
    %371 = vector.broadcast %cst_85 : f32 to vector<8x256xf32>
    %372 = arith.select %367, %370, %371 : vector<8x256xi1>, vector<8x256xf32>
    %373 = arith.addf %364, %372 : vector<8x256xf32>
    %374 = vector.extract_strided_slice %354 {offsets = [0, 2], sizes = [8, 1], strides = [1, 1]} : vector<8x4xi32> to vector<8x1xi32>
    %375 = vector.broadcast %374 : vector<8x1xi32> to vector<8x256xi32>
    %376 = arith.cmpi eq, %12, %375 : vector<8x256xi32>
    %377 = vector.extract_strided_slice %355 {offsets = [0, 2], sizes = [8, 1], strides = [1, 1]} : vector<8x4xf32> to vector<8x1xf32>
    %cst_86 = arith.constant 0.000000e+00 : f32
    %378 = vector.shape_cast %377 : vector<8x1xf32> to vector<8x1xf32>
    %379 = vector.broadcast %378 : vector<8x1xf32> to vector<8x256xf32>
    %380 = vector.broadcast %cst_86 : f32 to vector<8x256xf32>
    %381 = arith.select %376, %379, %380 : vector<8x256xi1>, vector<8x256xf32>
    %382 = arith.addf %373, %381 : vector<8x256xf32>
    %383 = vector.extract_strided_slice %354 {offsets = [0, 3], sizes = [8, 1], strides = [1, 1]} : vector<8x4xi32> to vector<8x1xi32>
    %384 = vector.broadcast %383 : vector<8x1xi32> to vector<8x256xi32>
    %385 = arith.cmpi eq, %12, %384 : vector<8x256xi32>
    %386 = vector.extract_strided_slice %355 {offsets = [0, 3], sizes = [8, 1], strides = [1, 1]} : vector<8x4xf32> to vector<8x1xf32>
    %cst_87 = arith.constant 0.000000e+00 : f32
    %387 = vector.shape_cast %386 : vector<8x1xf32> to vector<8x1xf32>
    %388 = vector.broadcast %387 : vector<8x1xf32> to vector<8x256xf32>
    %389 = vector.broadcast %cst_87 : f32 to vector<8x256xf32>
    %390 = arith.select %385, %388, %389 : vector<8x256xi1>, vector<8x256xf32>
    %391 = arith.addf %382, %390 : vector<8x256xf32>
    %392 = vector.extract_strided_slice %125 {offsets = [8, 0], sizes = [8, 4], strides = [1, 1]} : vector<16x4xi32> to vector<8x4xi32>
    %c0_i32_88 = arith.constant 0 : i32
    %393 = vector.broadcast %c0_i32_88 : i32 to vector<8x4xi32>
    %394 = arith.subi %392, %393 : vector<8x4xi32>
    %395 = vector.extract_strided_slice %122 {offsets = [8, 0], sizes = [8, 4], strides = [1, 1]} : vector<16x4xf32> to vector<8x4xf32>
    %396 = vector.extract_strided_slice %394 {offsets = [0, 0], sizes = [8, 1], strides = [1, 1]} : vector<8x4xi32> to vector<8x1xi32>
    %397 = vector.broadcast %396 : vector<8x1xi32> to vector<8x256xi32>
    %398 = arith.cmpi eq, %12, %397 : vector<8x256xi32>
    %399 = vector.extract_strided_slice %395 {offsets = [0, 0], sizes = [8, 1], strides = [1, 1]} : vector<8x4xf32> to vector<8x1xf32>
    %cst_89 = arith.constant 0.000000e+00 : f32
    %400 = vector.shape_cast %399 : vector<8x1xf32> to vector<8x1xf32>
    %401 = vector.broadcast %400 : vector<8x1xf32> to vector<8x256xf32>
    %402 = vector.broadcast %cst_89 : f32 to vector<8x256xf32>
    %403 = arith.select %398, %401, %402 : vector<8x256xi1>, vector<8x256xf32>
    %404 = arith.addf %391, %403 : vector<8x256xf32>
    %405 = vector.extract_strided_slice %394 {offsets = [0, 1], sizes = [8, 1], strides = [1, 1]} : vector<8x4xi32> to vector<8x1xi32>
    %406 = vector.broadcast %405 : vector<8x1xi32> to vector<8x256xi32>
    %407 = arith.cmpi eq, %12, %406 : vector<8x256xi32>
    %408 = vector.extract_strided_slice %395 {offsets = [0, 1], sizes = [8, 1], strides = [1, 1]} : vector<8x4xf32> to vector<8x1xf32>
    %cst_90 = arith.constant 0.000000e+00 : f32
    %409 = vector.shape_cast %408 : vector<8x1xf32> to vector<8x1xf32>
    %410 = vector.broadcast %409 : vector<8x1xf32> to vector<8x256xf32>
    %411 = vector.broadcast %cst_90 : f32 to vector<8x256xf32>
    %412 = arith.select %407, %410, %411 : vector<8x256xi1>, vector<8x256xf32>
    %413 = arith.addf %404, %412 : vector<8x256xf32>
    %414 = vector.extract_strided_slice %394 {offsets = [0, 2], sizes = [8, 1], strides = [1, 1]} : vector<8x4xi32> to vector<8x1xi32>
    %415 = vector.broadcast %414 : vector<8x1xi32> to vector<8x256xi32>
    %416 = arith.cmpi eq, %12, %415 : vector<8x256xi32>
    %417 = vector.extract_strided_slice %395 {offsets = [0, 2], sizes = [8, 1], strides = [1, 1]} : vector<8x4xf32> to vector<8x1xf32>
    %cst_91 = arith.constant 0.000000e+00 : f32
    %418 = vector.shape_cast %417 : vector<8x1xf32> to vector<8x1xf32>
    %419 = vector.broadcast %418 : vector<8x1xf32> to vector<8x256xf32>
    %420 = vector.broadcast %cst_91 : f32 to vector<8x256xf32>
    %421 = arith.select %416, %419, %420 : vector<8x256xi1>, vector<8x256xf32>
    %422 = arith.addf %413, %421 : vector<8x256xf32>
    %423 = vector.extract_strided_slice %394 {offsets = [0, 3], sizes = [8, 1], strides = [1, 1]} : vector<8x4xi32> to vector<8x1xi32>
    %424 = vector.broadcast %423 : vector<8x1xi32> to vector<8x256xi32>
    %425 = arith.cmpi eq, %12, %424 : vector<8x256xi32>
    %426 = vector.extract_strided_slice %395 {offsets = [0, 3], sizes = [8, 1], strides = [1, 1]} : vector<8x4xf32> to vector<8x1xf32>
    %cst_92 = arith.constant 0.000000e+00 : f32
    %427 = vector.shape_cast %426 : vector<8x1xf32> to vector<8x1xf32>
    %428 = vector.broadcast %427 : vector<8x1xf32> to vector<8x256xf32>
    %429 = vector.broadcast %cst_92 : f32 to vector<8x256xf32>
    %430 = arith.select %425, %428, %429 : vector<8x256xi1>, vector<8x256xf32>
    %431 = arith.addf %422, %430 : vector<8x256xf32>
    %432 = vector.extract_strided_slice %142 {offsets = [8, 0], sizes = [8, 4], strides = [1, 1]} : vector<16x4xi32> to vector<8x4xi32>
    %c0_i32_93 = arith.constant 0 : i32
    %433 = vector.broadcast %c0_i32_93 : i32 to vector<8x4xi32>
    %434 = arith.subi %432, %433 : vector<8x4xi32>
    %435 = vector.extract_strided_slice %139 {offsets = [8, 0], sizes = [8, 4], strides = [1, 1]} : vector<16x4xf32> to vector<8x4xf32>
    %436 = vector.extract_strided_slice %434 {offsets = [0, 0], sizes = [8, 1], strides = [1, 1]} : vector<8x4xi32> to vector<8x1xi32>
    %437 = vector.broadcast %436 : vector<8x1xi32> to vector<8x256xi32>
    %438 = arith.cmpi eq, %12, %437 : vector<8x256xi32>
    %439 = vector.extract_strided_slice %435 {offsets = [0, 0], sizes = [8, 1], strides = [1, 1]} : vector<8x4xf32> to vector<8x1xf32>
    %cst_94 = arith.constant 0.000000e+00 : f32
    %440 = vector.shape_cast %439 : vector<8x1xf32> to vector<8x1xf32>
    %441 = vector.broadcast %440 : vector<8x1xf32> to vector<8x256xf32>
    %442 = vector.broadcast %cst_94 : f32 to vector<8x256xf32>
    %443 = arith.select %438, %441, %442 : vector<8x256xi1>, vector<8x256xf32>
    %444 = arith.addf %431, %443 : vector<8x256xf32>
    %445 = vector.extract_strided_slice %434 {offsets = [0, 1], sizes = [8, 1], strides = [1, 1]} : vector<8x4xi32> to vector<8x1xi32>
    %446 = vector.broadcast %445 : vector<8x1xi32> to vector<8x256xi32>
    %447 = arith.cmpi eq, %12, %446 : vector<8x256xi32>
    %448 = vector.extract_strided_slice %435 {offsets = [0, 1], sizes = [8, 1], strides = [1, 1]} : vector<8x4xf32> to vector<8x1xf32>
    %cst_95 = arith.constant 0.000000e+00 : f32
    %449 = vector.shape_cast %448 : vector<8x1xf32> to vector<8x1xf32>
    %450 = vector.broadcast %449 : vector<8x1xf32> to vector<8x256xf32>
    %451 = vector.broadcast %cst_95 : f32 to vector<8x256xf32>
    %452 = arith.select %447, %450, %451 : vector<8x256xi1>, vector<8x256xf32>
    %453 = arith.addf %444, %452 : vector<8x256xf32>
    %454 = vector.extract_strided_slice %434 {offsets = [0, 2], sizes = [8, 1], strides = [1, 1]} : vector<8x4xi32> to vector<8x1xi32>
    %455 = vector.broadcast %454 : vector<8x1xi32> to vector<8x256xi32>
    %456 = arith.cmpi eq, %12, %455 : vector<8x256xi32>
    %457 = vector.extract_strided_slice %435 {offsets = [0, 2], sizes = [8, 1], strides = [1, 1]} : vector<8x4xf32> to vector<8x1xf32>
    %cst_96 = arith.constant 0.000000e+00 : f32
    %458 = vector.shape_cast %457 : vector<8x1xf32> to vector<8x1xf32>
    %459 = vector.broadcast %458 : vector<8x1xf32> to vector<8x256xf32>
    %460 = vector.broadcast %cst_96 : f32 to vector<8x256xf32>
    %461 = arith.select %456, %459, %460 : vector<8x256xi1>, vector<8x256xf32>
    %462 = arith.addf %453, %461 : vector<8x256xf32>
    %463 = vector.extract_strided_slice %434 {offsets = [0, 3], sizes = [8, 1], strides = [1, 1]} : vector<8x4xi32> to vector<8x1xi32>
    %464 = vector.broadcast %463 : vector<8x1xi32> to vector<8x256xi32>
    %465 = arith.cmpi eq, %12, %464 : vector<8x256xi32>
    %466 = vector.extract_strided_slice %435 {offsets = [0, 3], sizes = [8, 1], strides = [1, 1]} : vector<8x4xf32> to vector<8x1xf32>
    %cst_97 = arith.constant 0.000000e+00 : f32
    %467 = vector.shape_cast %466 : vector<8x1xf32> to vector<8x1xf32>
    %468 = vector.broadcast %467 : vector<8x1xf32> to vector<8x256xf32>
    %469 = vector.broadcast %cst_97 : f32 to vector<8x256xf32>
    %470 = arith.select %465, %468, %469 : vector<8x256xi1>, vector<8x256xf32>
    %471 = arith.addf %462, %470 : vector<8x256xf32>
    %c1 = arith.constant 1 : index
    %c0_98 = arith.constant 0 : index
    %c0_99 = arith.constant 0 : index
    %472 = vector.load %arg2[%c1, %c0_98, %c0_99] : memref<2x256x32xbf16, #tpu.memory_space<vmem>>, vector<1x256x32xbf16>
    %473 = vector.shape_cast %472 : vector<1x256x32xbf16> to vector<256x32xbf16>
    %474 = arith.truncf %471 : vector<8x256xf32> to vector<8x256xbf16>
    %cst_100 = arith.constant dense<0.000000e+00> : vector<8x32xf32>
    %475 = tpu.matmul %474, %473, %cst_100 {dimension_numbers = #tpu.dot_dimension_numbers<[1], [0], [0], [1], [0, 0, 1, 1], [], []>} : vector<8x256xbf16>, vector<256x32xbf16>, vector<8x32xf32> -> vector<8x32xf32>
    %476 = arith.addf %310, %475 : vector<8x32xf32>
    %477 = tpu.iota {dimensions = array<i32: 1>} : vector<16x4xi32>
    %cst_101 = arith.constant dense<0xFF800000> : vector<16xf32>
    %478 = vector.multi_reduction <maximumf>, %32, %cst_101 [1] : vector<16x4xf32> to vector<16xf32>
    %479 = vector.shape_cast %478 : vector<16xf32> to vector<16x1xf32>
    %480 = vector.broadcast %479 : vector<16x1xf32> to vector<16x4xf32>
    %481 = arith.cmpf oeq, %32, %480 : vector<16x4xf32>
    %c4_i32 = arith.constant 4 : i32
    %482 = vector.broadcast %c4_i32 : i32 to vector<16x4xi32>
    %483 = arith.select %481, %477, %482 : vector<16x4xi1>, vector<16x4xi32>
    %cst_102 = arith.constant dense<2147483647> : vector<16xi32>
    %484 = vector.multi_reduction <minsi>, %483, %cst_102 [1] : vector<16x4xi32> to vector<16xi32>
    %485 = vector.shape_cast %484 : vector<16xi32> to vector<16x1xi32>
    %486 = vector.broadcast %485 : vector<16x1xi32> to vector<16x4xi32>
    %487 = arith.cmpi eq, %477, %486 : vector<16x4xi32>
    %488 = arith.extui %487 : vector<16x4xi1> to vector<16x4xi32>
    %489 = arith.sitofp %488 : vector<16x4xi32> to vector<16x4xf32>
    %490 = arith.mulf %20, %489 : vector<16x4xf32>
    %cst_103 = arith.constant dense<0.000000e+00> : vector<16xf32>
    %491 = vector.multi_reduction <add>, %490, %cst_103 [1] : vector<16x4xf32> to vector<16xf32>
    %492 = vector.shape_cast %491 : vector<16xf32> to vector<16x1xf32>
    %493 = arith.addf %4, %492 : vector<16x1xf32>
    %494 = arith.mulf %21, %489 : vector<16x4xf32>
    %cst_104 = arith.constant dense<0.000000e+00> : vector<16xf32>
    %495 = vector.multi_reduction <add>, %494, %cst_104 [1] : vector<16x4xf32> to vector<16xf32>
    %496 = vector.shape_cast %495 : vector<16xf32> to vector<16x1xf32>
    %497 = arith.addf %5, %496 : vector<16x1xf32>
    %498 = tpu.concatenate %309, %476 in 0 : vector<8x32xf32>, vector<8x32xf32> -> vector<16x32xf32>
    %c1_105 = arith.constant 1 : index
    %c0_106 = arith.constant 0 : index
    %c0_107 = arith.constant 0 : index
    %499 = vector.load %arg4[%c1_105, %c0_106, %c0_107] : memref<3x32x128xf32, #tpu.memory_space<vmem>>, vector<1x32x128xf32>
    %500 = vector.shape_cast %499 : vector<1x32x128xf32> to vector<32x128xf32>
    %c1_108 = arith.constant 1 : index
    %c0_109 = arith.constant 0 : index
    %c0_110 = arith.constant 0 : index
    %501 = vector.load %arg5[%c1_108, %c0_109, %c0_110] : memref<3x1x128xf32, #tpu.memory_space<vmem>>, vector<1x1x128xf32>
    %502 = vector.shape_cast %501 : vector<1x1x128xf32> to vector<1x128xf32>
    %cst_111 = arith.constant dense<0.000000e+00> : vector<16x128xf32>
    %503 = tpu.matmul %498, %500, %cst_111 {dimension_numbers = #tpu.dot_dimension_numbers<[1], [0], [0], [1], [0, 0, 1, 1], [], []>} : vector<16x32xf32>, vector<32x128xf32>, vector<16x128xf32> -> vector<16x128xf32>
    %504 = vector.broadcast %502 : vector<1x128xf32> to vector<16x128xf32>
    %505 = arith.addf %503, %504 : vector<16x128xf32>
    %506 = vector.extract_strided_slice %505 {offsets = [0, 0], sizes = [16, 2], strides = [1, 1]} : vector<16x128xf32> to vector<16x2xf32>
    %507 = vector.extract_strided_slice %505 {offsets = [0, 2], sizes = [16, 2], strides = [1, 1]} : vector<16x128xf32> to vector<16x2xf32>
    %508 = vector.extract_strided_slice %505 {offsets = [0, 4], sizes = [16, 2], strides = [1, 1]} : vector<16x128xf32> to vector<16x2xf32>
    %cst_112 = arith.constant dense<0xFF800000> : vector<16xf32>
    %509 = vector.multi_reduction <maximumf>, %508, %cst_112 [1] : vector<16x2xf32> to vector<16xf32>
    %510 = vector.shape_cast %509 : vector<16xf32> to vector<16x1xf32>
    %511 = vector.broadcast %510 : vector<16x1xf32> to vector<16x2xf32>
    %512 = arith.subf %508, %511 : vector<16x2xf32>
    %513 = math.exp %512 : vector<16x2xf32>
    %cst_113 = arith.constant dense<0.000000e+00> : vector<16xf32>
    %514 = vector.multi_reduction <add>, %513, %cst_113 [1] : vector<16x2xf32> to vector<16xf32>
    %515 = vector.shape_cast %514 : vector<16xf32> to vector<16x1xf32>
    %516 = tpu.reciprocal %515 {approx = true} : vector<16x1xf32> -> vector<16x1xf32>
    %517 = vector.broadcast %516 : vector<16x1xf32> to vector<16x2xf32>
    %518 = arith.mulf %513, %517 : vector<16x2xf32>
    %519 = vector.broadcast %493 : vector<16x1xf32> to vector<16x2xf32>
    %520 = arith.addf %519, %506 : vector<16x2xf32>
    %521 = vector.broadcast %497 : vector<16x1xf32> to vector<16x2xf32>
    %522 = arith.addf %521, %507 : vector<16x2xf32>
    %cst_114 = arith.constant 6.250000e-03 : f32
    %523 = vector.broadcast %cst_114 : f32 to vector<16x2xf32>
    %524 = arith.mulf %520, %523 : vector<16x2xf32>
    %525 = vector.broadcast %8 : vector<16x1xf32> to vector<16x2xf32>
    %526 = arith.addf %525, %524 : vector<16x2xf32>
    %cst_115 = arith.constant 6.250000e-03 : f32
    %527 = vector.broadcast %cst_115 : f32 to vector<16x2xf32>
    %528 = arith.mulf %522, %527 : vector<16x2xf32>
    %529 = vector.broadcast %11 : vector<16x1xf32> to vector<16x2xf32>
    %530 = arith.addf %529, %528 : vector<16x2xf32>
    %cst_116 = arith.constant 1.600000e+01 : f32
    %531 = vector.broadcast %cst_116 : f32 to vector<16x2xf32>
    %532 = arith.mulf %526, %531 : vector<16x2xf32>
    %cst_117 = arith.constant 5.000000e-01 : f32
    %533 = vector.broadcast %cst_117 : f32 to vector<16x2xf32>
    %534 = arith.subf %532, %533 : vector<16x2xf32>
    %cst_118 = arith.constant 1.600000e+01 : f32
    %535 = vector.broadcast %cst_118 : f32 to vector<16x2xf32>
    %536 = arith.mulf %530, %535 : vector<16x2xf32>
    %cst_119 = arith.constant 5.000000e-01 : f32
    %537 = vector.broadcast %cst_119 : f32 to vector<16x2xf32>
    %538 = arith.subf %536, %537 : vector<16x2xf32>
    %539 = math.floor %534 : vector<16x2xf32>
    %540 = math.floor %538 : vector<16x2xf32>
    %541 = arith.subf %534, %539 : vector<16x2xf32>
    %542 = arith.subf %538, %540 : vector<16x2xf32>
    %543 = arith.fptosi %539 : vector<16x2xf32> to vector<16x2xi32>
    %544 = arith.fptosi %540 : vector<16x2xf32> to vector<16x2xi32>
    %c1_i32_120 = arith.constant 1 : i32
    %545 = vector.broadcast %c1_i32_120 : i32 to vector<16x2xi32>
    %546 = arith.addi %543, %545 : vector<16x2xi32>
    %c1_i32_121 = arith.constant 1 : i32
    %547 = vector.broadcast %c1_i32_121 : i32 to vector<16x2xi32>
    %548 = arith.addi %544, %547 : vector<16x2xi32>
    %cst_122 = arith.constant 1.000000e+00 : f32
    %549 = vector.broadcast %cst_122 : f32 to vector<16x2xf32>
    %550 = arith.subf %549, %541 : vector<16x2xf32>
    %cst_123 = arith.constant 1.000000e+00 : f32
    %551 = vector.broadcast %cst_123 : f32 to vector<16x2xf32>
    %552 = arith.subf %551, %542 : vector<16x2xf32>
    %553 = arith.mulf %550, %552 : vector<16x2xf32>
    %cst_124 = arith.constant 1.000000e+00 : f32
    %554 = vector.broadcast %cst_124 : f32 to vector<16x2xf32>
    %555 = arith.subf %554, %541 : vector<16x2xf32>
    %556 = arith.mulf %555, %542 : vector<16x2xf32>
    %cst_125 = arith.constant 1.000000e+00 : f32
    %557 = vector.broadcast %cst_125 : f32 to vector<16x2xf32>
    %558 = arith.subf %557, %542 : vector<16x2xf32>
    %559 = arith.mulf %541, %558 : vector<16x2xf32>
    %560 = arith.mulf %541, %542 : vector<16x2xf32>
    %c0_i32_126 = arith.constant 0 : i32
    %561 = vector.broadcast %c0_i32_126 : i32 to vector<16x2xi32>
    %562 = arith.cmpi sge, %543, %561 : vector<16x2xi32>
    %c16_i32_127 = arith.constant 16 : i32
    %563 = vector.broadcast %c16_i32_127 : i32 to vector<16x2xi32>
    %564 = arith.cmpi slt, %543, %563 : vector<16x2xi32>
    %565 = arith.andi %562, %564 : vector<16x2xi1>
    %c0_i32_128 = arith.constant 0 : i32
    %566 = vector.broadcast %c0_i32_128 : i32 to vector<16x2xi32>
    %567 = arith.cmpi sge, %544, %566 : vector<16x2xi32>
    %568 = arith.andi %565, %567 : vector<16x2xi1>
    %c16_i32_129 = arith.constant 16 : i32
    %569 = vector.broadcast %c16_i32_129 : i32 to vector<16x2xi32>
    %570 = arith.cmpi slt, %544, %569 : vector<16x2xi32>
    %571 = arith.andi %568, %570 : vector<16x2xi1>
    %572 = arith.mulf %553, %518 : vector<16x2xf32>
    %cst_130 = arith.constant 0.000000e+00 : f32
    %573 = vector.broadcast %cst_130 : f32 to vector<16x2xf32>
    %574 = arith.select %571, %572, %573 : vector<16x2xi1>, vector<16x2xf32>
    %c16_i32_131 = arith.constant 16 : i32
    %575 = vector.broadcast %c16_i32_131 : i32 to vector<16x2xi32>
    %576 = arith.muli %543, %575 : vector<16x2xi32>
    %577 = arith.addi %576, %544 : vector<16x2xi32>
    %c0_i32_132 = arith.constant 0 : i32
    %578 = vector.broadcast %c0_i32_132 : i32 to vector<16x2xi32>
    %579 = arith.cmpi sge, %543, %578 : vector<16x2xi32>
    %c16_i32_133 = arith.constant 16 : i32
    %580 = vector.broadcast %c16_i32_133 : i32 to vector<16x2xi32>
    %581 = arith.cmpi slt, %543, %580 : vector<16x2xi32>
    %582 = arith.andi %579, %581 : vector<16x2xi1>
    %c0_i32_134 = arith.constant 0 : i32
    %583 = vector.broadcast %c0_i32_134 : i32 to vector<16x2xi32>
    %584 = arith.cmpi sge, %548, %583 : vector<16x2xi32>
    %585 = arith.andi %582, %584 : vector<16x2xi1>
    %c16_i32_135 = arith.constant 16 : i32
    %586 = vector.broadcast %c16_i32_135 : i32 to vector<16x2xi32>
    %587 = arith.cmpi slt, %548, %586 : vector<16x2xi32>
    %588 = arith.andi %585, %587 : vector<16x2xi1>
    %589 = arith.mulf %556, %518 : vector<16x2xf32>
    %cst_136 = arith.constant 0.000000e+00 : f32
    %590 = vector.broadcast %cst_136 : f32 to vector<16x2xf32>
    %591 = arith.select %588, %589, %590 : vector<16x2xi1>, vector<16x2xf32>
    %c16_i32_137 = arith.constant 16 : i32
    %592 = vector.broadcast %c16_i32_137 : i32 to vector<16x2xi32>
    %593 = arith.muli %543, %592 : vector<16x2xi32>
    %594 = arith.addi %593, %548 : vector<16x2xi32>
    %c0_i32_138 = arith.constant 0 : i32
    %595 = vector.broadcast %c0_i32_138 : i32 to vector<16x2xi32>
    %596 = arith.cmpi sge, %546, %595 : vector<16x2xi32>
    %c16_i32_139 = arith.constant 16 : i32
    %597 = vector.broadcast %c16_i32_139 : i32 to vector<16x2xi32>
    %598 = arith.cmpi slt, %546, %597 : vector<16x2xi32>
    %599 = arith.andi %596, %598 : vector<16x2xi1>
    %c0_i32_140 = arith.constant 0 : i32
    %600 = vector.broadcast %c0_i32_140 : i32 to vector<16x2xi32>
    %601 = arith.cmpi sge, %544, %600 : vector<16x2xi32>
    %602 = arith.andi %599, %601 : vector<16x2xi1>
    %c16_i32_141 = arith.constant 16 : i32
    %603 = vector.broadcast %c16_i32_141 : i32 to vector<16x2xi32>
    %604 = arith.cmpi slt, %544, %603 : vector<16x2xi32>
    %605 = arith.andi %602, %604 : vector<16x2xi1>
    %606 = arith.mulf %559, %518 : vector<16x2xf32>
    %cst_142 = arith.constant 0.000000e+00 : f32
    %607 = vector.broadcast %cst_142 : f32 to vector<16x2xf32>
    %608 = arith.select %605, %606, %607 : vector<16x2xi1>, vector<16x2xf32>
    %c16_i32_143 = arith.constant 16 : i32
    %609 = vector.broadcast %c16_i32_143 : i32 to vector<16x2xi32>
    %610 = arith.muli %546, %609 : vector<16x2xi32>
    %611 = arith.addi %610, %544 : vector<16x2xi32>
    %c0_i32_144 = arith.constant 0 : i32
    %612 = vector.broadcast %c0_i32_144 : i32 to vector<16x2xi32>
    %613 = arith.cmpi sge, %546, %612 : vector<16x2xi32>
    %c16_i32_145 = arith.constant 16 : i32
    %614 = vector.broadcast %c16_i32_145 : i32 to vector<16x2xi32>
    %615 = arith.cmpi slt, %546, %614 : vector<16x2xi32>
    %616 = arith.andi %613, %615 : vector<16x2xi1>
    %c0_i32_146 = arith.constant 0 : i32
    %617 = vector.broadcast %c0_i32_146 : i32 to vector<16x2xi32>
    %618 = arith.cmpi sge, %548, %617 : vector<16x2xi32>
    %619 = arith.andi %616, %618 : vector<16x2xi1>
    %c16_i32_147 = arith.constant 16 : i32
    %620 = vector.broadcast %c16_i32_147 : i32 to vector<16x2xi32>
    %621 = arith.cmpi slt, %548, %620 : vector<16x2xi32>
    %622 = arith.andi %619, %621 : vector<16x2xi1>
    %623 = arith.mulf %560, %518 : vector<16x2xf32>
    %cst_148 = arith.constant 0.000000e+00 : f32
    %624 = vector.broadcast %cst_148 : f32 to vector<16x2xf32>
    %625 = arith.select %622, %623, %624 : vector<16x2xi1>, vector<16x2xf32>
    %c16_i32_149 = arith.constant 16 : i32
    %626 = vector.broadcast %c16_i32_149 : i32 to vector<16x2xi32>
    %627 = arith.muli %546, %626 : vector<16x2xi32>
    %628 = arith.addi %627, %548 : vector<16x2xi32>
    %cst_150 = arith.constant 0.000000e+00 : f32
    %629 = vector.broadcast %cst_150 : f32 to vector<8x32xf32>
    %cst_151 = arith.constant 0.000000e+00 : f32
    %630 = vector.broadcast %cst_151 : f32 to vector<8x256xf32>
    %631 = vector.extract_strided_slice %577 {offsets = [0, 0], sizes = [8, 2], strides = [1, 1]} : vector<16x2xi32> to vector<8x2xi32>
    %c0_i32_152 = arith.constant 0 : i32
    %632 = vector.broadcast %c0_i32_152 : i32 to vector<8x2xi32>
    %633 = arith.subi %631, %632 : vector<8x2xi32>
    %634 = vector.extract_strided_slice %574 {offsets = [0, 0], sizes = [8, 2], strides = [1, 1]} : vector<16x2xf32> to vector<8x2xf32>
    %635 = vector.extract_strided_slice %633 {offsets = [0, 0], sizes = [8, 1], strides = [1, 1]} : vector<8x2xi32> to vector<8x1xi32>
    %636 = vector.broadcast %635 : vector<8x1xi32> to vector<8x256xi32>
    %637 = arith.cmpi eq, %12, %636 : vector<8x256xi32>
    %638 = vector.extract_strided_slice %634 {offsets = [0, 0], sizes = [8, 1], strides = [1, 1]} : vector<8x2xf32> to vector<8x1xf32>
    %cst_153 = arith.constant 0.000000e+00 : f32
    %639 = vector.shape_cast %638 : vector<8x1xf32> to vector<8x1xf32>
    %640 = vector.broadcast %639 : vector<8x1xf32> to vector<8x256xf32>
    %641 = vector.broadcast %cst_153 : f32 to vector<8x256xf32>
    %642 = arith.select %637, %640, %641 : vector<8x256xi1>, vector<8x256xf32>
    %643 = arith.addf %630, %642 : vector<8x256xf32>
    %644 = vector.extract_strided_slice %633 {offsets = [0, 1], sizes = [8, 1], strides = [1, 1]} : vector<8x2xi32> to vector<8x1xi32>
    %645 = vector.broadcast %644 : vector<8x1xi32> to vector<8x256xi32>
    %646 = arith.cmpi eq, %12, %645 : vector<8x256xi32>
    %647 = vector.extract_strided_slice %634 {offsets = [0, 1], sizes = [8, 1], strides = [1, 1]} : vector<8x2xf32> to vector<8x1xf32>
    %cst_154 = arith.constant 0.000000e+00 : f32
    %648 = vector.shape_cast %647 : vector<8x1xf32> to vector<8x1xf32>
    %649 = vector.broadcast %648 : vector<8x1xf32> to vector<8x256xf32>
    %650 = vector.broadcast %cst_154 : f32 to vector<8x256xf32>
    %651 = arith.select %646, %649, %650 : vector<8x256xi1>, vector<8x256xf32>
    %652 = arith.addf %643, %651 : vector<8x256xf32>
    %653 = vector.extract_strided_slice %594 {offsets = [0, 0], sizes = [8, 2], strides = [1, 1]} : vector<16x2xi32> to vector<8x2xi32>
    %c0_i32_155 = arith.constant 0 : i32
    %654 = vector.broadcast %c0_i32_155 : i32 to vector<8x2xi32>
    %655 = arith.subi %653, %654 : vector<8x2xi32>
    %656 = vector.extract_strided_slice %591 {offsets = [0, 0], sizes = [8, 2], strides = [1, 1]} : vector<16x2xf32> to vector<8x2xf32>
    %657 = vector.extract_strided_slice %655 {offsets = [0, 0], sizes = [8, 1], strides = [1, 1]} : vector<8x2xi32> to vector<8x1xi32>
    %658 = vector.broadcast %657 : vector<8x1xi32> to vector<8x256xi32>
    %659 = arith.cmpi eq, %12, %658 : vector<8x256xi32>
    %660 = vector.extract_strided_slice %656 {offsets = [0, 0], sizes = [8, 1], strides = [1, 1]} : vector<8x2xf32> to vector<8x1xf32>
    %cst_156 = arith.constant 0.000000e+00 : f32
    %661 = vector.shape_cast %660 : vector<8x1xf32> to vector<8x1xf32>
    %662 = vector.broadcast %661 : vector<8x1xf32> to vector<8x256xf32>
    %663 = vector.broadcast %cst_156 : f32 to vector<8x256xf32>
    %664 = arith.select %659, %662, %663 : vector<8x256xi1>, vector<8x256xf32>
    %665 = arith.addf %652, %664 : vector<8x256xf32>
    %666 = vector.extract_strided_slice %655 {offsets = [0, 1], sizes = [8, 1], strides = [1, 1]} : vector<8x2xi32> to vector<8x1xi32>
    %667 = vector.broadcast %666 : vector<8x1xi32> to vector<8x256xi32>
    %668 = arith.cmpi eq, %12, %667 : vector<8x256xi32>
    %669 = vector.extract_strided_slice %656 {offsets = [0, 1], sizes = [8, 1], strides = [1, 1]} : vector<8x2xf32> to vector<8x1xf32>
    %cst_157 = arith.constant 0.000000e+00 : f32
    %670 = vector.shape_cast %669 : vector<8x1xf32> to vector<8x1xf32>
    %671 = vector.broadcast %670 : vector<8x1xf32> to vector<8x256xf32>
    %672 = vector.broadcast %cst_157 : f32 to vector<8x256xf32>
    %673 = arith.select %668, %671, %672 : vector<8x256xi1>, vector<8x256xf32>
    %674 = arith.addf %665, %673 : vector<8x256xf32>
    %675 = vector.extract_strided_slice %611 {offsets = [0, 0], sizes = [8, 2], strides = [1, 1]} : vector<16x2xi32> to vector<8x2xi32>
    %c0_i32_158 = arith.constant 0 : i32
    %676 = vector.broadcast %c0_i32_158 : i32 to vector<8x2xi32>
    %677 = arith.subi %675, %676 : vector<8x2xi32>
    %678 = vector.extract_strided_slice %608 {offsets = [0, 0], sizes = [8, 2], strides = [1, 1]} : vector<16x2xf32> to vector<8x2xf32>
    %679 = vector.extract_strided_slice %677 {offsets = [0, 0], sizes = [8, 1], strides = [1, 1]} : vector<8x2xi32> to vector<8x1xi32>
    %680 = vector.broadcast %679 : vector<8x1xi32> to vector<8x256xi32>
    %681 = arith.cmpi eq, %12, %680 : vector<8x256xi32>
    %682 = vector.extract_strided_slice %678 {offsets = [0, 0], sizes = [8, 1], strides = [1, 1]} : vector<8x2xf32> to vector<8x1xf32>
    %cst_159 = arith.constant 0.000000e+00 : f32
    %683 = vector.shape_cast %682 : vector<8x1xf32> to vector<8x1xf32>
    %684 = vector.broadcast %683 : vector<8x1xf32> to vector<8x256xf32>
    %685 = vector.broadcast %cst_159 : f32 to vector<8x256xf32>
    %686 = arith.select %681, %684, %685 : vector<8x256xi1>, vector<8x256xf32>
    %687 = arith.addf %674, %686 : vector<8x256xf32>
    %688 = vector.extract_strided_slice %677 {offsets = [0, 1], sizes = [8, 1], strides = [1, 1]} : vector<8x2xi32> to vector<8x1xi32>
    %689 = vector.broadcast %688 : vector<8x1xi32> to vector<8x256xi32>
    %690 = arith.cmpi eq, %12, %689 : vector<8x256xi32>
    %691 = vector.extract_strided_slice %678 {offsets = [0, 1], sizes = [8, 1], strides = [1, 1]} : vector<8x2xf32> to vector<8x1xf32>
    %cst_160 = arith.constant 0.000000e+00 : f32
    %692 = vector.shape_cast %691 : vector<8x1xf32> to vector<8x1xf32>
    %693 = vector.broadcast %692 : vector<8x1xf32> to vector<8x256xf32>
    %694 = vector.broadcast %cst_160 : f32 to vector<8x256xf32>
    %695 = arith.select %690, %693, %694 : vector<8x256xi1>, vector<8x256xf32>
    %696 = arith.addf %687, %695 : vector<8x256xf32>
    %697 = vector.extract_strided_slice %628 {offsets = [0, 0], sizes = [8, 2], strides = [1, 1]} : vector<16x2xi32> to vector<8x2xi32>
    %c0_i32_161 = arith.constant 0 : i32
    %698 = vector.broadcast %c0_i32_161 : i32 to vector<8x2xi32>
    %699 = arith.subi %697, %698 : vector<8x2xi32>
    %700 = vector.extract_strided_slice %625 {offsets = [0, 0], sizes = [8, 2], strides = [1, 1]} : vector<16x2xf32> to vector<8x2xf32>
    %701 = vector.extract_strided_slice %699 {offsets = [0, 0], sizes = [8, 1], strides = [1, 1]} : vector<8x2xi32> to vector<8x1xi32>
    %702 = vector.broadcast %701 : vector<8x1xi32> to vector<8x256xi32>
    %703 = arith.cmpi eq, %12, %702 : vector<8x256xi32>
    %704 = vector.extract_strided_slice %700 {offsets = [0, 0], sizes = [8, 1], strides = [1, 1]} : vector<8x2xf32> to vector<8x1xf32>
    %cst_162 = arith.constant 0.000000e+00 : f32
    %705 = vector.shape_cast %704 : vector<8x1xf32> to vector<8x1xf32>
    %706 = vector.broadcast %705 : vector<8x1xf32> to vector<8x256xf32>
    %707 = vector.broadcast %cst_162 : f32 to vector<8x256xf32>
    %708 = arith.select %703, %706, %707 : vector<8x256xi1>, vector<8x256xf32>
    %709 = arith.addf %696, %708 : vector<8x256xf32>
    %710 = vector.extract_strided_slice %699 {offsets = [0, 1], sizes = [8, 1], strides = [1, 1]} : vector<8x2xi32> to vector<8x1xi32>
    %711 = vector.broadcast %710 : vector<8x1xi32> to vector<8x256xi32>
    %712 = arith.cmpi eq, %12, %711 : vector<8x256xi32>
    %713 = vector.extract_strided_slice %700 {offsets = [0, 1], sizes = [8, 1], strides = [1, 1]} : vector<8x2xf32> to vector<8x1xf32>
    %cst_163 = arith.constant 0.000000e+00 : f32
    %714 = vector.shape_cast %713 : vector<8x1xf32> to vector<8x1xf32>
    %715 = vector.broadcast %714 : vector<8x1xf32> to vector<8x256xf32>
    %716 = vector.broadcast %cst_163 : f32 to vector<8x256xf32>
    %717 = arith.select %712, %715, %716 : vector<8x256xi1>, vector<8x256xf32>
    %718 = arith.addf %709, %717 : vector<8x256xf32>
    %c0_164 = arith.constant 0 : index
    %c0_165 = arith.constant 0 : index
    %c0_166 = arith.constant 0 : index
    %719 = vector.load %arg2[%c0_164, %c0_165, %c0_166] : memref<2x256x32xbf16, #tpu.memory_space<vmem>>, vector<1x256x32xbf16>
    %720 = vector.shape_cast %719 : vector<1x256x32xbf16> to vector<256x32xbf16>
    %721 = arith.truncf %718 : vector<8x256xf32> to vector<8x256xbf16>
    %cst_167 = arith.constant dense<0.000000e+00> : vector<8x32xf32>
    %722 = tpu.matmul %721, %720, %cst_167 {dimension_numbers = #tpu.dot_dimension_numbers<[1], [0], [0], [1], [0, 0, 1, 1], [], []>} : vector<8x256xbf16>, vector<256x32xbf16>, vector<8x32xf32> -> vector<8x32xf32>
    %723 = arith.addf %629, %722 : vector<8x32xf32>
    %cst_168 = arith.constant 0.000000e+00 : f32
    %724 = vector.broadcast %cst_168 : f32 to vector<8x32xf32>
    %cst_169 = arith.constant 0.000000e+00 : f32
    %725 = vector.broadcast %cst_169 : f32 to vector<8x256xf32>
    %726 = vector.extract_strided_slice %577 {offsets = [8, 0], sizes = [8, 2], strides = [1, 1]} : vector<16x2xi32> to vector<8x2xi32>
    %c0_i32_170 = arith.constant 0 : i32
    %727 = vector.broadcast %c0_i32_170 : i32 to vector<8x2xi32>
    %728 = arith.subi %726, %727 : vector<8x2xi32>
    %729 = vector.extract_strided_slice %574 {offsets = [8, 0], sizes = [8, 2], strides = [1, 1]} : vector<16x2xf32> to vector<8x2xf32>
    %730 = vector.extract_strided_slice %728 {offsets = [0, 0], sizes = [8, 1], strides = [1, 1]} : vector<8x2xi32> to vector<8x1xi32>
    %731 = vector.broadcast %730 : vector<8x1xi32> to vector<8x256xi32>
    %732 = arith.cmpi eq, %12, %731 : vector<8x256xi32>
    %733 = vector.extract_strided_slice %729 {offsets = [0, 0], sizes = [8, 1], strides = [1, 1]} : vector<8x2xf32> to vector<8x1xf32>
    %cst_171 = arith.constant 0.000000e+00 : f32
    %734 = vector.shape_cast %733 : vector<8x1xf32> to vector<8x1xf32>
    %735 = vector.broadcast %734 : vector<8x1xf32> to vector<8x256xf32>
    %736 = vector.broadcast %cst_171 : f32 to vector<8x256xf32>
    %737 = arith.select %732, %735, %736 : vector<8x256xi1>, vector<8x256xf32>
    %738 = arith.addf %725, %737 : vector<8x256xf32>
    %739 = vector.extract_strided_slice %728 {offsets = [0, 1], sizes = [8, 1], strides = [1, 1]} : vector<8x2xi32> to vector<8x1xi32>
    %740 = vector.broadcast %739 : vector<8x1xi32> to vector<8x256xi32>
    %741 = arith.cmpi eq, %12, %740 : vector<8x256xi32>
    %742 = vector.extract_strided_slice %729 {offsets = [0, 1], sizes = [8, 1], strides = [1, 1]} : vector<8x2xf32> to vector<8x1xf32>
    %cst_172 = arith.constant 0.000000e+00 : f32
    %743 = vector.shape_cast %742 : vector<8x1xf32> to vector<8x1xf32>
    %744 = vector.broadcast %743 : vector<8x1xf32> to vector<8x256xf32>
    %745 = vector.broadcast %cst_172 : f32 to vector<8x256xf32>
    %746 = arith.select %741, %744, %745 : vector<8x256xi1>, vector<8x256xf32>
    %747 = arith.addf %738, %746 : vector<8x256xf32>
    %748 = vector.extract_strided_slice %594 {offsets = [8, 0], sizes = [8, 2], strides = [1, 1]} : vector<16x2xi32> to vector<8x2xi32>
    %c0_i32_173 = arith.constant 0 : i32
    %749 = vector.broadcast %c0_i32_173 : i32 to vector<8x2xi32>
    %750 = arith.subi %748, %749 : vector<8x2xi32>
    %751 = vector.extract_strided_slice %591 {offsets = [8, 0], sizes = [8, 2], strides = [1, 1]} : vector<16x2xf32> to vector<8x2xf32>
    %752 = vector.extract_strided_slice %750 {offsets = [0, 0], sizes = [8, 1], strides = [1, 1]} : vector<8x2xi32> to vector<8x1xi32>
    %753 = vector.broadcast %752 : vector<8x1xi32> to vector<8x256xi32>
    %754 = arith.cmpi eq, %12, %753 : vector<8x256xi32>
    %755 = vector.extract_strided_slice %751 {offsets = [0, 0], sizes = [8, 1], strides = [1, 1]} : vector<8x2xf32> to vector<8x1xf32>
    %cst_174 = arith.constant 0.000000e+00 : f32
    %756 = vector.shape_cast %755 : vector<8x1xf32> to vector<8x1xf32>
    %757 = vector.broadcast %756 : vector<8x1xf32> to vector<8x256xf32>
    %758 = vector.broadcast %cst_174 : f32 to vector<8x256xf32>
    %759 = arith.select %754, %757, %758 : vector<8x256xi1>, vector<8x256xf32>
    %760 = arith.addf %747, %759 : vector<8x256xf32>
    %761 = vector.extract_strided_slice %750 {offsets = [0, 1], sizes = [8, 1], strides = [1, 1]} : vector<8x2xi32> to vector<8x1xi32>
    %762 = vector.broadcast %761 : vector<8x1xi32> to vector<8x256xi32>
    %763 = arith.cmpi eq, %12, %762 : vector<8x256xi32>
    %764 = vector.extract_strided_slice %751 {offsets = [0, 1], sizes = [8, 1], strides = [1, 1]} : vector<8x2xf32> to vector<8x1xf32>
    %cst_175 = arith.constant 0.000000e+00 : f32
    %765 = vector.shape_cast %764 : vector<8x1xf32> to vector<8x1xf32>
    %766 = vector.broadcast %765 : vector<8x1xf32> to vector<8x256xf32>
    %767 = vector.broadcast %cst_175 : f32 to vector<8x256xf32>
    %768 = arith.select %763, %766, %767 : vector<8x256xi1>, vector<8x256xf32>
    %769 = arith.addf %760, %768 : vector<8x256xf32>
    %770 = vector.extract_strided_slice %611 {offsets = [8, 0], sizes = [8, 2], strides = [1, 1]} : vector<16x2xi32> to vector<8x2xi32>
    %c0_i32_176 = arith.constant 0 : i32
    %771 = vector.broadcast %c0_i32_176 : i32 to vector<8x2xi32>
    %772 = arith.subi %770, %771 : vector<8x2xi32>
    %773 = vector.extract_strided_slice %608 {offsets = [8, 0], sizes = [8, 2], strides = [1, 1]} : vector<16x2xf32> to vector<8x2xf32>
    %774 = vector.extract_strided_slice %772 {offsets = [0, 0], sizes = [8, 1], strides = [1, 1]} : vector<8x2xi32> to vector<8x1xi32>
    %775 = vector.broadcast %774 : vector<8x1xi32> to vector<8x256xi32>
    %776 = arith.cmpi eq, %12, %775 : vector<8x256xi32>
    %777 = vector.extract_strided_slice %773 {offsets = [0, 0], sizes = [8, 1], strides = [1, 1]} : vector<8x2xf32> to vector<8x1xf32>
    %cst_177 = arith.constant 0.000000e+00 : f32
    %778 = vector.shape_cast %777 : vector<8x1xf32> to vector<8x1xf32>
    %779 = vector.broadcast %778 : vector<8x1xf32> to vector<8x256xf32>
    %780 = vector.broadcast %cst_177 : f32 to vector<8x256xf32>
    %781 = arith.select %776, %779, %780 : vector<8x256xi1>, vector<8x256xf32>
    %782 = arith.addf %769, %781 : vector<8x256xf32>
    %783 = vector.extract_strided_slice %772 {offsets = [0, 1], sizes = [8, 1], strides = [1, 1]} : vector<8x2xi32> to vector<8x1xi32>
    %784 = vector.broadcast %783 : vector<8x1xi32> to vector<8x256xi32>
    %785 = arith.cmpi eq, %12, %784 : vector<8x256xi32>
    %786 = vector.extract_strided_slice %773 {offsets = [0, 1], sizes = [8, 1], strides = [1, 1]} : vector<8x2xf32> to vector<8x1xf32>
    %cst_178 = arith.constant 0.000000e+00 : f32
    %787 = vector.shape_cast %786 : vector<8x1xf32> to vector<8x1xf32>
    %788 = vector.broadcast %787 : vector<8x1xf32> to vector<8x256xf32>
    %789 = vector.broadcast %cst_178 : f32 to vector<8x256xf32>
    %790 = arith.select %785, %788, %789 : vector<8x256xi1>, vector<8x256xf32>
    %791 = arith.addf %782, %790 : vector<8x256xf32>
    %792 = vector.extract_strided_slice %628 {offsets = [8, 0], sizes = [8, 2], strides = [1, 1]} : vector<16x2xi32> to vector<8x2xi32>
    %c0_i32_179 = arith.constant 0 : i32
    %793 = vector.broadcast %c0_i32_179 : i32 to vector<8x2xi32>
    %794 = arith.subi %792, %793 : vector<8x2xi32>
    %795 = vector.extract_strided_slice %625 {offsets = [8, 0], sizes = [8, 2], strides = [1, 1]} : vector<16x2xf32> to vector<8x2xf32>
    %796 = vector.extract_strided_slice %794 {offsets = [0, 0], sizes = [8, 1], strides = [1, 1]} : vector<8x2xi32> to vector<8x1xi32>
    %797 = vector.broadcast %796 : vector<8x1xi32> to vector<8x256xi32>
    %798 = arith.cmpi eq, %12, %797 : vector<8x256xi32>
    %799 = vector.extract_strided_slice %795 {offsets = [0, 0], sizes = [8, 1], strides = [1, 1]} : vector<8x2xf32> to vector<8x1xf32>
    %cst_180 = arith.constant 0.000000e+00 : f32
    %800 = vector.shape_cast %799 : vector<8x1xf32> to vector<8x1xf32>
    %801 = vector.broadcast %800 : vector<8x1xf32> to vector<8x256xf32>
    %802 = vector.broadcast %cst_180 : f32 to vector<8x256xf32>
    %803 = arith.select %798, %801, %802 : vector<8x256xi1>, vector<8x256xf32>
    %804 = arith.addf %791, %803 : vector<8x256xf32>
    %805 = vector.extract_strided_slice %794 {offsets = [0, 1], sizes = [8, 1], strides = [1, 1]} : vector<8x2xi32> to vector<8x1xi32>
    %806 = vector.broadcast %805 : vector<8x1xi32> to vector<8x256xi32>
    %807 = arith.cmpi eq, %12, %806 : vector<8x256xi32>
    %808 = vector.extract_strided_slice %795 {offsets = [0, 1], sizes = [8, 1], strides = [1, 1]} : vector<8x2xf32> to vector<8x1xf32>
    %cst_181 = arith.constant 0.000000e+00 : f32
    %809 = vector.shape_cast %808 : vector<8x1xf32> to vector<8x1xf32>
    %810 = vector.broadcast %809 : vector<8x1xf32> to vector<8x256xf32>
    %811 = vector.broadcast %cst_181 : f32 to vector<8x256xf32>
    %812 = arith.select %807, %810, %811 : vector<8x256xi1>, vector<8x256xf32>
    %813 = arith.addf %804, %812 : vector<8x256xf32>
    %c1_182 = arith.constant 1 : index
    %c0_183 = arith.constant 0 : index
    %c0_184 = arith.constant 0 : index
    %814 = vector.load %arg2[%c1_182, %c0_183, %c0_184] : memref<2x256x32xbf16, #tpu.memory_space<vmem>>, vector<1x256x32xbf16>
    %815 = vector.shape_cast %814 : vector<1x256x32xbf16> to vector<256x32xbf16>
    %816 = arith.truncf %813 : vector<8x256xf32> to vector<8x256xbf16>
    %cst_185 = arith.constant dense<0.000000e+00> : vector<8x32xf32>
    %817 = tpu.matmul %816, %815, %cst_185 {dimension_numbers = #tpu.dot_dimension_numbers<[1], [0], [0], [1], [0, 0, 1, 1], [], []>} : vector<8x256xbf16>, vector<256x32xbf16>, vector<8x32xf32> -> vector<8x32xf32>
    %818 = arith.addf %724, %817 : vector<8x32xf32>
    %819 = tpu.iota {dimensions = array<i32: 1>} : vector<16x2xi32>
    %cst_186 = arith.constant dense<0xFF800000> : vector<16xf32>
    %820 = vector.multi_reduction <maximumf>, %518, %cst_186 [1] : vector<16x2xf32> to vector<16xf32>
    %821 = vector.shape_cast %820 : vector<16xf32> to vector<16x1xf32>
    %822 = vector.broadcast %821 : vector<16x1xf32> to vector<16x2xf32>
    %823 = arith.cmpf oeq, %518, %822 : vector<16x2xf32>
    %c2_i32 = arith.constant 2 : i32
    %824 = vector.broadcast %c2_i32 : i32 to vector<16x2xi32>
    %825 = arith.select %823, %819, %824 : vector<16x2xi1>, vector<16x2xi32>
    %cst_187 = arith.constant dense<2147483647> : vector<16xi32>
    %826 = vector.multi_reduction <minsi>, %825, %cst_187 [1] : vector<16x2xi32> to vector<16xi32>
    %827 = vector.shape_cast %826 : vector<16xi32> to vector<16x1xi32>
    %828 = vector.broadcast %827 : vector<16x1xi32> to vector<16x2xi32>
    %829 = arith.cmpi eq, %819, %828 : vector<16x2xi32>
    %830 = arith.extui %829 : vector<16x2xi1> to vector<16x2xi32>
    %831 = arith.sitofp %830 : vector<16x2xi32> to vector<16x2xf32>
    %832 = arith.mulf %506, %831 : vector<16x2xf32>
    %cst_188 = arith.constant dense<0.000000e+00> : vector<16xf32>
    %833 = vector.multi_reduction <add>, %832, %cst_188 [1] : vector<16x2xf32> to vector<16xf32>
    %834 = vector.shape_cast %833 : vector<16xf32> to vector<16x1xf32>
    %835 = arith.addf %493, %834 : vector<16x1xf32>
    %836 = arith.mulf %507, %831 : vector<16x2xf32>
    %cst_189 = arith.constant dense<0.000000e+00> : vector<16xf32>
    %837 = vector.multi_reduction <add>, %836, %cst_189 [1] : vector<16x2xf32> to vector<16xf32>
    %838 = vector.shape_cast %837 : vector<16xf32> to vector<16x1xf32>
    %839 = arith.addf %497, %838 : vector<16x1xf32>
    %840 = tpu.concatenate %723, %818 in 0 : vector<8x32xf32>, vector<8x32xf32> -> vector<16x32xf32>
    %c2 = arith.constant 2 : index
    %c0_190 = arith.constant 0 : index
    %c0_191 = arith.constant 0 : index
    %841 = vector.load %arg4[%c2, %c0_190, %c0_191] : memref<3x32x128xf32, #tpu.memory_space<vmem>>, vector<1x32x128xf32>
    %842 = vector.shape_cast %841 : vector<1x32x128xf32> to vector<32x128xf32>
    %c2_192 = arith.constant 2 : index
    %c0_193 = arith.constant 0 : index
    %c0_194 = arith.constant 0 : index
    %843 = vector.load %arg5[%c2_192, %c0_193, %c0_194] : memref<3x1x128xf32, #tpu.memory_space<vmem>>, vector<1x1x128xf32>
    %844 = vector.shape_cast %843 : vector<1x1x128xf32> to vector<1x128xf32>
    %cst_195 = arith.constant dense<0.000000e+00> : vector<16x128xf32>
    %845 = tpu.matmul %840, %842, %cst_195 {dimension_numbers = #tpu.dot_dimension_numbers<[1], [0], [0], [1], [0, 0, 1, 1], [], []>} : vector<16x32xf32>, vector<32x128xf32>, vector<16x128xf32> -> vector<16x128xf32>
    %846 = vector.broadcast %844 : vector<1x128xf32> to vector<16x128xf32>
    %847 = arith.addf %845, %846 : vector<16x128xf32>
    %848 = vector.extract_strided_slice %847 {offsets = [0, 0], sizes = [16, 1], strides = [1, 1]} : vector<16x128xf32> to vector<16x1xf32>
    %849 = vector.extract_strided_slice %847 {offsets = [0, 1], sizes = [16, 1], strides = [1, 1]} : vector<16x128xf32> to vector<16x1xf32>
    %850 = vector.extract_strided_slice %847 {offsets = [0, 2], sizes = [16, 1], strides = [1, 1]} : vector<16x128xf32> to vector<16x1xf32>
    %cst_196 = arith.constant dense<0xFF800000> : vector<16xf32>
    %851 = vector.multi_reduction <maximumf>, %850, %cst_196 [1] : vector<16x1xf32> to vector<16xf32>
    %852 = vector.shape_cast %851 : vector<16xf32> to vector<16x1xf32>
    %853 = arith.subf %850, %852 : vector<16x1xf32>
    %854 = math.exp %853 : vector<16x1xf32>
    %cst_197 = arith.constant dense<0.000000e+00> : vector<16xf32>
    %855 = vector.multi_reduction <add>, %854, %cst_197 [1] : vector<16x1xf32> to vector<16xf32>
    %856 = vector.shape_cast %855 : vector<16xf32> to vector<16x1xf32>
    %857 = tpu.reciprocal %856 {approx = true} : vector<16x1xf32> -> vector<16x1xf32>
    %858 = arith.mulf %854, %857 : vector<16x1xf32>
    %859 = arith.addf %835, %848 : vector<16x1xf32>
    %860 = arith.addf %839, %849 : vector<16x1xf32>
    %cst_198 = arith.constant 6.250000e-03 : f32
    %861 = vector.broadcast %cst_198 : f32 to vector<16x1xf32>
    %862 = arith.mulf %859, %861 : vector<16x1xf32>
    %863 = arith.addf %8, %862 : vector<16x1xf32>
    %cst_199 = arith.constant 6.250000e-03 : f32
    %864 = vector.broadcast %cst_199 : f32 to vector<16x1xf32>
    %865 = arith.mulf %860, %864 : vector<16x1xf32>
    %866 = arith.addf %11, %865 : vector<16x1xf32>
    %cst_200 = arith.constant 1.600000e+01 : f32
    %867 = vector.broadcast %cst_200 : f32 to vector<16x1xf32>
    %868 = arith.mulf %863, %867 : vector<16x1xf32>
    %cst_201 = arith.constant 5.000000e-01 : f32
    %869 = vector.broadcast %cst_201 : f32 to vector<16x1xf32>
    %870 = arith.subf %868, %869 : vector<16x1xf32>
    %cst_202 = arith.constant 1.600000e+01 : f32
    %871 = vector.broadcast %cst_202 : f32 to vector<16x1xf32>
    %872 = arith.mulf %866, %871 : vector<16x1xf32>
    %cst_203 = arith.constant 5.000000e-01 : f32
    %873 = vector.broadcast %cst_203 : f32 to vector<16x1xf32>
    %874 = arith.subf %872, %873 : vector<16x1xf32>
    %875 = math.floor %870 : vector<16x1xf32>
    %876 = math.floor %874 : vector<16x1xf32>
    %877 = arith.subf %870, %875 : vector<16x1xf32>
    %878 = arith.subf %874, %876 : vector<16x1xf32>
    %879 = arith.fptosi %875 : vector<16x1xf32> to vector<16x1xi32>
    %880 = arith.fptosi %876 : vector<16x1xf32> to vector<16x1xi32>
    %c1_i32_204 = arith.constant 1 : i32
    %881 = vector.broadcast %c1_i32_204 : i32 to vector<16x1xi32>
    %882 = arith.addi %879, %881 : vector<16x1xi32>
    %c1_i32_205 = arith.constant 1 : i32
    %883 = vector.broadcast %c1_i32_205 : i32 to vector<16x1xi32>
    %884 = arith.addi %880, %883 : vector<16x1xi32>
    %cst_206 = arith.constant 1.000000e+00 : f32
    %885 = vector.broadcast %cst_206 : f32 to vector<16x1xf32>
    %886 = arith.subf %885, %877 : vector<16x1xf32>
    %cst_207 = arith.constant 1.000000e+00 : f32
    %887 = vector.broadcast %cst_207 : f32 to vector<16x1xf32>
    %888 = arith.subf %887, %878 : vector<16x1xf32>
    %889 = arith.mulf %886, %888 : vector<16x1xf32>
    %cst_208 = arith.constant 1.000000e+00 : f32
    %890 = vector.broadcast %cst_208 : f32 to vector<16x1xf32>
    %891 = arith.subf %890, %877 : vector<16x1xf32>
    %892 = arith.mulf %891, %878 : vector<16x1xf32>
    %cst_209 = arith.constant 1.000000e+00 : f32
    %893 = vector.broadcast %cst_209 : f32 to vector<16x1xf32>
    %894 = arith.subf %893, %878 : vector<16x1xf32>
    %895 = arith.mulf %877, %894 : vector<16x1xf32>
    %896 = arith.mulf %877, %878 : vector<16x1xf32>
    %c0_i32_210 = arith.constant 0 : i32
    %897 = vector.broadcast %c0_i32_210 : i32 to vector<16x1xi32>
    %898 = arith.cmpi sge, %879, %897 : vector<16x1xi32>
    %c16_i32_211 = arith.constant 16 : i32
    %899 = vector.broadcast %c16_i32_211 : i32 to vector<16x1xi32>
    %900 = arith.cmpi slt, %879, %899 : vector<16x1xi32>
    %901 = arith.andi %898, %900 : vector<16x1xi1>
    %c0_i32_212 = arith.constant 0 : i32
    %902 = vector.broadcast %c0_i32_212 : i32 to vector<16x1xi32>
    %903 = arith.cmpi sge, %880, %902 : vector<16x1xi32>
    %904 = arith.andi %901, %903 : vector<16x1xi1>
    %c16_i32_213 = arith.constant 16 : i32
    %905 = vector.broadcast %c16_i32_213 : i32 to vector<16x1xi32>
    %906 = arith.cmpi slt, %880, %905 : vector<16x1xi32>
    %907 = arith.andi %904, %906 : vector<16x1xi1>
    %908 = arith.mulf %889, %858 : vector<16x1xf32>
    %cst_214 = arith.constant 0.000000e+00 : f32
    %909 = vector.broadcast %cst_214 : f32 to vector<16x1xf32>
    %910 = arith.select %907, %908, %909 : vector<16x1xi1>, vector<16x1xf32>
    %c16_i32_215 = arith.constant 16 : i32
    %911 = vector.broadcast %c16_i32_215 : i32 to vector<16x1xi32>
    %912 = arith.muli %879, %911 : vector<16x1xi32>
    %913 = arith.addi %912, %880 : vector<16x1xi32>
    %c0_i32_216 = arith.constant 0 : i32
    %914 = vector.broadcast %c0_i32_216 : i32 to vector<16x1xi32>
    %915 = arith.cmpi sge, %879, %914 : vector<16x1xi32>
    %c16_i32_217 = arith.constant 16 : i32
    %916 = vector.broadcast %c16_i32_217 : i32 to vector<16x1xi32>
    %917 = arith.cmpi slt, %879, %916 : vector<16x1xi32>
    %918 = arith.andi %915, %917 : vector<16x1xi1>
    %c0_i32_218 = arith.constant 0 : i32
    %919 = vector.broadcast %c0_i32_218 : i32 to vector<16x1xi32>
    %920 = arith.cmpi sge, %884, %919 : vector<16x1xi32>
    %921 = arith.andi %918, %920 : vector<16x1xi1>
    %c16_i32_219 = arith.constant 16 : i32
    %922 = vector.broadcast %c16_i32_219 : i32 to vector<16x1xi32>
    %923 = arith.cmpi slt, %884, %922 : vector<16x1xi32>
    %924 = arith.andi %921, %923 : vector<16x1xi1>
    %925 = arith.mulf %892, %858 : vector<16x1xf32>
    %cst_220 = arith.constant 0.000000e+00 : f32
    %926 = vector.broadcast %cst_220 : f32 to vector<16x1xf32>
    %927 = arith.select %924, %925, %926 : vector<16x1xi1>, vector<16x1xf32>
    %c16_i32_221 = arith.constant 16 : i32
    %928 = vector.broadcast %c16_i32_221 : i32 to vector<16x1xi32>
    %929 = arith.muli %879, %928 : vector<16x1xi32>
    %930 = arith.addi %929, %884 : vector<16x1xi32>
    %c0_i32_222 = arith.constant 0 : i32
    %931 = vector.broadcast %c0_i32_222 : i32 to vector<16x1xi32>
    %932 = arith.cmpi sge, %882, %931 : vector<16x1xi32>
    %c16_i32_223 = arith.constant 16 : i32
    %933 = vector.broadcast %c16_i32_223 : i32 to vector<16x1xi32>
    %934 = arith.cmpi slt, %882, %933 : vector<16x1xi32>
    %935 = arith.andi %932, %934 : vector<16x1xi1>
    %c0_i32_224 = arith.constant 0 : i32
    %936 = vector.broadcast %c0_i32_224 : i32 to vector<16x1xi32>
    %937 = arith.cmpi sge, %880, %936 : vector<16x1xi32>
    %938 = arith.andi %935, %937 : vector<16x1xi1>
    %c16_i32_225 = arith.constant 16 : i32
    %939 = vector.broadcast %c16_i32_225 : i32 to vector<16x1xi32>
    %940 = arith.cmpi slt, %880, %939 : vector<16x1xi32>
    %941 = arith.andi %938, %940 : vector<16x1xi1>
    %942 = arith.mulf %895, %858 : vector<16x1xf32>
    %cst_226 = arith.constant 0.000000e+00 : f32
    %943 = vector.broadcast %cst_226 : f32 to vector<16x1xf32>
    %944 = arith.select %941, %942, %943 : vector<16x1xi1>, vector<16x1xf32>
    %c16_i32_227 = arith.constant 16 : i32
    %945 = vector.broadcast %c16_i32_227 : i32 to vector<16x1xi32>
    %946 = arith.muli %882, %945 : vector<16x1xi32>
    %947 = arith.addi %946, %880 : vector<16x1xi32>
    %c0_i32_228 = arith.constant 0 : i32
    %948 = vector.broadcast %c0_i32_228 : i32 to vector<16x1xi32>
    %949 = arith.cmpi sge, %882, %948 : vector<16x1xi32>
    %c16_i32_229 = arith.constant 16 : i32
    %950 = vector.broadcast %c16_i32_229 : i32 to vector<16x1xi32>
    %951 = arith.cmpi slt, %882, %950 : vector<16x1xi32>
    %952 = arith.andi %949, %951 : vector<16x1xi1>
    %c0_i32_230 = arith.constant 0 : i32
    %953 = vector.broadcast %c0_i32_230 : i32 to vector<16x1xi32>
    %954 = arith.cmpi sge, %884, %953 : vector<16x1xi32>
    %955 = arith.andi %952, %954 : vector<16x1xi1>
    %c16_i32_231 = arith.constant 16 : i32
    %956 = vector.broadcast %c16_i32_231 : i32 to vector<16x1xi32>
    %957 = arith.cmpi slt, %884, %956 : vector<16x1xi32>
    %958 = arith.andi %955, %957 : vector<16x1xi1>
    %959 = arith.mulf %896, %858 : vector<16x1xf32>
    %cst_232 = arith.constant 0.000000e+00 : f32
    %960 = vector.broadcast %cst_232 : f32 to vector<16x1xf32>
    %961 = arith.select %958, %959, %960 : vector<16x1xi1>, vector<16x1xf32>
    %c16_i32_233 = arith.constant 16 : i32
    %962 = vector.broadcast %c16_i32_233 : i32 to vector<16x1xi32>
    %963 = arith.muli %882, %962 : vector<16x1xi32>
    %964 = arith.addi %963, %884 : vector<16x1xi32>
    %cst_234 = arith.constant 0.000000e+00 : f32
    %965 = vector.broadcast %cst_234 : f32 to vector<8x32xf32>
    %cst_235 = arith.constant 0.000000e+00 : f32
    %966 = vector.broadcast %cst_235 : f32 to vector<8x256xf32>
    %967 = vector.extract_strided_slice %913 {offsets = [0, 0], sizes = [8, 1], strides = [1, 1]} : vector<16x1xi32> to vector<8x1xi32>
    %c0_i32_236 = arith.constant 0 : i32
    %968 = vector.broadcast %c0_i32_236 : i32 to vector<8x1xi32>
    %969 = arith.subi %967, %968 : vector<8x1xi32>
    %970 = vector.extract_strided_slice %910 {offsets = [0, 0], sizes = [8, 1], strides = [1, 1]} : vector<16x1xf32> to vector<8x1xf32>
    %971 = vector.broadcast %969 : vector<8x1xi32> to vector<8x256xi32>
    %972 = arith.cmpi eq, %12, %971 : vector<8x256xi32>
    %cst_237 = arith.constant 0.000000e+00 : f32
    %973 = vector.shape_cast %970 : vector<8x1xf32> to vector<8x1xf32>
    %974 = vector.broadcast %973 : vector<8x1xf32> to vector<8x256xf32>
    %975 = vector.broadcast %cst_237 : f32 to vector<8x256xf32>
    %976 = arith.select %972, %974, %975 : vector<8x256xi1>, vector<8x256xf32>
    %977 = arith.addf %966, %976 : vector<8x256xf32>
    %978 = vector.extract_strided_slice %930 {offsets = [0, 0], sizes = [8, 1], strides = [1, 1]} : vector<16x1xi32> to vector<8x1xi32>
    %c0_i32_238 = arith.constant 0 : i32
    %979 = vector.broadcast %c0_i32_238 : i32 to vector<8x1xi32>
    %980 = arith.subi %978, %979 : vector<8x1xi32>
    %981 = vector.extract_strided_slice %927 {offsets = [0, 0], sizes = [8, 1], strides = [1, 1]} : vector<16x1xf32> to vector<8x1xf32>
    %982 = vector.broadcast %980 : vector<8x1xi32> to vector<8x256xi32>
    %983 = arith.cmpi eq, %12, %982 : vector<8x256xi32>
    %cst_239 = arith.constant 0.000000e+00 : f32
    %984 = vector.shape_cast %981 : vector<8x1xf32> to vector<8x1xf32>
    %985 = vector.broadcast %984 : vector<8x1xf32> to vector<8x256xf32>
    %986 = vector.broadcast %cst_239 : f32 to vector<8x256xf32>
    %987 = arith.select %983, %985, %986 : vector<8x256xi1>, vector<8x256xf32>
    %988 = arith.addf %977, %987 : vector<8x256xf32>
    %989 = vector.extract_strided_slice %947 {offsets = [0, 0], sizes = [8, 1], strides = [1, 1]} : vector<16x1xi32> to vector<8x1xi32>
    %c0_i32_240 = arith.constant 0 : i32
    %990 = vector.broadcast %c0_i32_240 : i32 to vector<8x1xi32>
    %991 = arith.subi %989, %990 : vector<8x1xi32>
    %992 = vector.extract_strided_slice %944 {offsets = [0, 0], sizes = [8, 1], strides = [1, 1]} : vector<16x1xf32> to vector<8x1xf32>
    %993 = vector.broadcast %991 : vector<8x1xi32> to vector<8x256xi32>
    %994 = arith.cmpi eq, %12, %993 : vector<8x256xi32>
    %cst_241 = arith.constant 0.000000e+00 : f32
    %995 = vector.shape_cast %992 : vector<8x1xf32> to vector<8x1xf32>
    %996 = vector.broadcast %995 : vector<8x1xf32> to vector<8x256xf32>
    %997 = vector.broadcast %cst_241 : f32 to vector<8x256xf32>
    %998 = arith.select %994, %996, %997 : vector<8x256xi1>, vector<8x256xf32>
    %999 = arith.addf %988, %998 : vector<8x256xf32>
    %1000 = vector.extract_strided_slice %964 {offsets = [0, 0], sizes = [8, 1], strides = [1, 1]} : vector<16x1xi32> to vector<8x1xi32>
    %c0_i32_242 = arith.constant 0 : i32
    %1001 = vector.broadcast %c0_i32_242 : i32 to vector<8x1xi32>
    %1002 = arith.subi %1000, %1001 : vector<8x1xi32>
    %1003 = vector.extract_strided_slice %961 {offsets = [0, 0], sizes = [8, 1], strides = [1, 1]} : vector<16x1xf32> to vector<8x1xf32>
    %1004 = vector.broadcast %1002 : vector<8x1xi32> to vector<8x256xi32>
    %1005 = arith.cmpi eq, %12, %1004 : vector<8x256xi32>
    %cst_243 = arith.constant 0.000000e+00 : f32
    %1006 = vector.shape_cast %1003 : vector<8x1xf32> to vector<8x1xf32>
    %1007 = vector.broadcast %1006 : vector<8x1xf32> to vector<8x256xf32>
    %1008 = vector.broadcast %cst_243 : f32 to vector<8x256xf32>
    %1009 = arith.select %1005, %1007, %1008 : vector<8x256xi1>, vector<8x256xf32>
    %1010 = arith.addf %999, %1009 : vector<8x256xf32>
    %c0_244 = arith.constant 0 : index
    %c0_245 = arith.constant 0 : index
    %c0_246 = arith.constant 0 : index
    %1011 = vector.load %arg2[%c0_244, %c0_245, %c0_246] : memref<2x256x32xbf16, #tpu.memory_space<vmem>>, vector<1x256x32xbf16>
    %1012 = vector.shape_cast %1011 : vector<1x256x32xbf16> to vector<256x32xbf16>
    %1013 = arith.truncf %1010 : vector<8x256xf32> to vector<8x256xbf16>
    %cst_247 = arith.constant dense<0.000000e+00> : vector<8x32xf32>
    %1014 = tpu.matmul %1013, %1012, %cst_247 {dimension_numbers = #tpu.dot_dimension_numbers<[1], [0], [0], [1], [0, 0, 1, 1], [], []>} : vector<8x256xbf16>, vector<256x32xbf16>, vector<8x32xf32> -> vector<8x32xf32>
    %1015 = arith.addf %965, %1014 : vector<8x32xf32>
    %cst_248 = arith.constant 0.000000e+00 : f32
    %1016 = vector.broadcast %cst_248 : f32 to vector<8x32xf32>
    %cst_249 = arith.constant 0.000000e+00 : f32
    %1017 = vector.broadcast %cst_249 : f32 to vector<8x256xf32>
    %1018 = vector.extract_strided_slice %913 {offsets = [8, 0], sizes = [8, 1], strides = [1, 1]} : vector<16x1xi32> to vector<8x1xi32>
    %c0_i32_250 = arith.constant 0 : i32
    %1019 = vector.broadcast %c0_i32_250 : i32 to vector<8x1xi32>
    %1020 = arith.subi %1018, %1019 : vector<8x1xi32>
    %1021 = vector.extract_strided_slice %910 {offsets = [8, 0], sizes = [8, 1], strides = [1, 1]} : vector<16x1xf32> to vector<8x1xf32>
    %1022 = vector.broadcast %1020 : vector<8x1xi32> to vector<8x256xi32>
    %1023 = arith.cmpi eq, %12, %1022 : vector<8x256xi32>
    %cst_251 = arith.constant 0.000000e+00 : f32
    %1024 = vector.shape_cast %1021 : vector<8x1xf32> to vector<8x1xf32>
    %1025 = vector.broadcast %1024 : vector<8x1xf32> to vector<8x256xf32>
    %1026 = vector.broadcast %cst_251 : f32 to vector<8x256xf32>
    %1027 = arith.select %1023, %1025, %1026 : vector<8x256xi1>, vector<8x256xf32>
    %1028 = arith.addf %1017, %1027 : vector<8x256xf32>
    %1029 = vector.extract_strided_slice %930 {offsets = [8, 0], sizes = [8, 1], strides = [1, 1]} : vector<16x1xi32> to vector<8x1xi32>
    %c0_i32_252 = arith.constant 0 : i32
    %1030 = vector.broadcast %c0_i32_252 : i32 to vector<8x1xi32>
    %1031 = arith.subi %1029, %1030 : vector<8x1xi32>
    %1032 = vector.extract_strided_slice %927 {offsets = [8, 0], sizes = [8, 1], strides = [1, 1]} : vector<16x1xf32> to vector<8x1xf32>
    %1033 = vector.broadcast %1031 : vector<8x1xi32> to vector<8x256xi32>
    %1034 = arith.cmpi eq, %12, %1033 : vector<8x256xi32>
    %cst_253 = arith.constant 0.000000e+00 : f32
    %1035 = vector.shape_cast %1032 : vector<8x1xf32> to vector<8x1xf32>
    %1036 = vector.broadcast %1035 : vector<8x1xf32> to vector<8x256xf32>
    %1037 = vector.broadcast %cst_253 : f32 to vector<8x256xf32>
    %1038 = arith.select %1034, %1036, %1037 : vector<8x256xi1>, vector<8x256xf32>
    %1039 = arith.addf %1028, %1038 : vector<8x256xf32>
    %1040 = vector.extract_strided_slice %947 {offsets = [8, 0], sizes = [8, 1], strides = [1, 1]} : vector<16x1xi32> to vector<8x1xi32>
    %c0_i32_254 = arith.constant 0 : i32
    %1041 = vector.broadcast %c0_i32_254 : i32 to vector<8x1xi32>
    %1042 = arith.subi %1040, %1041 : vector<8x1xi32>
    %1043 = vector.extract_strided_slice %944 {offsets = [8, 0], sizes = [8, 1], strides = [1, 1]} : vector<16x1xf32> to vector<8x1xf32>
    %1044 = vector.broadcast %1042 : vector<8x1xi32> to vector<8x256xi32>
    %1045 = arith.cmpi eq, %12, %1044 : vector<8x256xi32>
    %cst_255 = arith.constant 0.000000e+00 : f32
    %1046 = vector.shape_cast %1043 : vector<8x1xf32> to vector<8x1xf32>
    %1047 = vector.broadcast %1046 : vector<8x1xf32> to vector<8x256xf32>
    %1048 = vector.broadcast %cst_255 : f32 to vector<8x256xf32>
    %1049 = arith.select %1045, %1047, %1048 : vector<8x256xi1>, vector<8x256xf32>
    %1050 = arith.addf %1039, %1049 : vector<8x256xf32>
    %1051 = vector.extract_strided_slice %964 {offsets = [8, 0], sizes = [8, 1], strides = [1, 1]} : vector<16x1xi32> to vector<8x1xi32>
    %c0_i32_256 = arith.constant 0 : i32
    %1052 = vector.broadcast %c0_i32_256 : i32 to vector<8x1xi32>
    %1053 = arith.subi %1051, %1052 : vector<8x1xi32>
    %1054 = vector.extract_strided_slice %961 {offsets = [8, 0], sizes = [8, 1], strides = [1, 1]} : vector<16x1xf32> to vector<8x1xf32>
    %1055 = vector.broadcast %1053 : vector<8x1xi32> to vector<8x256xi32>
    %1056 = arith.cmpi eq, %12, %1055 : vector<8x256xi32>
    %cst_257 = arith.constant 0.000000e+00 : f32
    %1057 = vector.shape_cast %1054 : vector<8x1xf32> to vector<8x1xf32>
    %1058 = vector.broadcast %1057 : vector<8x1xf32> to vector<8x256xf32>
    %1059 = vector.broadcast %cst_257 : f32 to vector<8x256xf32>
    %1060 = arith.select %1056, %1058, %1059 : vector<8x256xi1>, vector<8x256xf32>
    %1061 = arith.addf %1050, %1060 : vector<8x256xf32>
    %c1_258 = arith.constant 1 : index
    %c0_259 = arith.constant 0 : index
    %c0_260 = arith.constant 0 : index
    %1062 = vector.load %arg2[%c1_258, %c0_259, %c0_260] : memref<2x256x32xbf16, #tpu.memory_space<vmem>>, vector<1x256x32xbf16>
    %1063 = vector.shape_cast %1062 : vector<1x256x32xbf16> to vector<256x32xbf16>
    %1064 = arith.truncf %1061 : vector<8x256xf32> to vector<8x256xbf16>
    %cst_261 = arith.constant dense<0.000000e+00> : vector<8x32xf32>
    %1065 = tpu.matmul %1064, %1063, %cst_261 {dimension_numbers = #tpu.dot_dimension_numbers<[1], [0], [0], [1], [0, 0, 1, 1], [], []>} : vector<8x256xbf16>, vector<256x32xbf16>, vector<8x32xf32> -> vector<8x32xf32>
    %1066 = arith.addf %1016, %1065 : vector<8x32xf32>
    %1067 = tpu.iota {dimensions = array<i32: 1>} : vector<16x1xi32>
    %cst_262 = arith.constant dense<0xFF800000> : vector<16xf32>
    %1068 = vector.multi_reduction <maximumf>, %858, %cst_262 [1] : vector<16x1xf32> to vector<16xf32>
    %1069 = vector.shape_cast %1068 : vector<16xf32> to vector<16x1xf32>
    %1070 = arith.cmpf oeq, %858, %1069 : vector<16x1xf32>
    %c1_i32_263 = arith.constant 1 : i32
    %1071 = vector.broadcast %c1_i32_263 : i32 to vector<16x1xi32>
    %1072 = arith.select %1070, %1067, %1071 : vector<16x1xi1>, vector<16x1xi32>
    %cst_264 = arith.constant dense<2147483647> : vector<16xi32>
    %1073 = vector.multi_reduction <minsi>, %1072, %cst_264 [1] : vector<16x1xi32> to vector<16xi32>
    %1074 = vector.shape_cast %1073 : vector<16xi32> to vector<16x1xi32>
    %1075 = arith.cmpi eq, %1067, %1074 : vector<16x1xi32>
    %1076 = arith.extui %1075 : vector<16x1xi1> to vector<16x1xi32>
    %1077 = arith.sitofp %1076 : vector<16x1xi32> to vector<16x1xf32>
    %1078 = arith.mulf %848, %1077 : vector<16x1xf32>
    %cst_265 = arith.constant dense<0.000000e+00> : vector<16xf32>
    %1079 = vector.multi_reduction <add>, %1078, %cst_265 [1] : vector<16x1xf32> to vector<16xf32>
    %1080 = vector.shape_cast %1079 : vector<16xf32> to vector<16x1xf32>
    %1081 = arith.addf %835, %1080 : vector<16x1xf32>
    %1082 = arith.mulf %849, %1077 : vector<16x1xf32>
    %cst_266 = arith.constant dense<0.000000e+00> : vector<16xf32>
    %1083 = vector.multi_reduction <add>, %1082, %cst_266 [1] : vector<16x1xf32> to vector<16xf32>
    %1084 = vector.shape_cast %1083 : vector<16xf32> to vector<16x1xf32>
    %1085 = arith.addf %839, %1084 : vector<16x1xf32>
    %1086 = tpu.concatenate %1015, %1066 in 0 : vector<8x32xf32>, vector<8x32xf32> -> vector<16x32xf32>
    %1087 = tpu.iota {dimensions = array<i32: 1>} : vector<16x128xi32>
    %1088 = tpu.iota {dimensions = array<i32: 0>} : vector<32x128xi32>
    %1089 = tpu.iota {dimensions = array<i32: 1>} : vector<32x128xi32>
    %1090 = arith.cmpi eq, %1088, %1089 : vector<32x128xi32>
    %1091 = arith.extui %1090 : vector<32x128xi1> to vector<32x128xi32>
    %1092 = arith.sitofp %1091 : vector<32x128xi32> to vector<32x128xf32>
    %cst_267 = arith.constant dense<0.000000e+00> : vector<16x128xf32>
    %1093 = tpu.matmul %1086, %1092, %cst_267 {dimension_numbers = #tpu.dot_dimension_numbers<[1], [0], [0], [1], [0, 0, 1, 1], [], []>} : vector<16x32xf32>, vector<32x128xf32>, vector<16x128xf32> -> vector<16x128xf32>
    %c32_i32 = arith.constant 32 : i32
    %1094 = vector.broadcast %c32_i32 : i32 to vector<16x128xi32>
    %1095 = arith.cmpi eq, %1087, %1094 : vector<16x128xi32>
    %1096 = vector.shape_cast %1081 : vector<16x1xf32> to vector<16x1xf32>
    %1097 = vector.broadcast %1096 : vector<16x1xf32> to vector<16x128xf32>
    %1098 = arith.select %1095, %1097, %1093 : vector<16x128xi1>, vector<16x128xf32>
    %c33_i32 = arith.constant 33 : i32
    %1099 = vector.broadcast %c33_i32 : i32 to vector<16x128xi32>
    %1100 = arith.cmpi eq, %1087, %1099 : vector<16x128xi32>
    %1101 = vector.shape_cast %1085 : vector<16x1xf32> to vector<16x1xf32>
    %1102 = vector.broadcast %1101 : vector<16x1xf32> to vector<16x128xf32>
    %1103 = arith.select %1100, %1102, %1098 : vector<16x128xi1>, vector<16x128xf32>
    %1104 = vector.shape_cast %1103 : vector<16x128xf32> to vector<2x8x128xf32>
    %c0_268 = arith.constant 0 : index
    %c0_269 = arith.constant 0 : index
    %c0_270 = arith.constant 0 : index
    %1105 = vector.load %arg6[%c0_268, %c0_269, %c0_270] : memref<2x8x128xf32, #tpu.memory_space<vmem>>, vector<2x8x128xf32>
    tpu.vector_store %arg6[%c0_268, %c0_269, %c0_270], %1104 {strides = array<i32>} : memref<2x8x128xf32, #tpu.memory_space<vmem>>, vector<2x8x128xf32>,
    return
  }
  func.func @transform_0(%arg0: i32) -> (i32, i32, i32) {
    %c0_i32 = arith.constant 0 : i32
    %c0_i32_0 = arith.constant 0 : i32
    %c0_i32_1 = arith.constant 0 : i32
    return %arg0, %c0_i32, %c0_i32_0 : i32, i32, i32
  }
  func.func @transform_1(%arg0: i32) -> (i32, i32, i32) {
    %c0_i32 = arith.constant 0 : i32
    %c0_i32_0 = arith.constant 0 : i32
    %c0_i32_1 = arith.constant 0 : i32
    return %arg0, %c0_i32, %c0_i32_0 : i32, i32, i32
  }
  func.func @transform_2(%arg0: i32) -> (i32, i32, i32) {
    %c0_i32 = arith.constant 0 : i32
    %c0_i32_0 = arith.constant 0 : i32
    %c0_i32_1 = arith.constant 0 : i32
    return %arg0, %c0_i32, %c0_i32_0 : i32, i32, i32
  }
  func.func @transform_3(%arg0: i32) -> (i32, i32, i32) {
    %c0_i32 = arith.constant 0 : i32
    %c0_i32_0 = arith.constant 0 : i32
    %c0_i32_1 = arith.constant 0 : i32
    %c0_i32_2 = arith.constant 0 : i32
    return %c0_i32, %c0_i32_0, %c0_i32_1 : i32, i32, i32
  }
  func.func @transform_4(%arg0: i32) -> (i32, i32, i32) {
    %c0_i32 = arith.constant 0 : i32
    %c0_i32_0 = arith.constant 0 : i32
    %c0_i32_1 = arith.constant 0 : i32
    %c0_i32_2 = arith.constant 0 : i32
    return %c0_i32, %c0_i32_0, %c0_i32_1 : i32, i32, i32
  }
  func.func @transform_5(%arg0: i32) -> (i32, i32, i32) {
    %c0_i32 = arith.constant 0 : i32
    %c0_i32_0 = arith.constant 0 : i32
    %c0_i32_1 = arith.constant 0 : i32
    return %arg0, %c0_i32, %c0_i32_0 : i32, i32, i32
  }
}

</mosaic_0001>

<bundles_post_ra>
// kernel: tpu_custom_call.1
= control target key start
LH: loop header
LB: loop body
LE: loop exit
PB: predicated region body
PF: predicated region fallthrough
CT: control target
= control target key end

     0   :  { %10 = vsyncpa [#allocation3], 0  ;;  %s4495_s0 = inlined_call_operand.vmem [shape: f32[4,8,32], index: 0, kind: input, shape index: {}]   ;;  %s4496_s1 = inlined_call_operand.vmem [shape: bf16[4,256,32], index: 1, kind: input, shape index: {}]   ;;  %s4497_s2 = inlined_call_operand.vmem [shape: f32[4,8,2], index: 2, kind: input, shape index: {}]   ;;  %s4498_s3 = inlined_call_operand.vmem [shape: f32[3,32,128], index: 3, kind: input, shape index: {}]   ;;  %s4499_s4 = inlined_call_operand.vmem [shape: f32[3,1,128], index: 4, kind: input, shape index: {}]   ;;  %s4500_s5 = inlined_call_operand.hbm [shape: f32[4,8,128], index: 5, kind: output, shape index: {}]  }
   0x1   :  { %12 = vsyncpa [#allocation3 + $0x1], 0  ;;  %s3147_s18 = smov 0   ;;  %s3149_s19 = smov 0  }
   0x2   :  { %s3151_s20 = smov 0   ;;  %s3153_s21 = smov 0  }
   0x3 LB: > { %s3168_s22 = sadd.s32 4294967295, %s3100_s21   ;;  %s2573_s23 = sadd.s32 4294967294, %s3100_s21   ;;  %s3100_s21 = sphi %s3153_s21, %s4615_s21   ;;  %s3096_s20 = sphi %s3151_s20, %s4614_s20   ;;  %s3092_s19 = sphi %s3149_s19, %s4613_s19   ;;  %s3088_s18 = sphi %s3147_s18, %s4612_s18  }
   0x4   : > { %s3172_s24 = sadd.s32 1, %s3100_s21   ;;  %s145_s25 = sadd.s32 1, %s3096_s20 }
   0x5   : > { %s142_s26 = ssub.s32 %s3100_s21, %s3172_s24  ;;  %p155_p0 = scmp.ne.s32.totalorder %s3096_s20, %s3092_s19 }
   0x6   : > { %p143_p1 = scmp.eq.s32.totalorder %s142_s26, 0  ;;  %p156_p2 = scmp.eq.s32.totalorder %s3168_s22, 1 }
   0x7   : > { %p161_p3 = scmp.ne.s32.totalorder %s3092_s19, %s3088_s18  ;;  %p162_p4 = scmp.eq.s32.totalorder %s2573_s23, 1 }
   0x8   : > { %s3183_s27 = scalar_select %p143_p1, %s3096_s20, %s145_s25  }
   0x9   : > { %p3185_p5 = por %p156_p2, %p155_p0  ;;  %p3189_p6 = por %p162_p4, %p161_p3 }
   0xa   : > { %p2576_p7 = scmp.ge.s32.totalorder %s3100_s21, 1  ;;  %p214_p8 = scmp.lt.s32.totalorder %s3100_s21, 3 }
   0xc   : > { %p215_p9 = pnand %p2576_p7, %p214_p8 }
   0xe   : > { %218 = sbr.rel (%p215_p9) target bundleno = 3227 (0xc9b), region = 40 }
  0x13   : > { %v285_v0 = vld [vmem:[%s4498_s3 + $0x18] sm:$0xff]  ;;  %v284_v1 = vld [vmem:[%s4498_s3 + $0x10] sm:$0xff]  ;;  %s2578_s9 = sshll.u32 %s3168_s22, 1  ;;  %v4507_v2 = vmov 1   ;;  %v283_v3 = vld [vmem:[%s4498_s3 + $0x8] sm:$0xff]  ;;  %vm4530_vm0 = vcmask 261120  }
  0x14   : > { %309 = vmatpush.msra.mxu0 %v285_v0  ;;  %p254_p10 = scmp.lt.s32.totalorder %s2578_s9, 3  ;;  %2906 = vset.pattern.permute.xlu2 %v4507_v2  ;;  %v282_v4 = vld [vmem:[%s4498_s3] sm:$0xff]  ;;  %v4503_v11 = vmov 0   ;;  %vm320_vm1 = vcmask 97344   ;;  %s3104_s7 = smov 124   ;;  %v4505_v63 = vmov 2  }
  0x15   : > { %2907 = vset.pattern.permute.xlu0 %v4507_v2  ;;  %2914 = vset.pattern.permute.xlu1 %v4507_v2  ;;  %v3003_v13 = vld [vmem:[%s4499_s4] ss:$0 sm:$0xff]  ;;  %s3107_s8 = smov 120   ;;  %vm341_vm10 = vcmask 31744   ;;  %s3111_s11 = smov 126  }
  0x16   : > { %310 = vmatpush.msra.mxu0 %v284_v1  ;;  %s4617_s9 = smov (!%p254_p10, %s2578_s9), 3  ;;  %s3113_s6 = smov 127  }
  0x17   : > { %s2579_s14 = sshll.u32 %s4617_s9, 3  ;;  %s2794_s10 = sshll.u32 %s4617_s9, 7 }
  0x18   : > { %311 = vmatpush.msra.mxu0 %v283_v3  ;;  %s257_s17 = scalar_lea.vmem %s4495_s0, %s2579_s14  ;;  %s270_s26 = scalar_lea.vmem %s4497_s2, %s2579_s14 }
  0x19   : > { %v273_v5 = vld [vmem:[%s257_s17] sm:$0xff]  ;;  %v276_v7 = vld [vmem:[%s270_s26 + $0x8] sm:$0xff]  ;;  %s3527_s13 = scalar_lea.vmem %s4496_s1, %s2794_s10  ;;  %s3108_s9 = smov 8  }
  0x1a   : > { %312 = vmatpush.msra.mxu0 %v282_v4  ;;  %v275_v6 = vld [vmem:[%s270_s26] sm:$0xff]  ;;  %v3223_v9 = vmul.f32 0.0625, %v276_v7  ;;  %v274_v10 = vld [vmem:[%s257_s17 + $0x8] sm:$0xff]  ;;  %v4501_v4 = vmov 3   ;;  %s3110_s10 = smov 4   ;;  %s2827_s12 = sshll.u32 %s3168_s22, 4 }
  0x1b   : > { %2585 = vmatmul.msk.f32.vlgmr.msra.gmra.mxu0 %vm4530_vm0, %v273_v5  ;;  %v3221_v8 = vmul.f32 0.0625, %v275_v6  ;;  %s2483_s16 = scalar_lea.hbm %s4500_s5, %s2827_s12 }
  0x1c   : > { %4535 = vst [vmem:[#allocation6_spill] sm:$0xff] %v3223_v9  ;;  %373 = vperm.xlu0 %2907, %v3223_v9   ;;  %s2486_s23 = sshll.u32 %s2483_s16, 4  ;;  %s2487_s23 = int_to_ptr.hbm [resolvable:$true] %s2486_s23 }
  0x1d   : > { %4534 = vst [vmem:[#allocation5_spill] sm:$0xff] %v3221_v8  ;;  %369 = vperm.xlu2 %2906, %v3221_v8  }
  0x23   : > { %2586 = vmatmul.msk.f32.gmra.mxu0 %vm4530_vm0, %v274_v10 }
  0x24   : > { %2909 = vset.pattern.permute.xlu0 %v4503_v11 }
  0x25   : > { %2908 = vset.pattern.permute.xlu2 %v4503_v11  ;;  %363 = vperm.xlu0 %2909, %v3223_v9  }
  0x26   : > { %358 = vperm.xlu2 %2908, %v3221_v8  }
  0x2e   : > { %2910 = vset.pattern.permute.xlu2 %v4507_v2 }
  0x77   : > { %v3233_v12 = vpop.permute.xlu2 %369 }
  0x78   : > { %4536 = vst [vmem:[#allocation7_spill] sm:$0xff] %v3233_v12 }
  0x80   : > { %v3240_v16 = vpop.permute.xlu2 %358 }
  0x81   : > { %4538 = vst [vmem:[#allocation9_spill] sm:$0xff] %v3240_v16 }
  0x8e   : > { %v3256_v34 = vpop.permute.xlu0 %373 }
  0x8f   : > { %4540 = vst [vmem:[#allocation11_spill] sm:$0xff] %v3256_v34 }
  0x97   : > { %v3263_v40 = vpop.permute.xlu0 %363 }
  0x98   : > { %v314_v14 = vpop.f32.mrf.mxu0  ;;  %4541 = vst [vmem:[#allocation12_spill] sm:$0xff] %v3263_v40 }
  0x99   : > { %v3238_v15 = vadd.f32 %v3003_v13, %v314_v14 }
  0x9b   : > { %4537 = vst [vmem:[#allocation8_spill] sm:$0xff] %v3238_v15  ;;  %v354_v17 = vmul.f32 0.00625, %v3238_v15  ;;  %v321_v18 = vsel %vm320_vm1, %v3238_v15, -inf }
  0x9c   : > { %322 = vmax.xlane.f32.xlu0 %v321_v18 }
  0x9d   : > { %v366_v19 = vadd.f32 %v3240_v16, %v354_v17  ;;  %v376_v20 = vadd.f32 %v3233_v12, %v354_v17 }
  0x9f   : > { %v378_v21 = vmul.f32 16.0, %v366_v19  ;;  %v382_v22 = vmul.f32 16.0, %v376_v20 }
  0xa0   : > { %v317_v23 = vpop.f32.mrf.mxu0 }
  0xa1   : > { %v2587_v24 = vadd.f32 -0.5, %v378_v21  ;;  %v2589_v25 = vadd.f32 -0.5, %v382_v22  ;;  %v3247_v26 = vadd.f32 %v3003_v13, %v317_v23 }
  0xa3   : > { %4539 = vst [vmem:[#allocation10_spill] sm:$0xff] %v3247_v26  ;;  %v386_v27 = vfloor.f32 %v2587_v24  ;;  %v324_v28 = vsel %vm320_vm1, %v3247_v26, -inf  ;;  %v388_v29 = vfloor.f32 %v2589_v25  ;;  %v355_v33 = vmul.f32 0.00625, %v3247_v26 }
  0xa4   : > { %325 = vmax.xlane.f32.xlu0 %v324_v28 }
  0xa5   : > { %v3251_v30 = vsub.f32 %v2587_v24, %v386_v27  ;;  %v2833_v31 = vcvt.f32.s32 %v388_v29  ;;  %v392_v32 = vsub.f32 %v2589_v25, %v388_v29  ;;  %v377_v35 = vadd.f32 %v3256_v34, %v355_v33 }
  0xa6   : > { %v367_v41 = vadd.f32 %v3263_v40, %v355_v33  ;;  %v3290_v59 = vcvt.f32.s32 %v386_v27 }
  0xa7   : > { %474 = vrot.lane.b32.xlu2 %v2833_v31, %s3104_s7  ;;  %418 = vrot.lane.b32.xlu1 %v392_v32, %s3104_s7  ;;  %vm448_vm2 = vcmp.lt.s32.totalorder %v2833_v31, 16  ;;  %vm436_vm3 = vcmp.ge.s32.totalorder %v2833_v31, 0  ;;  %v383_v38 = vmul.f32 16.0, %v377_v35  ;;  %v400_v39 = vadd.s32 1, %v2833_v31 }
  0xa8   : > { %v450_v36 = vsel %vm448_vm2, 1, %v4503_v11  ;;  %v438_v37 = vsel %vm436_vm3, 1, %v4503_v11  ;;  %v379_v43 = vmul.f32 16.0, %v367_v41  ;;  %v404_v45 = vsub.f32 1.0, %v392_v32 }
  0xa9   : > { %v2590_v42 = vadd.f32 -0.5, %v383_v38  ;;  %vm492_vm4 = vcmp.lt.s32.totalorder %v400_v39, 16  ;;  %vm480_vm5 = vcmp.ge.s32.totalorder %v400_v39, 0  ;;  %v472_v60 = vmul.u32 16, %v3290_v59 }
  0xaa   : > { %v3266_v44 = vadd.f32 -0.5, %v379_v43  ;;  %v494_v46 = vsel %vm492_vm4, 1, %v4503_v11  ;;  %v482_v52 = vsel %vm480_vm5, 1, %v4503_v11  ;;  %v3297_v5 = vadd.s32 1, %v3290_v59 }
  0xab   : > { %v389_v47 = vfloor.f32 %v2590_v42  ;;  %vm430_vm11 = vcmp.ge.s32.totalorder %v3290_v59, 0  ;;  %vm432_vm12 = vcmp.lt.s32.totalorder %v3290_v59, 16  ;;  %v402_v59 = vsub.f32 1.0, %v3251_v30 }
  0xac   : > { %v387_v48 = vfloor.f32 %v3266_v44  ;;  %v528_v10 = vmul.u32 16, %v3297_v5  ;;  %vm434_vm14 = vmand %vm430_vm11, %vm432_vm12  ;;  %vm514_vm15 = vcmp.ge.s32.totalorder %v3297_v5, 0  ;;  %vm516_vm2 = vcmp.lt.s32.totalorder %v3297_v5, 16 }
  0xad   : > { %v2835_v50 = vcvt.f32.s32 %v389_v47  ;;  %v393_v51 = vsub.f32 %v2590_v42, %v389_v47  ;;  %vm518_vm5 = vmand %vm514_vm15, %vm516_vm2 }
  0xae   : > { %v3274_v49 = vsub.f32 %v3266_v44, %v387_v48  ;;  %v3315_v21 = vcvt.f32.s32 %v387_v48 }
  0xaf   : > { %452 = vrot.lane.b32.xlu2 %v450_v36, %s3104_s7  ;;  %440 = vrot.lane.b32.xlu1 %v438_v37, %s3104_s7  ;;  %vm437_vm6 = vcmp.ge.s32.totalorder %v2835_v50, 0  ;;  %vm449_vm7 = vcmp.lt.s32.totalorder %v2835_v50, 16  ;;  %v405_v55 = vsub.f32 1.0, %v393_v51  ;;  %v401_v56 = vadd.s32 1, %v2835_v50 }
  0xb0   : > { %v439_v53 = vsel %vm437_vm6, 1, %v4503_v11  ;;  %v451_v54 = vsel %vm449_vm7, 1, %v4503_v11  ;;  %v473_v23 = vmul.u32 16, %v3315_v21  ;;  %v3327_v28 = vadd.s32 1, %v3315_v21 }
  0xb1   : > { %vm493_vm8 = vcmp.lt.s32.totalorder %v401_v56, 16  ;;  %vm481_vm9 = vcmp.ge.s32.totalorder %v401_v56, 0 }
  0xb2   : > { %v495_v57 = vsel %vm493_vm8, 1, %v4503_v11  ;;  %v483_v58 = vsel %vm481_vm9, 1, %v4503_v11  ;;  %v529_v29 = vmul.u32 16, %v3327_v28 }
  0xb7   : > { %496 = vrot.lane.b32.xlu2 %v494_v46, %s3104_s7  ;;  %508 = vrot.lane.b32.xlu1 %v400_v39, %s3104_s7 }
  0xb8   : > { %408 = vrot.lane.b32.xlu0 %v404_v45, %s3104_s7 }
  0xbf   : > { %476 = vrot.lane.b32.xlu2 %v2835_v50, %s3104_s7  ;;  %420 = vrot.lane.b32.xlu1 %v393_v51, %s3104_s7 }
  0xc0   : > { %484 = vrot.lane.b32.xlu0 %v482_v52, %s3104_s7 }
  0xc7   : > { %442 = vrot.lane.b32.xlu2 %v439_v53, %s3104_s7  ;;  %454 = vrot.lane.b32.xlu1 %v451_v54, %s3104_s7 }
  0xc8   : > { %410 = vrot.lane.b32.xlu0 %v405_v55, %s3104_s7 }
  0xcf   : > { %510 = vrot.lane.b32.xlu1 %v401_v56, %s3104_s7  ;;  %498 = vrot.lane.b32.xlu2 %v495_v57, %s3104_s7 }
  0xd0   : > { %486 = vrot.lane.b32.xlu0 %v483_v58, %s3104_s7 }
 0x101   : > { %v475_v61 = vpop.permute.xlu2 %474 }
 0x102   : > { %v478_v62 = vadd.s32 %v475_v61, %v472_v60  ;;  %v530_v14 = vadd.s32 %v528_v10, %v475_v61 }
 0x104   : > { %557 = vperm.xlu2 %2910, %v478_v62   ;;  %543 = vperm.xlu0 %2909, %v478_v62  }
 0x109   : > { %v3306_v13 = vpop.permute.xlu2 %452 }
 0x10a   : > { %vm456_vm4 = vcmp.ne.s32.totalorder %v3306_v13, 0 }
 0x10c   : > { %2911 = vset.pattern.permute.xlu2 %v4505_v63 }
 0x10d   : > { %570 = vperm.xlu2 %2911, %v478_v62  }
 0x10f   : > { %v323_v0 = vpop.xlane.xlu0 %322 }
 0x110   : > { %v327_v1 = vsub.f32 %v3238_v15, %v323_v0 }
 0x111   : > { %v3311_v18 = vpop.permute.xlu2 %496 }
 0x112   : > { %v329_v3 = vmul.f32 1.442695, %v327_v1  ;;  %vm500_vm12 = vcmp.ne.s32.totalorder %v3311_v18, 0  ;;  %v4547_v18 = vmov 2  }
 0x114   : > { %3006 = vpow2.f32 %v329_v3 }
 0x115   : > { %2912 = vset.pattern.permute.xlu2 %v4501_v4 }
 0x116   : > { %583 = vperm.xlu2 %2912, %v478_v62  }
 0x117   : > { %v326_v33 = vpop.xlane.xlu0 %325 }
 0x118   : > { %v328_v35 = vsub.f32 %v3247_v26, %v326_v33 }
 0x119   : > { %v3299_v6 = vpop.permute.xlu1 %418  ;;  %v477_v22 = vpop.permute.xlu2 %476 }
 0x11a   : > { %v3301_v7 = vpop.eup %3006  ;;  %v479_v24 = vadd.s32 %v477_v22, %v473_v23  ;;  %v531_v31 = vadd.s32 %v529_v29, %v477_v22  ;;  %v331_v36 = vmul.f32 1.442695, %v328_v35  ;;  %v428_v5 = vmul.f32 %v3299_v6, %v3251_v30 }
 0x11b   : > { %335 = vrot.lane.b32.xlu1 %v3301_v7, %s3107_s8 }
 0x11c   : > { %3008 = vpow2.f32 %v331_v36 }
 0x11e   : > { %2913 = vset.pattern.permute.xlu2 %v4503_v11 }
 0x11f   : > { %649 = vperm.xlu2 %2913, %v530_v14  }
 0x121   : > { %v3309_v17 = vpop.permute.xlu1 %440  ;;  %v3356_v42 = vpop.permute.xlu2 %442 }
 0x122   : > { %v3342_v39 = vpop.eup %3008  ;;  %vm444_vm13 = vcmp.ne.s32.totalorder %v3309_v17, 0  ;;  %v424_v17 = vmul.f32 %v3299_v6, %v402_v59 }
 0x123   : > { %663 = vperm.xlu1 %2914, %v530_v14   ;;  %vm446_vm3 = vmand %vm434_vm14, %vm444_vm13 }
 0x124   : > { %vm3446_vm7 = vmand %vm446_vm3, %vm456_vm4  ;;  %vm433_vm3 = vcmp.lt.s32.totalorder %v3315_v21, 16 }
 0x125   : > { %vm520_vm8 = vmand %vm518_vm5, %vm444_vm13 }
 0x126   : > { %vm522_vm15 = vmand %vm520_vm8, %vm456_vm4  ;;  %vm515_vm4 = vcmp.ge.s32.totalorder %v3327_v28, 0 }
 0x127   : > { %2915 = vset.pattern.permute.xlu2 %v4505_v63 }
 0x128   : > { %676 = vperm.xlu2 %2915, %v530_v14  }
 0x129   : > { %v509_v19 = vpop.permute.xlu1 %508  ;;  %v3360_v44 = vpop.permute.xlu2 %498 }
 0x12a   : > { %v512_v20 = vadd.s32 %v509_v19, %v472_v60  ;;  %v540_v25 = vadd.s32 %v528_v10, %v509_v19 }
 0x12b   : > { %2916 = vset.pattern.permute.xlu1 %v4501_v4 }
 0x12c   : > { %596 = vperm.xlu0 %2909, %v512_v20   ;;  %689 = vperm.xlu1 %2916, %v530_v14  }
 0x130   : > { %2919 = vset.pattern.permute.xlu2 %v4501_v4 }
 0x131   : > { %636 = vperm.xlu2 %2919, %v512_v20   ;;  %v3322_v27 = vpop.permute.xlu1 %420 }
 0x134   : > { %2925 = vset.pattern.permute.xlu0 %v4507_v2  ;;  %2917 = vset.pattern.permute.xlu1 %v4507_v2 }
 0x135   : > { %925 = vperm.xlu0 %2925, %v479_v24   ;;  %610 = vperm.xlu1 %2917, %v512_v20  }
 0x139   : > { %2920 = vset.pattern.permute.xlu2 %v4503_v11  ;;  %v3331_v32 = vpop.permute.xlu1 %454 }
 0x13a   : > { %702 = vperm.xlu2 %2920, %v540_v25  }
 0x13d   : > { %2926 = vset.pattern.permute.xlu0 %v4505_v63  ;;  %2918 = vset.pattern.permute.xlu1 %v4505_v63 }
 0x13e   : > { %938 = vperm.xlu0 %2926, %v479_v24   ;;  %623 = vperm.xlu1 %2918, %v512_v20  }
 0x141   : > { %v511_v37 = vpop.permute.xlu1 %510 }
 0x142   : > { %2922 = vset.pattern.permute.xlu2 %v4505_v63  ;;  %v3339_v38 = vadd.s32 %v529_v29, %v511_v37  ;;  %v513_v41 = vadd.s32 %v511_v37, %v473_v23  ;;  %v409_v23 = vpop.permute.xlu0 %408 }
 0x143   : > { %729 = vperm.xlu2 %2922, %v540_v25  }
 0x146   : > { %2928 = vset.pattern.permute.xlu0 %v4503_v11  ;;  %2921 = vset.pattern.permute.xlu1 %v4507_v2 }
 0x147   : > { %1017 = vperm.xlu0 %2928, %v531_v31   ;;  %716 = vperm.xlu1 %2921, %v540_v25  }
 0x14b   : > { %2929 = vset.pattern.permute.xlu2 %v4507_v2 }
 0x14c   : > { %1031 = vperm.xlu2 %2929, %v531_v31  }
 0x14f   : > { %2930 = vset.pattern.permute.xlu0 %v4505_v63  ;;  %2923 = vset.pattern.permute.xlu1 %v4501_v4 }
 0x150   : > { %1044 = vperm.xlu0 %2930, %v531_v31   ;;  %742 = vperm.xlu1 %2923, %v540_v25   ;;  %v485_v25 = vpop.permute.xlu0 %484 }
 0x151   : > { %vm488_vm6 = vcmp.ne.s32.totalorder %v485_v25, 0 }
 0x152   : > { %vm490_vm9 = vmand %vm434_vm14, %vm488_vm6  ;;  %vm431_vm14 = vcmp.ge.s32.totalorder %v3315_v21, 0 }
 0x153   : > { %vm532_vm11 = vmand %vm518_vm5, %vm488_vm6  ;;  %vm517_vm5 = vcmp.lt.s32.totalorder %v3327_v28, 16  ;;  %vm445_vm6 = vcmp.ne.s32.totalorder %v3356_v42, 0 }
 0x154   : > { %1084 = vperm.xlu2 %2929, %v3339_v38   ;;  %vm502_vm2 = vmand %vm490_vm9, %vm500_vm12  ;;  %vm457_vm9 = vcmp.ne.s32.totalorder %v3331_v32, 0 }
 0x155   : > { %vm534_vm13 = vmand %vm532_vm11, %vm500_vm12 }
 0x156   : > { %vm3475_vm8 = vmand %vm515_vm4, %vm517_vm5 }
 0x158   : > { %2931 = vset.pattern.permute.xlu0 %v4503_v11  ;;  %337 = vrot.lane.b32.xlu1 %v3342_v39, %s3107_s8 }
 0x159   : > { %964 = vperm.xlu0 %2931, %v513_v41   ;;  %2924 = vset.pattern.permute.xlu1 %v4503_v11 }
 0x15c   : > { %2936 = vset.pattern.permute.xlu2 %v4505_v63 }
 0x15d   : > { %1097 = vperm.xlu2 %2936, %v3339_v38  }
 0x15e   : > { %v3365_v47 = vpop.permute.xlu2 %557 }
 0x160   : > { %911 = vperm.xlu1 %2924, %v479_v24  }
 0x161   : > { %2933 = vset.pattern.permute.xlu0 %v4505_v63  ;;  %v426_v63 = vmul.f32 %v409_v23, %v3251_v30  ;;  %v4546_v30 = vmov 1  }
 0x162   : > { %991 = vperm.xlu0 %2933, %v513_v41  }
 0x165   : > { %2940 = vset.pattern.permute.xlu2 %v4503_v11 }
 0x167   : > { %v3369_v50 = vpop.permute.xlu2 %570 }
 0x168   : > { %2927 = vset.pattern.permute.xlu1 %v4501_v4 }
 0x169   : > { %951 = vperm.xlu1 %2927, %v479_v24  }
 0x16a   : > { %2937 = vset.pattern.permute.xlu0 %v4507_v2 }
 0x170   : > { %v3373_v52 = vpop.permute.xlu2 %583 }
 0x171   : > { %1057 = vperm.xlu1 %2927, %v531_v31   ;;  %v3409_v31 = vpop.permute.xlu0 %410 }
 0x172   : > { %v427_v21 = vmul.f32 %v3409_v31, %v3274_v49 }
 0x179   : > { %2932 = vset.pattern.permute.xlu1 %v4507_v2  ;;  %v3377_v54 = vpop.permute.xlu2 %649  ;;  %v3413_v35 = vpop.permute.xlu0 %486 }
 0x17a   : > { %978 = vperm.xlu1 %2932, %v513_v41   ;;  %vm489_vm12 = vcmp.ne.s32.totalorder %v3413_v35, 0 }
 0x181   : > { %v3417_v37 = vpop.permute.xlu0 %543 }
 0x182   : > { %2934 = vset.pattern.permute.xlu1 %v4501_v4  ;;  %v3381_v56 = vpop.permute.xlu2 %676 }
 0x183   : > { %1004 = vperm.xlu1 %2934, %v513_v41  }
 0x18b   : > { %2935 = vset.pattern.permute.xlu1 %v4503_v11  ;;  %v3385_v58 = vpop.permute.xlu2 %636 }
 0x18c   : > { %1070 = vperm.xlu1 %2935, %v3339_v38  }
 0x18d   : > { %v336_v43 = vpop.permute.xlu1 %335 }
 0x18e   : > { %v342_v45 = vsel %vm341_vm10, %v336_v43, 0.0 }
 0x18f   : > { %343 = vadd.xlane.f32.xlu2 %v342_v45 }
 0x194   : > { %v3388_v62 = vpop.permute.xlu2 %702 }
 0x195   : > { %v3363_v46 = vpop.permute.xlu1 %663 }
 0x19d   : > { %v3390_v0 = vpop.permute.xlu2 %729 }
 0x19e   : > { %v3367_v48 = vpop.permute.xlu1 %689  ;;  %v3421_v41 = vpop.permute.xlu0 %596 }
 0x1a6   : > { %v3392_v1 = vpop.permute.xlu2 %1031 }
 0x1a7   : > { %v3371_v51 = vpop.permute.xlu1 %610  ;;  %v3423_v45 = vpop.permute.xlu0 %925 }
 0x1ae   : > { %v3394_v3 = vpop.permute.xlu2 %1084 }
 0x1af   : > { %4542 = vst [vmem:[#allocation13_spill] sm:$0xff] %v3394_v3 }
 0x1b0   : > { %v3375_v53 = vpop.permute.xlu1 %623 }
 0x1b7   : > { %v3396_v10 = vpop.permute.xlu2 %1097 }
 0x1b8   : > { %4543 = vst [vmem:[#allocation14_spill] sm:$0xff] %v3396_v10  ;;  %v3624_v10 = vld [vmem:[%s3527_s13 + $0x40] sm:$0xff] }
 0x1b9   : > { %v3379_v55 = vpop.permute.xlu1 %716 }
 0x1c2   : > { %v3383_v57 = vpop.permute.xlu1 %742 }
 0x1ca   : > { %v338_v60 = vpop.permute.xlu1 %337 }
 0x1cb   : > { %v345_v61 = vsel %vm341_vm10, %v338_v60, 0.0 }
 0x1cc   : > { %346 = vadd.xlane.f32.xlu1 %v345_v61 }
 0x1d2   : > { %v3398_v19 = vpop.permute.xlu1 %911 }
 0x1db   : > { %v3405_v24 = vpop.permute.xlu1 %951 }
 0x1e3   : > { %v3407_v29 = vpop.permute.xlu1 %1057 }
 0x1ec   : > { %v3411_v33 = vpop.permute.xlu1 %978 }
 0x1f5   : > { %v3415_v36 = vpop.permute.xlu1 %1004 }
 0x202   : > { %v344_v14 = vpop.xlane.xlu2 %343 }
 0x203   : > { %3010 = vrcp.f32 %v344_v14  ;;  %v3430_v14 = vpop.permute.xlu0 %938 }
 0x209   : > { %v3011_v20 = vpop.eup %3010 }
 0x20a   : > { %v3401_v22 = vmul.f32 %v3011_v20, %v3301_v7  ;;  %v3419_v7 = vpop.permute.xlu1 %1070 }
 0x20b   : > { %v3432_v20 = vpop.permute.xlu0 %1017 }
 0x20c   : > { %462 = vrot.lane.b32.xlu0 %v3401_v22, %s3107_s8 }
 0x213   : > { %v3434_v4 = vpop.permute.xlu0 %1044 }
 0x21b   : > { %v3436_v11 = vpop.permute.xlu0 %964 }
 0x23f   : > { %v347_v43 = vpop.xlane.xlu1 %346 }
 0x240   : > { %3012 = vrcp.f32 %v347_v43 }
 0x246   : > { %v3013_v60 = vpop.eup %3012 }
 0x247   : > { %v3426_v61 = vmul.f32 %v3013_v60, %v3342_v39  ;;  %v3443_v39 = vpop.permute.xlu0 %991  ;;  %v414_v60 = vmul.f32 %v409_v23, %v402_v59  ;;  %v4549_v23 = vmov 3  }
 0x249   : > { %464 = vrot.lane.b32.xlu0 %v3426_v61, %s3107_s8  ;;  %s3115_s8 = smov 1  }
 0x27e   : > { %v463_v13 = vpop.permute.xlu0 %462 }
 0x27f   : > { %v504_v25 = vmul.f32 %v463_v13, %v424_v17  ;;  %v468_v2 = vmul.f32 %v463_v13, %v414_v60  ;;  %v524_v9 = vmul.f32 %v463_v13, %v426_v63  ;;  %v536_v8 = vmul.f32 %v463_v13, %v428_v5  ;;  %v3543_v60 = vld [vmem:[%s3527_s13 + $0x30] sm:$0xff] }
 0x280   : > { %v4548_v63 = vmov 0   ;;  %v3546_v13 = vld [vmem:[%s3527_s13 + $0x70] sm:$0xff] }
 0x281   : > { %v506_v34 = vsel %vm502_vm2, %v504_v25, 0.0  ;;  %v470_v12 = vsel %vm3446_vm7, %v468_v2, 0.0  ;;  %v526_v16 = vsel %vm522_vm15, %v524_v9, 0.0  ;;  %v538_v6 = vsel %vm534_vm13, %v536_v8, 0.0  ;;  %vm435_vm7 = vmand %vm431_vm14, %vm433_vm3  ;;  %v3551_v25 = vld [vmem:[%s3527_s13 + $0x28] sm:$0xff]  ;;  %v3564_v9 = vld [vmem:[%s3527_s13 + $0x20] sm:$0xff] }
 0x282   : > { %602 = vperm.xlu2 %2940, %v506_v34   ;;  %562 = vperm.xlu0 %2937, %v470_v12   ;;  %vm447_vm11 = vmand %vm435_vm7, %vm445_vm6  ;;  %v403_v8 = vsub.f32 1.0, %v3274_v49  ;;  %vm501_vm13 = vcmp.ne.s32.totalorder %v3360_v44, 0  ;;  %v3534_v44 = vld [vmem:[%s3527_s13 + $0x78] sm:$0xff] }
 0x283   : > { %549 = vperm.xlu1 %2935, %v470_v12   ;;  %vm521_vm15 = vmand %vm3475_vm8, %vm445_vm6  ;;  %897 = vmatpush.bf16.msra.mxu2 %v3534_v44 }
 0x284   : > { %vm3486_vm2 = vmand %vm447_vm11, %vm457_vm9 }
 0x285   : > { %vm491_vm14 = vmand %vm435_vm7, %vm489_vm12 }
 0x286   : > { %vm533_vm3 = vmand %vm3475_vm8, %vm489_vm12 }
 0x287   : > { %vm523_vm4 = vmand %vm521_vm15, %vm457_vm9  ;;  %898 = vmatpush.bf16.msra.mxu2 %v3546_v13 }
 0x288   : > { %vm503_vm5 = vmand %vm491_vm14, %vm501_vm13 }
 0x289   : > { %vm535_vm6 = vmand %vm533_vm3, %vm501_vm13 }
 0x28a   : > { %2941 = vset.pattern.permute.xlu2 %v4546_v30  ;;  %2942 = vset.pattern.permute.xlu0 %v4547_v18 }
 0x28b   : > { %2938 = vset.pattern.permute.xlu1 %v4547_v18  ;;  %615 = vperm.xlu2 %2941, %v506_v34  }
 0x28c   : > { %628 = vperm.xlu0 %2942, %v506_v34   ;;  %575 = vperm.xlu1 %2938, %v470_v12  }
 0x293   : > { %2943 = vset.pattern.permute.xlu2 %v4548_v63 }
 0x294   : > { %681 = vperm.xlu0 %2942, %v526_v16   ;;  %2939 = vset.pattern.permute.xlu1 %v4549_v23 }
 0x295   : > { %655 = vperm.xlu2 %2943, %v526_v16   ;;  %588 = vperm.xlu1 %2939, %v470_v12   ;;  %v425_v12 = vmul.f32 %v3322_v27, %v403_v8 }
 0x29c   : > { %2946 = vset.pattern.permute.xlu0 %v4548_v63 }
 0x29d   : > { %2944 = vset.pattern.permute.xlu2 %v4546_v30  ;;  %708 = vperm.xlu0 %2946, %v538_v6  }
 0x29e   : > { %641 = vperm.xlu1 %2939, %v506_v34   ;;  %668 = vperm.xlu2 %2944, %v526_v16   ;;  %v415_v34 = vmul.f32 %v3409_v31, %v403_v8  ;;  %v1282_v8 = vsel %vm320_vm1, %v3426_v61, -inf }
 0x2a5   : > { %2948 = vset.pattern.permute.xlu0 %v4547_v18 }
 0x2a6   : > { %2945 = vset.pattern.permute.xlu2 %v4549_v23  ;;  %734 = vperm.xlu0 %2948, %v538_v6  }
 0x2a7   : > { %694 = vperm.xlu2 %2945, %v526_v16   ;;  %2950 = vset.pattern.permute.xlu1 %v4548_v63  ;;  %v429_v16 = vmul.f32 %v3322_v27, %v3274_v49 }
 0x2ae   : > { %2962 = vset.pattern.permute.xlu0 %v4548_v63 }
 0x2af   : > { %2947 = vset.pattern.permute.xlu2 %v4546_v30 }
 0x2b0   : > { %721 = vperm.xlu2 %2947, %v538_v6  }
 0x2b8   : > { %2949 = vset.pattern.permute.xlu2 %v4549_v23 }
 0x2b9   : > { %747 = vperm.xlu2 %2949, %v538_v6   ;;  %v3554_v6 = vld [vmem:[%s3527_s13 + $0x68] sm:$0xff] }
 0x2ba   : > { %899 = vmatpush.bf16.msra.mxu2 %v3554_v6 }
 0x2bb   : > { %v465_v28 = vpop.permute.xlu0 %464 }
 0x2bc   : > { %v537_v42 = vmul.f32 %v465_v28, %v429_v16  ;;  %v469_v35 = vmul.f32 %v465_v28, %v415_v34  ;;  %v505_v43 = vmul.f32 %v465_v28, %v425_v12  ;;  %v525_v59 = vmul.f32 %v465_v28, %v427_v21  ;;  %v3567_v12 = vld [vmem:[%s3527_s13 + $0x60] sm:$0xff]  ;;  %v3574_v21 = vld [vmem:[%s3527_s13 + $0x18] sm:$0xff] }
 0x2bd   : > { %v4516_v16 = vlaneseq  ;;  %v3577_v28 = vld [vmem:[%s3527_s13 + $0x58] sm:$0xff] }
 0x2be   : > { %v3506_v27 = vsel %vm535_vm6, %v537_v42, 0.0  ;;  %v471_v49 = vsel %vm3486_vm2, %v469_v35, 0.0  ;;  %v507_v31 = vsel %vm503_vm5, %v505_v43, 0.0  ;;  %v527_v17 = vsel %vm523_vm4, %v525_v59, 0.0  ;;  %900 = vmatpush.bf16.msra.mxu2 %v3567_v12  ;;  %v3587_v43 = vld [vmem:[%s3527_s13 + $0x10] sm:$0xff] }
 0x2bf   : > { %1076 = vperm.xlu0 %2962, %v3506_v27   ;;  %917 = vperm.xlu1 %2950, %v471_v49   ;;  %v3582_v35 = vand.u32 127, %v4516_v16  ;;  %v3590_v59 = vld [vmem:[%s3527_s13 + $0x50] sm:$0xff] }
 0x2c0   : > { %4554 = vst [vmem:[#allocation15_spill] sm:$0xff] %v3590_v59 }
 0x2c1   : > { %2951 = vset.pattern.permute.xlu2 %v4546_v30  ;;  %vm545_vm7 = vcmp.eq.s32.totalorder %v3582_v35, %v3417_v37  ;;  %vm559_vm9 = vcmp.eq.s32.totalorder %v3582_v35, %v3365_v47  ;;  %vm572_vm12 = vcmp.eq.s32.totalorder %v3582_v35, %v3369_v50  ;;  %vm585_vm2 = vcmp.eq.s32.totalorder %v3582_v35, %v3373_v52 }
 0x2c2   : > { %930 = vperm.xlu2 %2951, %v471_v49   ;;  %901 = vmatpush.bf16.msra.mxu2 %v3577_v28  ;;  %vm598_vm14 = vcmp.eq.s32.totalorder %v3582_v35, %v3421_v41  ;;  %vm612_vm4 = vcmp.eq.s32.totalorder %v3582_v35, %v3371_v51  ;;  %vm625_vm6 = vcmp.eq.s32.totalorder %v3582_v35, %v3375_v53 }
 0x2c6   : > { %902 = vmatpush.bf16.msra.mxu2 %v3590_v59 }
 0x2c7   : > { %2964 = vset.pattern.permute.xlu0 %v4549_v23  ;;  %2952 = vset.pattern.permute.xlu1 %v4547_v18 }
 0x2c8   : > { %1110 = vperm.xlu0 %2964, %v3339_v38   ;;  %943 = vperm.xlu1 %2952, %v471_v49   ;;  %v3531_v38 = vld [vmem:[%s3527_s13 + $0x38] sm:$0xff] }
 0x2c9   : > { %884 = vmatpush.bf16.msra.mxu1 %v3531_v38 }
 0x2ca   : > { %2953 = vset.pattern.permute.xlu2 %v4549_v23 }
 0x2cb   : > { %956 = vperm.xlu2 %2953, %v471_v49   ;;  %v3594_v49 = vadd.s32 128, %v3582_v35 }
 0x2cd   : > { %885 = vmatpush.bf16.msra.mxu1 %v3543_v60  ;;  %vm546_vm8 = vcmp.eq.s32.totalorder %v3594_v49, %v3417_v37  ;;  %vm560_vm11 = vcmp.eq.s32.totalorder %v3594_v49, %v3365_v47  ;;  %vm573_vm15 = vcmp.eq.s32.totalorder %v3594_v49, %v3369_v50  ;;  %vm586_vm13 = vcmp.eq.s32.totalorder %v3594_v49, %v3373_v52 }
 0x2ce   : > { %vm599_vm3 = vcmp.eq.s32.totalorder %v3594_v49, %v3421_v41  ;;  %vm613_vm5 = vcmp.eq.s32.totalorder %v3594_v49, %v3371_v51 }
 0x2d0   : > { %2954 = vset.pattern.permute.xlu1 %v4548_v63  ;;  %2970 = vset.pattern.permute.xlu0 %v4548_v63 }
 0x2d1   : > { %970 = vperm.xlu1 %2954, %v507_v31   ;;  %886 = vmatpush.bf16.msra.mxu1 %v3551_v25 }
 0x2d3   : > { %2955 = vset.pattern.permute.xlu2 %v4546_v30 }
 0x2d4   : > { %983 = vperm.xlu2 %2955, %v507_v31  }
 0x2d5   : > { %887 = vmatpush.bf16.msra.mxu1 %v3564_v9 }
 0x2d9   : > { %2956 = vset.pattern.permute.xlu1 %v4547_v18  ;;  %888 = vmatpush.bf16.msra.mxu1 %v3574_v21 }
 0x2da   : > { %996 = vperm.xlu1 %2956, %v507_v31  }
 0x2dc   : > { %2957 = vset.pattern.permute.xlu2 %v4549_v23  ;;  %v3522_v32 = vpop.permute.xlu2 %602 }
 0x2dd   : > { %1009 = vperm.xlu2 %2957, %v507_v31   ;;  %889 = vmatpush.bf16.msra.mxu1 %v3587_v43  ;;  %v606_v52 = vsel %vm599_vm3, %v3522_v32, 0.0  ;;  %vm691_vm3 = vcmp.eq.s32.totalorder %v3582_v35, %v3367_v48 }
 0x2e2   : > { %2958 = vset.pattern.permute.xlu1 %v4548_v63 }
 0x2e3   : > { %1023 = vperm.xlu1 %2958, %v527_v17  }
 0x2e5   : > { %2960 = vset.pattern.permute.xlu2 %v4547_v18  ;;  %v3539_v5 = vpop.permute.xlu2 %615 }
 0x2e6   : > { %1049 = vperm.xlu2 %2960, %v527_v17   ;;  %v619_v41 = vsel %vm613_vm5, %v3539_v5, 0.0  ;;  %vm704_vm5 = vcmp.eq.s32.totalorder %v3582_v35, %v3388_v62 }
 0x2eb   : > { %2959 = vset.pattern.permute.xlu1 %v4546_v30 }
 0x2ec   : > { %1036 = vperm.xlu1 %2959, %v527_v17  }
 0x2ee   : > { %2961 = vset.pattern.permute.xlu2 %v4549_v23 }
 0x2ef   : > { %v3557_v2 = vpop.permute.xlu2 %655  ;;  %1062 = vperm.xlu2 %2961, %v527_v17  }
 0x2f2   : > { %1283 = vmax.xlane.f32.xlu0 %v1282_v8  ;;  %v3602_v8 = vld [vmem:[%s3527_s13 + $0x8] sm:$0xff] }
 0x2f3   : > { %890 = vmatpush.bf16.msra.mxu1 %v3602_v8 }
 0x2f4   : > { %1089 = vperm.xlu1 %2959, %v3506_v27   ;;  %v563_v23 = vpop.permute.xlu0 %562 }
 0x2f5   : > { %v550_v34 = vpop.permute.xlu1 %549  ;;  %v565_v40 = vsel %vm559_vm9, %v563_v23, 0.0  ;;  %v566_v15 = vsel %vm560_vm11, %v563_v23, 0.0  ;;  %vm639_vm9 = vcmp.eq.s32.totalorder %v3594_v49, %v3385_v58  ;;  %vm651_vm11 = vcmp.eq.s32.totalorder %v3582_v35, %v3377_v54 }
 0x2f6   : > { %v552_v16 = vsel %vm545_vm7, %v550_v34, 0.0  ;;  %v553_v63 = vsel %vm546_vm8, %v550_v34, 0.0  ;;  %vm626_vm7 = vcmp.eq.s32.totalorder %v3594_v49, %v3375_v53  ;;  %vm638_vm8 = vcmp.eq.s32.totalorder %v3582_v35, %v3385_v58 }
 0x2f7   : > { %1115 = vperm.xlu2 %2961, %v3506_v27   ;;  %v567_v59 = vadd.f32 %v565_v40, %v552_v16  ;;  %v568_v3 = vadd.f32 %v566_v15, %v553_v63 }
 0x2f8   : > { %v3579_v42 = vpop.permute.xlu2 %668 }
 0x2fc   : > { %2963 = vset.pattern.permute.xlu1 %v4547_v18  ;;  %v3605_v18 = vld [vmem:[%s3527_s13 + $0x48] sm:$0xff] }
 0x2fd   : > { %1102 = vperm.xlu1 %2963, %v3506_v27   ;;  %4555 = vst [vmem:[#allocation16_spill] sm:$0xff] %v3605_v18  ;;  %v3618_v27 = vld [vmem:[%s3527_s13] sm:$0xff]  ;;  %903 = vmatpush.bf16.msra.mxu2 %v3605_v18 }
 0x2fe   : > { %v576_v31 = vpop.permute.xlu1 %575  ;;  %v629_v17 = vpop.permute.xlu0 %628  ;;  %891 = vmatpush.bf16.msra.mxu1 %v3618_v27 }
 0x2ff   : > { %1287 = vrot.lane.b32.xlu2 %v3582_v35, %s3108_s9  ;;  %v578_v47 = vsel %vm572_vm12, %v576_v31, 0.0  ;;  %v579_v37 = vsel %vm573_vm15, %v576_v31, 0.0  ;;  %v605_v31 = vsel %vm598_vm14, %v3522_v32, 0.0  ;;  %vm652_vm12 = vcmp.eq.s32.totalorder %v3594_v49, %v3377_v54 }
 0x300   : > { %2972 = vset.pattern.permute.xlu2 %v4546_v30  ;;  %v580_v23 = vadd.f32 %v578_v47, %v567_v59  ;;  %v581_v34 = vadd.f32 %v579_v37, %v568_v3  ;;  %vm665_vm15 = vcmp.eq.s32.totalorder %v3582_v35, %v3363_v46  ;;  %vm679_vm14 = vcmp.eq.s32.totalorder %v3594_v49, %v3381_v56 }
 0x301   : > { %v3620_v26 = vpop.permute.xlu2 %694  ;;  %904 = vmatpush.bf16.msra.mxu2 %v3624_v10 }
 0x305   : > { %2971 = vset.pattern.permute.xlu1 %v4546_v30  ;;  %1720 = vmatpush.bf16.msrb.mxu2 %v3531_v38 }
 0x306   : > { %v682_v50 = vpop.permute.xlu0 %681 }
 0x307   : > { %v589_v18 = vpop.permute.xlu1 %588 }
 0x308   : > { %v591_v40 = vsel %vm585_vm2, %v589_v18, 0.0  ;;  %v592_v15 = vsel %vm586_vm13, %v589_v18, 0.0  ;;  %v618_v18 = vsel %vm612_vm4, %v3539_v5, 0.0  ;;  %vm666_vm2 = vcmp.eq.s32.totalorder %v3594_v49, %v3363_v46 }
 0x309   : > { %v593_v63 = vadd.f32 %v591_v40, %v580_v23  ;;  %v594_v16 = vadd.f32 %v592_v15, %v581_v34  ;;  %1721 = vmatpush.bf16.msrb.mxu2 %v3543_v60  ;;  %v631_v23 = vsel %vm625_vm6, %v629_v17, 0.0  ;;  %v632_v34 = vsel %vm626_vm7, %v629_v17, 0.0 }
 0x30a   : > { %v722_v47 = vpop.permute.xlu2 %721  ;;  %v672_v54 = vsel %vm666_vm2, %v3579_v42, 0.0  ;;  %vm678_vm13 = vcmp.eq.s32.totalorder %v3582_v35, %v3381_v56  ;;  %vm692_vm4 = vcmp.eq.s32.totalorder %v3594_v49, %v3367_v48  ;;  %vm705_vm6 = vcmp.eq.s32.totalorder %v3594_v49, %v3388_v62 }
 0x30b   : > { %v607_v3 = vadd.f32 %v605_v31, %v593_v63  ;;  %v608_v59 = vadd.f32 %v606_v52, %v594_v16  ;;  %v658_v31 = vsel %vm651_vm11, %v3557_v2, 0.0  ;;  %v659_v52 = vsel %vm652_vm12, %v3557_v2, 0.0 }
 0x30c   : > { %vm718_vm7 = vcmp.eq.s32.totalorder %v3582_v35, %v3379_v55  ;;  %vm732_vm11 = vcmp.eq.s32.totalorder %v3594_v49, %v3390_v0  ;;  %vm744_vm12 = vcmp.eq.s32.totalorder %v3582_v35, %v3383_v57  ;;  %vm913_vm2 = vcmp.eq.s32.totalorder %v3582_v35, %v3398_v19 }
 0x30d   : > { %v620_v32 = vadd.f32 %v618_v18, %v607_v3  ;;  %v621_v37 = vadd.f32 %v619_v41, %v608_v59  ;;  %1722 = vmatpush.bf16.msrb.mxu2 %v3551_v25  ;;  %v671_v59 = vsel %vm665_vm15, %v3579_v42, 0.0  ;;  %vm745_vm15 = vcmp.eq.s32.totalorder %v3594_v49, %v3383_v57 }
 0x30e   : > { %v1279_v57 = vsel %vm320_vm1, %v3401_v22, -inf }
 0x30f   : > { %v633_v51 = vadd.f32 %v631_v23, %v620_v32  ;;  %v634_v40 = vadd.f32 %v632_v34, %v621_v37  ;;  %v709_v16 = vpop.permute.xlu0 %708  ;;  %v684_v32 = vsel %vm678_vm13, %v682_v50, 0.0  ;;  %v685_v37 = vsel %vm679_vm14, %v682_v50, 0.0 }
 0x310   : > { %v642_v5 = vpop.permute.xlu1 %641  ;;  %v697_v23 = vsel %vm691_vm3, %v3620_v26, 0.0  ;;  %v698_v34 = vsel %vm692_vm4, %v3620_v26, 0.0  ;;  %v711_v50 = vsel %vm704_vm5, %v709_v16, 0.0  ;;  %vm914_vm13 = vcmp.eq.s32.totalorder %v3594_v49, %v3398_v19  ;;  %v3756_v19 = vld [vmem:[%s3527_s13 + $0x98] sm:$0xff] }
 0x311   : > { %v644_v15 = vsel %vm638_vm8, %v642_v5, 0.0  ;;  %v645_v63 = vsel %vm639_vm9, %v642_v5, 0.0  ;;  %1723 = vmatpush.bf16.msrb.mxu2 %v3564_v9  ;;  %vm719_vm8 = vcmp.eq.s32.totalorder %v3594_v49, %v3379_v55  ;;  %vm731_vm9 = vcmp.eq.s32.totalorder %v3582_v35, %v3390_v0 }
 0x312   : > { %v646_v53 = vadd.f32 %v644_v15, %v633_v51  ;;  %v647_v17 = vadd.f32 %v645_v63, %v634_v40  ;;  %v712_v40 = vsel %vm705_vm6, %v709_v16, 0.0  ;;  %v724_v15 = vsel %vm718_vm7, %v722_v47, 0.0 }
 0x313   : > { %v748_v41 = vpop.permute.xlu2 %747  ;;  %v725_v63 = vsel %vm719_vm8, %v722_v47, 0.0  ;;  %vm927_vm14 = vcmp.eq.s32.totalorder %v3582_v35, %v3423_v45  ;;  %vm928_vm3 = vcmp.eq.s32.totalorder %v3594_v49, %v3423_v45  ;;  %vm940_vm4 = vcmp.eq.s32.totalorder %v3582_v35, %v3430_v14 }
 0x314   : > { %v660_v58 = vadd.f32 %v658_v31, %v646_v53  ;;  %v661_v3 = vadd.f32 %v659_v52, %v647_v17  ;;  %v750_v52 = vsel %vm744_vm12, %v748_v41, 0.0  ;;  %vm941_vm5 = vcmp.eq.s32.totalorder %v3594_v49, %v3430_v14 }
 0x315   : > { %1724 = vmatpush.bf16.msrb.mxu2 %v3574_v21  ;;  %vm966_vm6 = vcmp.eq.s32.totalorder %v3582_v35, %v3436_v11  ;;  %vm967_vm7 = vcmp.eq.s32.totalorder %v3594_v49, %v3436_v11  ;;  %vm953_vm8 = vcmp.eq.s32.totalorder %v3582_v35, %v3405_v24  ;;  %v3783_v11 = vld [vmem:[%s3527_s13 + $0xc8] sm:$0xff]  ;;  %vm994_vm12 = vcmp.eq.s32.totalorder %v3594_v49, %v3443_v39 }
 0x316   : > { %v673_v2 = vadd.f32 %v671_v59, %v660_v58  ;;  %v674_v18 = vadd.f32 %v672_v54, %v661_v3  ;;  %v751_v58 = vsel %vm745_vm15, %v748_v41, 0.0  ;;  %v3708_v41 = vld [vmem:[%s3527_s13 + $0xb8] sm:$0xff]  ;;  %vm980_vm15 = vcmp.eq.s32.totalorder %v3582_v35, %v3411_v33 }
 0x317   : > { %1253 = vmatpush.bf16.msra.mxu3 %v3708_v41 }
 0x318   : > { %v686_v46 = vadd.f32 %v684_v32, %v673_v2  ;;  %v687_v42 = vadd.f32 %v685_v37, %v674_v18  ;;  %v735_v5 = vpop.permute.xlu0 %734  ;;  %v3711_v37 = vld [vmem:[%s3527_s13 + $0xf8] sm:$0xff] }
 0x319   : > { %1725 = vmatpush.bf16.msrb.mxu2 %v3587_v43  ;;  %v737_v62 = vsel %vm731_vm9, %v735_v5, 0.0  ;;  %v738_v16 = vsel %vm732_vm11, %v735_v5, 0.0  ;;  %1266 = vmatpush.bf16.msrb.mxu0 %v3711_v37  ;;  %vm954_vm9 = vcmp.eq.s32.totalorder %v3594_v49, %v3405_v24  ;;  %vm993_vm11 = vcmp.eq.s32.totalorder %v3582_v35, %v3443_v39 }
 0x31a   : > { %v699_v56 = vadd.f32 %v697_v23, %v686_v46  ;;  %v700_v51 = vadd.f32 %v698_v34, %v687_v42  ;;  %v3716_v46 = vld [vmem:[%s3527_s13 + $0xb0] sm:$0xff] }
 0x31b   : > { %v3719_v42 = vld [vmem:[%s3527_s13 + $0xf0] sm:$0xff]  ;;  %1254 = vmatpush.bf16.msra.mxu3 %v3716_v46 }
 0x31c   : > { %v713_v48 = vadd.f32 %v711_v50, %v699_v56  ;;  %v714_v26 = vadd.f32 %v712_v40, %v700_v51  ;;  %v931_v31 = vpop.permute.xlu2 %930  ;;  %v3726_v56 = vld [vmem:[%s3527_s13 + $0xa8] sm:$0xff]  ;;  %v3734_v40 = vld [vmem:[%s3527_s13 + $0xa0] sm:$0xff] }
 0x31d   : > { %1726 = vmatpush.bf16.msrb.mxu2 %v3602_v8  ;;  %1267 = vmatpush.bf16.msrb.mxu0 %v3719_v42  ;;  %v3729_v51 = vld [vmem:[%s3527_s13 + $0xe8] sm:$0xff]  ;;  %v934_v45 = vsel %vm928_vm3, %v931_v31, 0.0  ;;  %vm1019_vm3 = vcmp.eq.s32.totalorder %v3582_v35, %v3432_v20 }
 0x31e   : > { %v726_v53 = vadd.f32 %v724_v15, %v713_v48  ;;  %v727_v17 = vadd.f32 %v725_v63, %v714_v26  ;;  %v3737_v48 = vld [vmem:[%s3527_s13 + $0xe0] sm:$0xff]  ;;  %v3759_v63 = vld [vmem:[%s3527_s13 + $0xd8] sm:$0xff] }
 0x31f   : > { %1255 = vmatpush.bf16.msra.mxu3 %v3726_v56 }
 0x320   : > { %v739_v55 = vadd.f32 %v737_v62, %v726_v53  ;;  %v740_v47 = vadd.f32 %v738_v16, %v727_v17  ;;  %v933_v53 = vsel %vm927_vm14, %v931_v31, 0.0  ;;  %vm1007_vm14 = vcmp.eq.s32.totalorder %v3594_v49, %v3415_v36 }
 0x321   : > { %1727 = vmatpush.bf16.msrb.mxu2 %v3618_v27  ;;  %1268 = vmatpush.bf16.msrb.mxu0 %v3729_v51 }
 0x322   : > { %v752_v3 = vadd.f32 %v750_v52, %v739_v55  ;;  %v753_v0 = vadd.f32 %v751_v58, %v740_v47  ;;  %v3764_v58 = vld [vmem:[%s3527_s13 + $0x90] sm:$0xff] }
 0x323   : > { %1256 = vmatpush.bf16.msra.mxu3 %v3734_v40 }
 0x324   : > { %v786_v59 = vpack.c.bf16 %v752_v3, %v752_v3  ;;  %v787_v54 = vpack.c.bf16 %v753_v0, %v753_v0  ;;  %v3767_v3 = vld [vmem:[%s3527_s13 + $0xd0] sm:$0xff] }
 0x325   : > { %v957_v2 = vpop.permute.xlu2 %956  ;;  %1269 = vmatpush.bf16.msrb.mxu0 %v3737_v48 }
 0x326   : > { %892 = vmatmul.bf16.vlgmr.msra.gmra.mxu1 %v786_v59  ;;  %905 = vmatmul.bf16.vlgmr.msra.gmra.mxu2 %v787_v54  ;;  %v959_v31 = vsel %vm953_vm8, %v957_v2, 0.0  ;;  %v960_v0 = vsel %vm954_vm9, %v957_v2, 0.0  ;;  %v3798_v2 = vld [vmem:[%s3527_s13 + $0x80] sm:$0xff]  ;;  %vm1047_vm8 = vcmp.eq.s32.totalorder %v3594_v49, %v3434_v4  ;;  %vm1059_vm9 = vcmp.eq.s32.totalorder %v3582_v35, %v3407_v29 }
 0x327   : > { %1280 = vmax.xlane.f32.xlu1 %v1279_v57  ;;  %1257 = vmatpush.bf16.msra.mxu3 %v3756_v19 }
 0x329   : > { %1270 = vmatpush.bf16.msrb.mxu0 %v3759_v63 }
 0x32b   : > { %1258 = vmatpush.bf16.msra.mxu3 %v3764_v58 }
 0x32d   : > { %1271 = vmatpush.bf16.msrb.mxu0 %v3767_v3 }
 0x32e   : > { %v3705_v32 = vpop.permute.xlu2 %983 }
 0x331   : > { %v918_v18 = vpop.permute.xlu1 %917  ;;  %v3787_v24 = vpop.permute.xlu0 %1076  ;;  %1272 = vmatpush.bf16.msrb.mxu0 %v3783_v11 }
 0x332   : > { %v920_v26 = vsel %vm913_vm2, %v918_v18, 0.0  ;;  %v921_v5 = vsel %vm914_vm13, %v918_v18, 0.0  ;;  %vm981_vm2 = vcmp.eq.s32.totalorder %v3594_v49, %v3411_v33  ;;  %vm1006_vm13 = vcmp.eq.s32.totalorder %v3582_v35, %v3415_v36 }
 0x333   : > { %v935_v16 = vadd.f32 %v933_v53, %v920_v26  ;;  %v936_v55 = vadd.f32 %v934_v45, %v921_v5  ;;  %v986_v45 = vsel %vm980_vm15, %v3705_v32, 0.0  ;;  %vm1072_vm15 = vcmp.eq.s32.totalorder %v3582_v35, %v3419_v7 }
 0x337   : > { %v3723_v34 = vpop.permute.xlu2 %1009 }
 0x338   : > { %v1012_v33 = vsel %vm1006_vm13, %v3723_v34, 0.0 }
 0x33a   : > { %v944_v23 = vpop.permute.xlu1 %943 }
 0x33b   : > { %v946_v17 = vsel %vm940_vm4, %v944_v23, 0.0  ;;  %v947_v62 = vsel %vm941_vm5, %v944_v23, 0.0  ;;  %v3780_v23 = vld [vmem:[%s3527_s13 + $0x88] sm:$0xff]  ;;  %vm1020_vm4 = vcmp.eq.s32.totalorder %v3594_v49, %v3432_v20  ;;  %vm1033_vm5 = vcmp.eq.s32.totalorder %v3582_v35, %v3392_v1 }
 0x33c   : > { %v948_v47 = vadd.f32 %v946_v17, %v935_v16  ;;  %v949_v14 = vadd.f32 %v947_v62, %v936_v55  ;;  %1259 = vmatpush.bf16.msra.mxu3 %v3780_v23  ;;  %v987_v17 = vsel %vm981_vm2, %v3705_v32, 0.0  ;;  %v1013_v32 = vsel %vm1007_vm14, %v3723_v34, 0.0 }
 0x33d   : > { %vm1073_vm2 = vcmp.eq.s32.totalorder %v3594_v49, %v3419_v7 }
 0x33e   : > { %v961_v57 = vadd.f32 %v959_v31, %v948_v47  ;;  %v962_v18 = vadd.f32 %v960_v0, %v949_v14 }
 0x340   : > { %v3751_v15 = vpop.permute.xlu2 %1049  ;;  %1260 = vmatpush.bf16.msra.mxu3 %v3798_v2 }
 0x343   : > { %v971_v50 = vpop.permute.xlu1 %970 }
 0x344   : > { %v973_v59 = vsel %vm966_vm6, %v971_v50, 0.0  ;;  %v974_v54 = vsel %vm967_vm7, %v971_v50, 0.0  ;;  %v3801_v50 = vld [vmem:[%s3527_s13 + $0xc0] sm:$0xff]  ;;  %1733 = vmatpush.bf16.msrb.mxu3 %v3534_v44  ;;  %vm1034_vm6 = vcmp.eq.s32.totalorder %v3594_v49, %v3392_v1  ;;  %vm1046_vm7 = vcmp.eq.s32.totalorder %v3582_v35, %v3434_v4 }
 0x345   : > { %v975_v26 = vadd.f32 %v973_v59, %v961_v57  ;;  %v976_v5 = vadd.f32 %v974_v54, %v962_v18  ;;  %1273 = vmatpush.bf16.msrb.mxu0 %v3801_v50  ;;  %v3821_v18 = vpop.permute.xlu0 %1110 }
 0x347   : > { %v988_v55 = vadd.f32 %v986_v45, %v975_v26  ;;  %v989_v47 = vadd.f32 %v987_v17, %v976_v5 }
 0x348   : > { %1734 = vmatpush.bf16.msrb.mxu3 %v3546_v13 }
 0x349   : > { %v1063_v53 = vpop.permute.xlu2 %1062  ;;  %1856 = vmatpush.bf16.msra.mxu0 %v3708_v41 }
 0x34a   : > { %v1065_v4 = vsel %vm1059_vm9, %v1063_v53, 0.0  ;;  %vm4531_vm9 = vcmask 48160  }
 0x34c   : > { %v997_v52 = vpop.permute.xlu1 %996  ;;  %1735 = vmatpush.bf16.msrb.mxu3 %v3554_v6 }
 0x34d   : > { %v999_v62 = vsel %vm993_vm11, %v997_v52, 0.0  ;;  %v1000_v39 = vsel %vm994_vm12, %v997_v52, 0.0  ;;  %1857 = vmatpush.bf16.msra.mxu0 %v3716_v46  ;;  %vm1060_vm11 = vcmp.eq.s32.totalorder %v3594_v49, %v3407_v29 }
 0x34e   : > { %v1001_v14 = vadd.f32 %v999_v62, %v988_v55  ;;  %v1002_v31 = vadd.f32 %v1000_v39, %v989_v47  ;;  %v1052_v62 = vsel %vm1046_vm7, %v3751_v15, 0.0  ;;  %v1053_v39 = vsel %vm1047_vm8, %v3751_v15, 0.0 }
 0x350   : > { %v1014_v54 = vadd.f32 %v1012_v33, %v1001_v14  ;;  %v1015_v57 = vadd.f32 %v1013_v32, %v1002_v31  ;;  %1736 = vmatpush.bf16.msrb.mxu3 %v3567_v12  ;;  %v1066_v14 = vsel %vm1060_vm11, %v1063_v53, 0.0  ;;  %v1080_v53 = vsel %vm1073_vm2, %v3787_v24, 0.0 }
 0x351   : > { %v3819_v59 = vpop.permute.xlu2 %1115  ;;  %1858 = vmatpush.bf16.msra.mxu0 %v3726_v56 }
 0x354   : > { %1737 = vmatpush.bf16.msrb.mxu3 %v3577_v28 }
 0x355   : > { %v1024_v16 = vpop.permute.xlu1 %1023  ;;  %1859 = vmatpush.bf16.msra.mxu0 %v3734_v40 }
 0x356   : > { %v1026_v52 = vsel %vm1019_vm3, %v1024_v16, 0.0  ;;  %v1027_v0 = vsel %vm1020_vm4, %v1024_v16, 0.0 }
 0x357   : > { %v1028_v36 = vadd.f32 %v1026_v52, %v1014_v54  ;;  %v1029_v26 = vadd.f32 %v1027_v0, %v1015_v57  ;;  %v4556_v0 = vld [vmem:[#allocation13_spill] sm:$0xff] }
 0x358   : > { %vm1086_vm13 = vcmp.eq.s32.totalorder %v3582_v35, %v4556_v0  ;;  %vm1087_vm14 = vcmp.eq.s32.totalorder %v3594_v49, %v4556_v0 }
 0x359   : > { %v3837_v55 = vpop.permute.xlu2 %1287  ;;  %1860 = vmatpush.bf16.msra.mxu0 %v3756_v19 }
 0x35d   : > { %1861 = vmatpush.bf16.msra.mxu0 %v3764_v58 }
 0x35e   : > { %v1037_v20 = vpop.permute.xlu1 %1036 }
 0x35f   : > { %v1039_v34 = vsel %vm1033_vm5, %v1037_v20, 0.0  ;;  %v1040_v5 = vsel %vm1034_vm6, %v1037_v20, 0.0  ;;  %v4557_v20 = vld [vmem:[#allocation15_spill] sm:$0xff]  ;;  %vm1112_vm5 = vcmp.eq.s32.totalorder %v3582_v35, %v3821_v18  ;;  %vm1113_vm6 = vcmp.eq.s32.totalorder %v3594_v49, %v3821_v18 }
 0x360   : > { %v1041_v45 = vadd.f32 %v1039_v34, %v1028_v36  ;;  %v1042_v17 = vadd.f32 %v1040_v5, %v1029_v26  ;;  %1738 = vmatpush.bf16.msrb.mxu3 %v4557_v20  ;;  %v4558_v5 = vld [vmem:[#allocation14_spill] sm:$0xff]  ;;  %v2755_v18 = vld [vmem:[%s4498_s3 + $0x30] sm:$0xff] }
 0x361   : > { %vm1099_vm3 = vcmp.eq.s32.totalorder %v3582_v35, %v4558_v5  ;;  %vm1100_vm4 = vcmp.eq.s32.totalorder %v3594_v49, %v4558_v5  ;;  %1862 = vmatpush.bf16.msra.mxu0 %v3780_v23 }
 0x362   : > { %v1054_v1 = vadd.f32 %v1052_v62, %v1041_v45  ;;  %v1055_v16 = vadd.f32 %v1053_v39, %v1042_v17 }
 0x364   : > { %v1067_v33 = vadd.f32 %v1065_v4, %v1054_v1  ;;  %v1068_v32 = vadd.f32 %v1066_v14, %v1055_v16  ;;  %v4559_v16 = vld [vmem:[#allocation16_spill] sm:$0xff]  ;;  %v1119_v4 = vsel %vm1113_vm6, %v3819_v59, 0.0  ;;  %vm4529_vm6 = vcmask 15360  }
 0x365   : > { %v1284_v47 = vpop.xlane.xlu0 %1283  ;;  %1739 = vmatpush.bf16.msrb.mxu3 %v4559_v16  ;;  %1863 = vmatpush.bf16.msra.mxu0 %v3798_v2 }
 0x366   : > { %vm1286_vm12 = vcmp.eq.f32.partialorder %v3426_v61, %v1284_v47  ;;  %v1090_v15 = vpop.permute.xlu1 %1089  ;;  %v1079_v61 = vsel %vm1072_vm15, %v3787_v24, 0.0  ;;  %v1082_v57 = vadd.f32 %v1080_v53, %v1068_v32  ;;  %v1118_v47 = vsel %vm1112_vm5, %v3819_v59, 0.0  ;;  %v2756_v59 = vld [vmem:[%s4498_s3 + $0x38] sm:$0xff] }
 0x367   : > { %v1290_v31 = vsel %vm1286_vm12, %v3837_v55, 4  ;;  %v1081_v54 = vadd.f32 %v1079_v61, %v1067_v33  ;;  %v1092_v7 = vsel %vm1086_vm13, %v1090_v15, 0.0  ;;  %v1093_v26 = vsel %vm1087_vm14, %v1090_v15, 0.0  ;;  %1391 = vmatpush.msrb.mxu1 %v2756_v59 }
 0x368   : > { %v3848_v52 = vsel %vm320_vm1, %v1290_v31, 2147483647  ;;  %v1095_v24 = vadd.f32 %v1093_v26, %v1082_v57  ;;  %v3109_v26 = vmov 0.0  }
 0x369   : > { %v1308_v29 = vshra.s32 %v3848_v52, 16  ;;  %v1094_v34 = vadd.f32 %v1092_v7, %v1081_v54  ;;  %1740 = vmatpush.bf16.msrb.mxu3 %v3624_v10  ;;  %1392 = vmatpush.msrb.mxu1 %v2755_v18 }
 0x36b   : > { %v3863_v36 = vcvt.s32.f32 %v1308_v29 }
 0x36d   : > { %1311 = vmin.xlane.f32.xlu1 %v3863_v36 }
 0x36f   : > { %v1103_v45 = vpop.permute.xlu1 %1102 }
 0x370   : > { %v1105_v17 = vsel %vm1099_vm3, %v1103_v45, 0.0  ;;  %v1106_v62 = vsel %vm1100_vm4, %v1103_v45, 0.0 }
 0x371   : > { %v1107_v39 = vadd.f32 %v1105_v17, %v1094_v34  ;;  %v1108_v1 = vadd.f32 %v1106_v62, %v1095_v24  ;;  %v4560_v62 = vld [vmem:[#allocation10_spill] sm:$0xff] }
 0x373   : > { %v1120_v14 = vadd.f32 %v1118_v47, %v1107_v39  ;;  %v1121_v15 = vadd.f32 %v1119_v4, %v1108_v1  ;;  %v4561_v1 = vld [vmem:[#allocation8_spill] sm:$0xff] }
 0x375   : > { %v1155_v31 = vpack.c.bf16 %v1120_v14, %v1120_v14  ;;  %v1156_v33 = vpack.c.bf16 %v1121_v15, %v1121_v15 }
 0x377   : > { %1261 = vmatmul.bf16.vlgmr.msra.gmra.mxu3 %v1155_v31  ;;  %1274 = vmatmul.bf16.vlgmr.msrb.gmra.mxu0 %v1156_v33 }
 0x378   : > { %2251 = vmatpush.bf16.msra.mxu3 %v3531_v38  ;;  %2264 = vmatpush.bf16.msrb.mxu0 %v3534_v44  ;;  %v2754_v38 = vld [vmem:[%s4498_s3 + $0x28] sm:$0xff]  ;;  %v2753_v44 = vld [vmem:[%s4498_s3 + $0x20] sm:$0xff] }
 0x379   : > { %1393 = vmatpush.msrb.mxu1 %v2754_v38 }
 0x37b   : > { %1394 = vmatpush.msrb.mxu1 %v2753_v44 }
 0x37c   : > { %2252 = vmatpush.bf16.msra.mxu3 %v3543_v60  ;;  %2265 = vmatpush.bf16.msrb.mxu0 %v3546_v13 }
 0x37d   : > { %1869 = vmatpush.bf16.msra.mxu1 %v3711_v37 }
 0x380   : > { %2253 = vmatpush.bf16.msra.mxu3 %v3551_v25  ;;  %2266 = vmatpush.bf16.msrb.mxu0 %v3554_v6 }
 0x381   : > { %1870 = vmatpush.bf16.msra.mxu1 %v3719_v42 }
 0x384   : > { %2254 = vmatpush.bf16.msra.mxu3 %v3564_v9  ;;  %2267 = vmatpush.bf16.msrb.mxu0 %v3567_v12 }
 0x385   : > { %1871 = vmatpush.bf16.msra.mxu1 %v3729_v51 }
 0x388   : > { %2255 = vmatpush.bf16.msra.mxu3 %v3574_v21  ;;  %2268 = vmatpush.bf16.msrb.mxu0 %v3577_v28 }
 0x389   : > { %1872 = vmatpush.bf16.msra.mxu1 %v3737_v48 }
 0x38c   : > { %2256 = vmatpush.bf16.msra.mxu3 %v3587_v43  ;;  %2269 = vmatpush.bf16.msrb.mxu0 %v4557_v20  ;;  %v1307_v43 = vand.u32 65535, %v3848_v52 }
 0x38d   : > { %1873 = vmatpush.bf16.msra.mxu1 %v3759_v63 }
 0x390   : > { %2257 = vmatpush.bf16.msra.mxu3 %v3602_v8  ;;  %2270 = vmatpush.bf16.msrb.mxu0 %v4559_v16 }
 0x391   : > { %1874 = vmatpush.bf16.msra.mxu1 %v3767_v3 }
 0x394   : > { %2258 = vmatpush.bf16.msra.mxu3 %v3618_v27  ;;  %2271 = vmatpush.bf16.msrb.mxu0 %v3624_v10  ;;  %v1309_v27 = vcvt.s32.f32 %v1307_v43 }
 0x395   : > { %1875 = vmatpush.bf16.msra.mxu1 %v3783_v11 }
 0x399   : > { %1876 = vmatpush.bf16.msra.mxu1 %v3801_v50 }
 0x39a   : > { %v1281_v60 = vpop.xlane.xlu1 %1280 }
 0x39b   : > { %vm1285_vm7 = vcmp.eq.f32.partialorder %v3401_v22, %v1281_v60 }
 0x39c   : > { %v1289_v13 = vsel %vm1285_vm7, %v3837_v55, 4 }
 0x39d   : > { %v1291_v25 = vsel %vm320_vm1, %v1289_v13, 2147483647 }
 0x39e   : > { %v1293_v6 = vshra.s32 %v1291_v25, 16 }
 0x3a0   : > { %v1295_v9 = vcvt.s32.f32 %v1293_v6 }
 0x3a2   : > { %1296 = vmin.xlane.f32.xlu2 %v1295_v9 }
 0x3a3   : > { %v893_v12 = vpop.f32.mrf.mxu1 }
 0x3a9   : > { %v906_v10 = vpop.f32.mrf.mxu2 }
 0x3aa   : > { %v907_v21 = vadd.f32 %v906_v10, %v893_v12 }
 0x3ab   : > { %v895_v28 = vpop.f32.mrf.mxu1 }
 0x3ac   : > { %2758 = vmatmul.msk.f32.vlgmr.msrb.gmra.mxu1 %vm4530_vm0, %v907_v21 }
 0x3ad   : > { %2335 = vmatpush.bf16.msrb.mxu1 %v3708_v41 }
 0x3b1   : > { %v908_v22 = vpop.f32.mrf.mxu2  ;;  %2336 = vmatpush.bf16.msrb.mxu1 %v3716_v46 }
 0x3b5   : > { %2337 = vmatpush.bf16.msrb.mxu1 %v3726_v56 }
 0x3b9   : > { %2338 = vmatpush.bf16.msrb.mxu1 %v3734_v40  ;;  %v1292_v40 = vand.u32 65535, %v1291_v25 }
 0x3bd   : > { %2339 = vmatpush.bf16.msrb.mxu1 %v3756_v19  ;;  %v1294_v19 = vcvt.s32.f32 %v1292_v40 }
 0x3c1   : > { %2340 = vmatpush.bf16.msrb.mxu1 %v3764_v58  ;;  %v3004_v58 = vld [vmem:[%s4499_s4 + $0x1] ss:$0 sm:$0xff] }
 0x3c5   : > { %2341 = vmatpush.bf16.msrb.mxu1 %v3780_v23 }
 0x3c9   : > { %2342 = vmatpush.bf16.msrb.mxu1 %v3798_v2 }
 0x3e0   : > { %v1312_v8 = vpop.xlane.xlu1 %1311 }
 0x3e1   : > { %vm1313_vm1 = vcmp.eq.f32.partialorder %v3863_v36, %v1312_v8  ;;  %v1318_v52 = vcvt.f32.s32 %v1312_v8 }
 0x3e2   : > { %v1314_v41 = vsel %vm1313_vm1, %v1309_v27, inf  ;;  %v4562_v27 = vld [vmem:[#allocation12_spill] sm:$0xff] }
 0x3e3   : > { %1315 = vmin.xlane.f32.xlu0 %v1314_v41  ;;  %v1319_v61 = vshll.u32 %v1318_v52, 16 }
 0x3f4   : > { %v1275_v37 = vpop.f32.mrf.mxu0 }
 0x3fa   : > { %v1262_v46 = vpop.f32.mrf.mxu3 }
 0x3fb   : > { %v1276_v42 = vadd.f32 %v1275_v37, %v1262_v46  ;;  %v4563_v37 = vld [vmem:[#allocation9_spill] sm:$0xff] }
 0x3fc   : > { %v1277_v56 = vpop.f32.mrf.mxu0 }
 0x3fd   : > { %2759 = vmatmul.msk.f32.gmra.mxu1 %vm4530_vm0, %v1276_v42 }
 0x402   : > { %v1264_v51 = vpop.f32.mrf.mxu3 }
 0x415   : > { %v1297_v48 = vpop.xlane.xlu2 %1296 }
 0x416   : > { %vm1298_vm8 = vcmp.eq.f32.partialorder %v1295_v9, %v1297_v48  ;;  %v1303_v53 = vcvt.f32.s32 %v1297_v48 }
 0x417   : > { %v1299_v63 = vsel %vm1298_vm8, %v1294_v19, inf }
 0x418   : > { %1300 = vmin.xlane.f32.xlu1 %v1299_v63  ;;  %v1304_v57 = vshll.u32 %v1303_v53, 16 }
 0x429   : > { %v1396_v3 = vpop.f32.mrf.mxu1 }
 0x42a   : > { %v3936_v23 = vadd.f32 %v3004_v58, %v1396_v3 }
 0x42c   : > { %v1403_v11 = vsel %vm4531_vm9, %v3936_v23, -inf }
 0x42d   : > { %1404 = vmax.xlane.f32.xlu2 %v1403_v11 }
 0x456   : > { %v1316_v32 = vpop.xlane.xlu0 %1315 }
 0x457   : > { %v1317_v29 = vcvt.f32.s32 %v1316_v32 }
 0x459   : > { %v1320_v0 = vadd.s32 %v1319_v61, %v1317_v29 }
 0x45b   : > { %vm1322_vm11 = vcmp.eq.s32.totalorder %v3582_v35, %v1320_v0 }
 0x45c   : > { %v2752_v34 = vsel %vm1322_vm11, 1.0, %v3109_v26 }
 0x45d   : > { %v1328_v47 = vmul.f32 %v2752_v34, %v4560_v62 }
 0x45f   : > { %v1332_v14 = vsel %vm341_vm10, %v1328_v47, 0.0 }
 0x47a   : > { %v1399_v2 = vpop.f32.mrf.mxu1 }
 0x47b   : > { %v3940_v50 = vadd.f32 %v3004_v58, %v1399_v2 }
 0x47d   : > { %v1406_v55 = vsel %vm4531_vm9, %v3940_v50, -inf }
 0x47e   : > { %1407 = vmax.xlane.f32.xlu0 %v1406_v55  ;;  %v4564_v55 = vld [vmem:[#allocation7_spill] sm:$0xff] }
 0x48b   : > { %v1301_v54 = vpop.xlane.xlu1 %1300 }
 0x48c   : > { %v1302_v36 = vcvt.f32.s32 %v1301_v54 }
 0x48e   : > { %v1305_v7 = vadd.s32 %v1304_v57, %v1302_v36  ;;  %v4565_v57 = vmov 0  }
 0x490   : > { %vm1321_vm12 = vcmp.eq.s32.totalorder %v3582_v35, %v1305_v7 }
 0x491   : > { %v2751_v20 = vsel %vm1321_vm12, 1.0, %v3109_v26 }
 0x492   : > { %v2965_v24 = vpack.i.bf16 %v2752_v34, %v2751_v20  ;;  %v1327_v4 = vmul.f32 %v2751_v20, %v4561_v1 }
 0x494   : > { %2966 = vrot.lane.b32.xlu1 %v2965_v24, %s3110_s10  ;;  %v1329_v15 = vsel %vm341_vm10, %v1327_v4, 0.0 }
 0x4a0   : > { %v1405_v31 = vpop.xlane.xlu2 %1404 }
 0x4a1   : > { %v1409_v18 = vsub.f32 %v3936_v23, %v1405_v31 }
 0x4a3   : > { %v1411_v38 = vmul.f32 1.442695, %v1409_v18 }
 0x4a5   : > { %3014 = vpow2.f32 %v1411_v38 }
 0x4ab   : > { %v3959_v44 = vpop.eup %3014 }
 0x4f1   : > { %v1408_v25 = vpop.xlane.xlu0 %1407 }
 0x4f2   : > { %v1410_v6 = vsub.f32 %v3940_v50, %v1408_v25 }
 0x4f4   : > { %v1413_v9 = vmul.f32 1.442695, %v1410_v6 }
 0x4f6   : > { %3016 = vpow2.f32 %v1413_v9 }
 0x4fc   : > { %v3965_v12 = vpop.eup %3016 }
 0x506   : > { %v2967_v5 = vpop.permute.xlu1 %2966 }
 0x507   : > { %v2969_v45 = vunpack.i.h.bf16 %v2967_v5  ;;  %v2968_v17 = vunpack.i.l.bf16 %v2967_v5 }
 0x509   : > { %v1346_v39 = vmul.f32 %v2969_v45, %v4560_v62  ;;  %v1345_v16 = vmul.f32 %v2968_v17, %v4561_v1  ;;  %v4566_v17 = vld [vmem:[#allocation11_spill] sm:$0xff] }
 0x50b   : > { %1351 = vrot.lane.b32.xlu1 %v1346_v39, %s3104_s7  ;;  %1349 = vrot.lane.b32.xlu2 %v1345_v16, %s3104_s7 }
 0x534   : > { %1333 = vadd.xlane.f32.xlu2 %v1332_v14 }
 0x535   : > { %1330 = vadd.xlane.f32.xlu1 %v1329_v15 }
 0x565   : > { %v1350_v33 = vpop.permute.xlu2 %1349 }
 0x566   : > { %v1355_v59 = vsel %vm341_vm10, %v1350_v33, 0.0 }
 0x567   : > { %1356 = vadd.xlane.f32.xlu0 %v1355_v59 }
 0x57b   : > { %1417 = vrot.lane.b32.xlu0 %v3959_v44, %s3104_s7 }
 0x57d   : > { %v1352_v60 = vpop.permute.xlu1 %1351 }
 0x57e   : > { %v1358_v13 = vsel %vm341_vm10, %v1352_v60, 0.0 }
 0x57f   : > { %1359 = vadd.xlane.f32.xlu2 %v1358_v13 }
 0x597   : > { %1419 = vrot.lane.b32.xlu2 %v3965_v12, %s3104_s7 }
 0x5a7   : > { %v3969_v10 = vpop.xlane.xlu2 %1333 }
 0x5a8   : > { %v1435_v21 = vadd.f32 %v3940_v50, %v3969_v10  ;;  %v3973_v28 = vpop.xlane.xlu1 %1330 }
 0x5a9   : > { %v1434_v22 = vadd.f32 %v3936_v23, %v3973_v28 }
 0x5aa   : > { %v1439_v43 = vmul.f32 0.00625, %v1435_v21 }
 0x5ab   : > { %v1438_v8 = vmul.f32 0.00625, %v1434_v22 }
 0x5ac   : > { %v1441_v41 = vadd.f32 %v1439_v43, %v4562_v27 }
 0x5ad   : > { %v1440_v46 = vadd.f32 %v1438_v8, %v4563_v37 }
 0x5ae   : > { %v1447_v42 = vmul.f32 16.0, %v1441_v41 }
 0x5af   : > { %v1446_v56 = vmul.f32 16.0, %v1440_v46 }
 0x5b0   : > { %v3979_v51 = vadd.f32 -0.5, %v1447_v42 }
 0x5b1   : > { %v3981_v40 = vadd.f32 -0.5, %v1446_v56 }
 0x5b2   : > { %v1455_v48 = vfloor.f32 %v3979_v51 }
 0x5b3   : > { %v1454_v19 = vfloor.f32 %v3981_v40 }
 0x5b4   : > { %v3988_v63 = vsub.f32 %v3979_v51, %v1455_v48 }
 0x5b5   : > { %v3993_v58 = vsub.f32 %v3981_v40, %v1454_v19  ;;  %v2837_v9 = vcvt.f32.s32 %v1454_v19 }
 0x5b6   : > { %v1471_v19 = vsub.f32 1.0, %v3988_v63 }
 0x5b7   : > { %v1470_v21 = vsub.f32 1.0, %v3993_v58  ;;  %v1466_v27 = vadd.s32 1, %v2837_v9  ;;  %v1540_v41 = vmul.u32 16, %v2837_v9  ;;  %vm1498_vm7 = vcmp.ge.s32.totalorder %v2837_v9, 0 }
 0x5b8   : > { %vm1500_vm1 = vcmp.lt.s32.totalorder %v2837_v9, 16 }
 0x5b9   : > { %v1596_v37 = vmul.u32 16, %v1466_v27  ;;  %vm1582_vm8 = vcmp.ge.s32.totalorder %v1466_v27, 0  ;;  %vm1584_vm11 = vcmp.lt.s32.totalorder %v1466_v27, 16  ;;  %vm4046_vm12 = vmand %vm1498_vm7, %vm1500_vm1 }
 0x5da   : > { %v3995_v3 = vpop.xlane.xlu0 %1356 }
 0x5db   : > { %v1436_v11 = vadd.f32 %v3936_v23, %v3995_v3 }
 0x5dd   : > { %v1442_v2 = vmul.f32 0.00625, %v1436_v11 }
 0x5df   : > { %v1444_v32 = vadd.f32 %v1442_v2, %v4564_v55 }
 0x5e1   : > { %v1450_v52 = vmul.f32 16.0, %v1444_v32 }
 0x5e3   : > { %v2762_v29 = vadd.f32 -0.5, %v1450_v52 }
 0x5e5   : > { %v1456_v61 = vfloor.f32 %v2762_v29 }
 0x5e7   : > { %v1460_v53 = vsub.f32 %v2762_v29, %v1456_v61  ;;  %v2841_v0 = vcvt.f32.s32 %v1456_v61 }
 0x5e9   : > { %1486 = vrot.lane.b32.xlu2 %v1460_v53, %s3111_s11  ;;  %vm1504_vm10 = vcmp.ge.s32.totalorder %v2841_v0, 0  ;;  %v1472_v54 = vsub.f32 1.0, %v1460_v53  ;;  %v1468_v7 = vadd.s32 1, %v2841_v0  ;;  %vm1516_vm2 = vcmp.lt.s32.totalorder %v2841_v0, 16 }
 0x5ea   : > { %v1506_v36 = vsel %vm1504_vm10, 1, %v4565_v57  ;;  %v1518_v24 = vsel %vm1516_vm2, 1, %v4565_v57  ;;  %vm4052_vm10 = vmand %vm1582_vm8, %vm1584_vm11 }
 0x5eb   : > { %1508 = vrot.lane.b32.xlu1 %v1506_v36, %s3111_s11  ;;  %1476 = vrot.lane.b32.xlu0 %v1472_v54, %s3111_s11  ;;  %vm1560_vm15 = vcmp.lt.s32.totalorder %v1468_v7, 16  ;;  %vm1548_vm13 = vcmp.ge.s32.totalorder %v1468_v7, 0 }
 0x5ec   : > { %v1562_v34 = vsel %vm1560_vm15, 1, %v4565_v57  ;;  %v1550_v1 = vsel %vm1548_vm13, 1, %v4565_v57 }
 0x5ed   : > { %v1418_v60 = vpop.permute.xlu0 %1417 }
 0x5ee   : > { %v1424_v13 = vsel %vm4529_vm6, %v1418_v60, 0.0 }
 0x5f1   : > { %1542 = vrot.lane.b32.xlu2 %v2841_v0, %s3111_s11  ;;  %v2839_v0 = vcvt.f32.s32 %v1455_v48 }
 0x5f2   : > { %v4005_v20 = vpop.xlane.xlu2 %1359 }
 0x5f3   : > { %v1437_v5 = vadd.f32 %v3940_v50, %v4005_v20  ;;  %1564 = vrot.lane.b32.xlu1 %v1562_v34, %s3111_s11  ;;  %1520 = vrot.lane.b32.xlu0 %v1518_v24, %s3111_s11  ;;  %v1541_v51 = vmul.u32 16, %v2839_v0 }
 0x5f5   : > { %v1443_v45 = vmul.f32 0.00625, %v1437_v5  ;;  %v1467_v5 = vadd.s32 1, %v2839_v0 }
 0x5f7   : > { %v1445_v62 = vadd.f32 %v1443_v45, %v4566_v17  ;;  %v1597_v17 = vmul.u32 16, %v1467_v5 }
 0x5f9   : > { %v1451_v39 = vmul.f32 16.0, %v1445_v62  ;;  %1576 = vrot.lane.b32.xlu2 %v1468_v7, %s3111_s11 }
 0x5fa   : > { %v1420_v25 = vpop.permute.xlu2 %1419 }
 0x5fb   : > { %v2763_v16 = vadd.f32 -0.5, %v1451_v39  ;;  %1552 = vrot.lane.b32.xlu0 %v1550_v1, %s3111_s11  ;;  %v1427_v6 = vsel %vm4529_vm6, %v1420_v25, 0.0  ;;  %vm1585_vm6 = vcmp.lt.s32.totalorder %v1467_v5, 16 }
 0x5fd   : > { %v1457_v47 = vfloor.f32 %v2763_v16 }
 0x5ff   : > { %v1461_v4 = vsub.f32 %v2763_v16, %v1457_v47  ;;  %v2843_v14 = vcvt.f32.s32 %v1457_v47 }
 0x601   : > { %1488 = vrot.lane.b32.xlu2 %v1461_v4, %s3111_s11  ;;  %vm1505_vm14 = vcmp.ge.s32.totalorder %v2843_v14, 0  ;;  %v1473_v15 = vsub.f32 1.0, %v1461_v4  ;;  %v1469_v33 = vadd.s32 1, %v2843_v14  ;;  %vm1517_vm4 = vcmp.lt.s32.totalorder %v2843_v14, 16 }
 0x602   : > { %v1507_v31 = vsel %vm1505_vm14, 1, %v4565_v57  ;;  %v1519_v18 = vsel %vm1517_vm4, 1, %v4565_v57 }
 0x603   : > { %1510 = vrot.lane.b32.xlu1 %v1507_v31, %s3111_s11  ;;  %1478 = vrot.lane.b32.xlu0 %v1473_v15, %s3111_s11  ;;  %vm1561_vm3 = vcmp.lt.s32.totalorder %v1469_v33, 16  ;;  %vm1549_vm5 = vcmp.ge.s32.totalorder %v1469_v33, 0 }
 0x604   : > { %v1563_v59 = vsel %vm1561_vm3, 1, %v4565_v57  ;;  %v1551_v38 = vsel %vm1549_vm5, 1, %v4565_v57 }
 0x609   : > { %1544 = vrot.lane.b32.xlu2 %v2843_v14, %s3111_s11 }
 0x60b   : > { %1566 = vrot.lane.b32.xlu1 %v1563_v59, %s3111_s11  ;;  %1522 = vrot.lane.b32.xlu0 %v1519_v18, %s3111_s11 }
 0x611   : > { %1578 = vrot.lane.b32.xlu2 %v1469_v33, %s3111_s11 }
 0x613   : > { %1554 = vrot.lane.b32.xlu0 %v1551_v38, %s3111_s11 }
 0x635   : > { %1425 = vadd.xlane.f32.xlu1 %v1424_v13 }
 0x63d   : > { %1428 = vadd.xlane.f32.xlu0 %v1427_v6 }
 0x643   : > { %v1487_v22 = vpop.permute.xlu2 %1486 }
 0x644   : > { %v4034_v43 = vmul.f32 %v1487_v22, %v1470_v21  ;;  %v4037_v8 = vmul.f32 %v1487_v22, %v3993_v58 }
 0x64b   : > { %v1543_v46 = vpop.permute.xlu2 %1542 }
 0x64c   : > { %v1546_v42 = vadd.s32 %v1543_v46, %v1540_v41  ;;  %v1598_v56 = vadd.s32 %v1596_v37, %v1543_v46 }
 0x64e   : > { %1679 = vperm.xlu2 %2972, %v1598_v56   ;;  %1625 = vperm.xlu1 %2971, %v1546_v42  }
 0x651   : > { %1611 = vperm.xlu0 %2970, %v1546_v42  }
 0x653   : > { %v1577_v11 = vpop.permute.xlu2 %1576 }
 0x654   : > { %v1580_v40 = vadd.s32 %v1577_v11, %v1540_v41  ;;  %v1608_v52 = vadd.s32 %v1596_v37, %v1577_v11 }
 0x656   : > { %2973 = vset.pattern.permute.xlu2 %v4565_v57  ;;  %1652 = vperm.xlu1 %2971, %v1580_v40  }
 0x657   : > { %1638 = vperm.xlu2 %2973, %v1580_v40  }
 0x659   : > { %1665 = vperm.xlu0 %2970, %v1598_v56  }
 0x65b   : > { %v1489_v2 = vpop.permute.xlu2 %1488 }
 0x65c   : > { %v4041_v55 = vmul.f32 %v1489_v2, %v1471_v19  ;;  %v4044_v32 = vmul.f32 %v1489_v2, %v3988_v63 }
 0x65d   : > { %v1509_v61 = vpop.permute.xlu1 %1508  ;;  %v1477_v53 = vpop.permute.xlu0 %1476 }
 0x65e   : > { %vm1512_vm15 = vcmp.ne.s32.totalorder %v1509_v61, 0  ;;  %v4056_v36 = vmul.f32 %v1477_v53, %v1470_v21  ;;  %v4059_v7 = vmul.f32 %v1477_v53, %v3993_v58  ;;  %2974 = vset.pattern.permute.xlu1 %v4565_v57 }
 0x65f   : > { %vm1514_vm2 = vmand %vm4046_vm12, %vm1512_vm15  ;;  %1692 = vperm.xlu1 %2974, %v1608_v52  }
 0x660   : > { %vm1588_vm13 = vmand %vm4052_vm10, %vm1512_vm15 }
 0x663   : > { %v1545_v48 = vpop.permute.xlu2 %1544 }
 0x664   : > { %v1547_v34 = vadd.s32 %v1545_v48, %v1541_v51  ;;  %v1599_v39 = vadd.s32 %v1597_v17, %v1545_v48 }
 0x665   : > { %v1521_v24 = vpop.permute.xlu0 %1520  ;;  %v1565_v1 = vpop.permute.xlu1 %1564 }
 0x666   : > { %vm1524_vm14 = vcmp.ne.s32.totalorder %v1521_v24, 0  ;;  %1747 = vperm.xlu0 %2970, %v1547_v34   ;;  %vm1568_vm7 = vcmp.ne.s32.totalorder %v1565_v1, 0 }
 0x667   : > { %vm4066_vm3 = vmand %vm1514_vm2, %vm1524_vm14  ;;  %2975 = vset.pattern.permute.xlu1 %v4546_v30  ;;  %vm1499_vm2 = vcmp.ge.s32.totalorder %v2839_v0, 0 }
 0x668   : > { %vm4071_vm4 = vmand %vm1588_vm13, %vm1524_vm14  ;;  %1706 = vperm.xlu1 %2975, %v1608_v52   ;;  %vm1501_vm13 = vcmp.lt.s32.totalorder %v2839_v0, 16  ;;  %vm1583_vm14 = vcmp.ge.s32.totalorder %v1467_v5, 0 }
 0x669   : > { %vm4089_vm0 = vmand %vm1499_vm2, %vm1501_vm13 }
 0x66b   : > { %v1579_v62 = vpop.permute.xlu2 %1578 }
 0x66c   : > { %v1581_v16 = vadd.s32 %v1579_v62, %v1541_v51  ;;  %v4075_v47 = vadd.s32 %v1597_v17, %v1579_v62 }
 0x66d   : > { %v1553_v4 = vpop.permute.xlu0 %1552 }
 0x66e   : > { %vm1556_vm5 = vcmp.ne.s32.totalorder %v1553_v4, 0  ;;  %1774 = vperm.xlu2 %2973, %v1581_v16   ;;  %1801 = vperm.xlu0 %2970, %v1599_v39  }
 0x66f   : > { %vm1558_vm1 = vmand %vm4046_vm12, %vm1556_vm5 }
 0x670   : > { %vm4079_vm8 = vmand %vm1558_vm1, %vm1568_vm7 }
 0x671   : > { %vm1600_vm11 = vmand %vm4052_vm10, %vm1556_vm5 }
 0x672   : > { %vm4085_vm15 = vmand %vm1600_vm11, %vm1568_vm7 }
 0x673   : > { %vm4093_vm12 = vmand %vm1583_vm14, %vm1585_vm6 }
 0x675   : > { %v1511_v33 = vpop.permute.xlu1 %1510  ;;  %v1479_v59 = vpop.permute.xlu0 %1478 }
 0x676   : > { %vm1513_vm1 = vcmp.ne.s32.totalorder %v1511_v33, 0  ;;  %v1483_v38 = vmul.f32 %v1479_v59, %v1471_v19  ;;  %v1495_v60 = vmul.f32 %v1479_v59, %v3988_v63  ;;  %2976 = vset.pattern.permute.xlu2 %v4546_v30 }
 0x677   : > { %vm1515_vm10 = vmand %vm4089_vm0, %vm1513_vm1  ;;  %1815 = vperm.xlu2 %2976, %v1599_v39  }
 0x678   : > { %vm1589_vm5 = vmand %vm4093_vm12, %vm1513_vm1 }
 0x67d   : > { %v1523_v13 = vpop.permute.xlu0 %1522  ;;  %v1567_v63 = vpop.permute.xlu1 %1566 }
 0x67e   : > { %vm1525_vm7 = vcmp.ne.s32.totalorder %v1523_v13, 0  ;;  %vm1569_vm13 = vcmp.ne.s32.totalorder %v1567_v63, 0 }
 0x67f   : > { %vm4103_vm11 = vmand %vm1515_vm10, %vm1525_vm7  ;;  %2977 = vset.pattern.permute.xlu2 %v4565_v57 }
 0x680   : > { %vm4108_vm6 = vmand %vm1589_vm5, %vm1525_vm7 }
 0x685   : > { %v1555_v9 = vpop.permute.xlu0 %1554 }
 0x686   : > { %vm1557_vm2 = vcmp.ne.s32.totalorder %v1555_v9, 0 }
 0x687   : > { %vm1559_vm14 = vmand %vm4089_vm0, %vm1557_vm2  ;;  %vm4591_vm0 = vcmask 48160  }
 0x688   : > { %vm4114_vm1 = vmand %vm1559_vm14, %vm1569_vm13 }
 0x689   : > { %vm1601_vm10 = vmand %vm4093_vm12, %vm1557_vm2 }
 0x68a   : > { %vm4120_vm9 = vmand %vm1601_vm10, %vm1569_vm13 }
 0x6a8   : > { %v1426_v27 = vpop.xlane.xlu1 %1425 }
 0x6a9   : > { %3018 = vrcp.f32 %v1426_v27 }
 0x6af   : > { %v3019_v41 = vpop.eup %3018 }
 0x6b0   : > { %v4125_v37 = vmul.f32 %v3019_v41, %v3959_v44  ;;  %v1429_v46 = vpop.xlane.xlu0 %1428 }
 0x6b1   : > { %3020 = vrcp.f32 %v1429_v46 }
 0x6b2   : > { %1530 = vrot.lane.b32.xlu1 %v4125_v37, %s3104_s7  ;;  %v1882_v17 = vsel %vm4591_vm0, %v4125_v37, -inf }
 0x6b7   : > { %v3021_v42 = vpop.eup %3020 }
 0x6b8   : > { %v4130_v56 = vmul.f32 %v3021_v42, %v3965_v12 }
 0x6ba   : > { %1761 = vperm.xlu1 %2975, %v1547_v34  }
 0x6c0   : > { %v4134_v11 = vpop.permute.xlu1 %1625 }
 0x6c2   : > { %1532 = vrot.lane.b32.xlu1 %v4130_v56, %s3104_s7 }
 0x6c3   : > { %v1612_v39 = vpop.permute.xlu0 %1611 }
 0x6c8   : > { %v4136_v40 = vpop.permute.xlu1 %1652 }
 0x6c9   : > { %vm1654_vm7 = vcmp.eq.s32.totalorder %v3582_v35, %v4136_v40 }
 0x6ca   : > { %1788 = vperm.xlu1 %2975, %v1581_v16  }
 0x6cb   : > { %v1666_v16 = vpop.permute.xlu0 %1665 }
 0x6cc   : > { %vm1668_vm2 = vcmp.eq.s32.totalorder %v3594_v49, %v1666_v16 }
 0x6d1   : > { %v4138_v44 = vpop.permute.xlu1 %1692 }
 0x6d2   : > { %vm1695_vm10 = vcmp.eq.s32.totalorder %v3594_v49, %v4138_v44 }
 0x6d8   : > { %v4193_v4 = vpop.permute.xlu0 %1747 }
 0x6da   : > { %v4140_v19 = vpop.permute.xlu1 %1706 }
 0x6e0   : > { %v4197_v31 = vpop.permute.xlu0 %1801 }
 0x724   : > { %v1531_v2 = vpop.permute.xlu1 %1530 }
 0x725   : > { %v1536_v52 = vmul.f32 %v1531_v2, %v4056_v36  ;;  %v1572_v29 = vmul.f32 %v1531_v2, %v4034_v43  ;;  %v1592_v12 = vmul.f32 %v1531_v2, %v4059_v7  ;;  %v1604_v61 = vmul.f32 %v1531_v2, %v4037_v8 }
 0x727   : > { %v1538_v53 = vsel %vm4066_vm3, %v1536_v52, 0.0  ;;  %v1574_v0 = vsel %vm4079_vm8, %v1572_v29, 0.0  ;;  %v1594_v54 = vsel %vm4071_vm4, %v1592_v12, 0.0  ;;  %v1606_v51 = vsel %vm4085_vm15, %v1604_v61, 0.0 }
 0x728   : > { %1617 = vperm.xlu2 %2977, %v1538_v53   ;;  %1644 = vperm.xlu0 %2970, %v1574_v0   ;;  %vm1627_vm3 = vcmp.eq.s32.totalorder %v3582_v35, %v4134_v11  ;;  %vm1628_vm4 = vcmp.eq.s32.totalorder %v3594_v49, %v4134_v11  ;;  %vm1613_vm8 = vcmp.eq.s32.totalorder %v3582_v35, %v1612_v39 }
 0x729   : > { %1630 = vperm.xlu1 %2975, %v1538_v53   ;;  %vm1614_vm15 = vcmp.eq.s32.totalorder %v3594_v49, %v1612_v39 }
 0x72c   : > { %v4154_v43 = vpop.permute.xlu1 %1761 }
 0x730   : > { %2978 = vset.pattern.permute.xlu2 %v4546_v30  ;;  %2980 = vset.pattern.permute.xlu0 %v4546_v30 }
 0x731   : > { %2979 = vset.pattern.permute.xlu1 %v4565_v57  ;;  %1657 = vperm.xlu2 %2978, %v1574_v0  }
 0x732   : > { %1684 = vperm.xlu0 %2980, %v1594_v54   ;;  %1671 = vperm.xlu1 %2979, %v1594_v54  }
 0x734   : > { %v1533_v8 = vpop.permute.xlu1 %1532 }
 0x735   : > { %v1573_v36 = vmul.f32 %v1533_v8, %v4041_v55  ;;  %v1537_v7 = vmul.f32 %v1533_v8, %v1483_v38  ;;  %v1593_v48 = vmul.f32 %v1533_v8, %v1495_v60  ;;  %v1605_v34 = vmul.f32 %v1533_v8, %v4044_v32  ;;  %v1680_v55 = vpop.permute.xlu2 %1679 }
 0x736   : > { %vm1681_vm13 = vcmp.eq.s32.totalorder %v3582_v35, %v1680_v55  ;;  %vm1682_vm14 = vcmp.eq.s32.totalorder %v3594_v49, %v1680_v55 }
 0x737   : > { %v1575_v24 = vsel %vm4114_vm1, %v1573_v36, 0.0  ;;  %v1539_v5 = vsel %vm4103_vm11, %v1537_v7, 0.0  ;;  %v1595_v45 = vsel %vm4108_vm6, %v1593_v48, 0.0  ;;  %v1607_v58 = vsel %vm4120_vm9, %v1605_v34, 0.0  ;;  %vm4592_vm9 = vmmov %vm4591_vm0 }
 0x738   : > { %v1885_v15 = vsel %vm4592_vm9, %v4130_v56, -inf  ;;  %vm1655_vm11 = vcmp.eq.s32.totalorder %v3594_v49, %v4136_v40  ;;  %vm1667_vm6 = vcmp.eq.s32.totalorder %v3582_v35, %v1666_v16  ;;  %vm1694_vm1 = vcmp.eq.s32.totalorder %v3582_v35, %v4138_v44 }
 0x739   : > { %2981 = vset.pattern.permute.xlu2 %v4565_v57  ;;  %vm1708_vm0 = vcmp.eq.s32.totalorder %v3582_v35, %v4140_v19  ;;  %vm1709_vm9 = vcmp.eq.s32.totalorder %v3594_v49, %v4140_v19 }
 0x73a   : > { %2985 = vset.pattern.permute.xlu0 %v4565_v57  ;;  %2984 = vset.pattern.permute.xlu1 %v4546_v30 }
 0x73b   : > { %1698 = vperm.xlu2 %2981, %v1606_v51   ;;  %1780 = vperm.xlu0 %2985, %v1575_v24  }
 0x73c   : > { %1766 = vperm.xlu1 %2984, %v1539_v5   ;;  %v4199_v33 = vpop.permute.xlu1 %1788 }
 0x73d   : > { %v1639_v32 = vpop.permute.xlu2 %1638 }
 0x73e   : > { %vm1640_vm12 = vcmp.eq.s32.totalorder %v3582_v35, %v1639_v32  ;;  %vm1641_vm5 = vcmp.eq.s32.totalorder %v3594_v49, %v1639_v32 }
 0x743   : > { %2982 = vset.pattern.permute.xlu2 %v4546_v30  ;;  %2988 = vset.pattern.permute.xlu0 %v4546_v30 }
 0x744   : > { %2987 = vset.pattern.permute.xlu1 %v4565_v57  ;;  %1711 = vperm.xlu2 %2982, %v1606_v51  }
 0x745   : > { %1820 = vperm.xlu0 %2988, %v1595_v45   ;;  %1807 = vperm.xlu1 %2987, %v1595_v45   ;;  %v4189_v62 = vpop.permute.xlu2 %1774 }
 0x74c   : > { %2983 = vset.pattern.permute.xlu2 %v4565_v57 }
 0x74d   : > { %1828 = vperm.xlu1 %2987, %v4075_v47   ;;  %1753 = vperm.xlu2 %2983, %v1539_v5   ;;  %v4191_v1 = vpop.permute.xlu2 %1815 }
 0x74e   : > { %2994 = vset.pattern.permute.xlu0 %v4565_v57 }
 0x755   : > { %2989 = vset.pattern.permute.xlu1 %v4546_v30  ;;  %2986 = vset.pattern.permute.xlu2 %v4546_v30 }
 0x756   : > { %1842 = vperm.xlu1 %2989, %v4075_v47   ;;  %1793 = vperm.xlu2 %2986, %v1575_v24  }
 0x75e   : > { %2990 = vset.pattern.permute.xlu2 %v4565_v57  ;;  %1890 = vrot.lane.b32.xlu1 %v3582_v35, %s3110_s10  ;;  %s250_s10 = sand.u32 1, %s3092_s19  }
 0x75f   : > { %1834 = vperm.xlu2 %2990, %v1607_v58   ;;  %2992 = vset.pattern.permute.xlu1 %v4565_v57  ;;  %s2472_s25 = scalar_lea.sflag [#allocation3], %s250_s10 }
 0x767   : > { %2991 = vset.pattern.permute.xlu2 %v4546_v30 }
 0x768   : > { %1847 = vperm.xlu2 %2991, %v1607_v58  }
 0x76f   : > { %1883 = vmax.xlane.f32.xlu0 %v1882_v17 }
 0x770   : > { %2993 = vset.pattern.permute.xlu2 %v4565_v57 }
 0x782   : > { %v1618_v47 = vpop.permute.xlu2 %1617 }
 0x783   : > { %v1620_v60 = vsel %vm1613_vm8, %v1618_v47, 0.0  ;;  %v1621_v13 = vsel %vm1614_vm15, %v1618_v47, 0.0  ;;  %vm1749_vm8 = vcmp.eq.s32.totalorder %v3582_v35, %v4193_v4  ;;  %vm1750_vm15 = vcmp.eq.s32.totalorder %v3594_v49, %v4193_v4 }
 0x78b   : > { %v1658_v14 = vpop.permute.xlu2 %1657 }
 0x78c   : > { %v1660_v46 = vsel %vm1654_vm7, %v1658_v14, 0.0  ;;  %v1661_v42 = vsel %vm1655_vm11, %v1658_v14, 0.0  ;;  %vm1790_vm7 = vcmp.eq.s32.totalorder %v3582_v35, %v4199_v33  ;;  %vm1791_vm11 = vcmp.eq.s32.totalorder %v3594_v49, %v4199_v33 }
 0x791   : > { %1886 = vmax.xlane.f32.xlu2 %v1885_v15 }
 0x795   : > { %v1699_v59 = vpop.permute.xlu2 %1698 }
 0x796   : > { %v1701_v7 = vsel %vm1694_vm1, %v1699_v59, 0.0  ;;  %v1702_v48 = vsel %vm1695_vm10, %v1699_v59, 0.0  ;;  %vm1817_vm1 = vcmp.eq.s32.totalorder %v3582_v35, %v4191_v1  ;;  %vm1818_vm10 = vcmp.eq.s32.totalorder %v3594_v49, %v4191_v1 }
 0x79a   : > { %v1645_v18 = vpop.permute.xlu0 %1644 }
 0x79b   : > { %v1631_v38 = vpop.permute.xlu1 %1630  ;;  %v1647_v21 = vsel %vm1640_vm12, %v1645_v18, 0.0  ;;  %v1648_v22 = vsel %vm1641_vm5, %v1645_v18, 0.0  ;;  %vm1776_vm12 = vcmp.eq.s32.totalorder %v3582_v35, %v4189_v62  ;;  %vm1777_vm5 = vcmp.eq.s32.totalorder %v3594_v49, %v4189_v62 }
 0x79c   : > { %v1633_v25 = vsel %vm1627_vm3, %v1631_v38, 0.0  ;;  %v1634_v6 = vsel %vm1628_vm4, %v1631_v38, 0.0  ;;  %vm1763_vm3 = vcmp.eq.s32.totalorder %v3582_v35, %v4154_v43  ;;  %vm1764_vm4 = vcmp.eq.s32.totalorder %v3594_v49, %v4154_v43 }
 0x79d   : > { %v1635_v63 = vadd.f32 %v1633_v25, %v1620_v60  ;;  %v1636_v9 = vadd.f32 %v1634_v6, %v1621_v13 }
 0x79e   : > { %v1712_v11 = vpop.permute.xlu2 %1711 }
 0x79f   : > { %v1649_v27 = vadd.f32 %v1647_v21, %v1635_v63  ;;  %v1650_v41 = vadd.f32 %v1648_v22, %v1636_v9  ;;  %v1714_v5 = vsel %vm1708_vm0, %v1712_v11, 0.0  ;;  %v1715_v45 = vsel %vm1709_vm9, %v1712_v11, 0.0 }
 0x7a1   : > { %v1662_v2 = vadd.f32 %v1660_v46, %v1649_v27  ;;  %v1663_v52 = vadd.f32 %v1661_v42, %v1650_v41 }
 0x7a4   : > { %v1672_v29 = vpop.permute.xlu1 %1671  ;;  %v1685_v12 = vpop.permute.xlu0 %1684 }
 0x7a5   : > { %v1674_v61 = vsel %vm1667_vm6, %v1672_v29, 0.0  ;;  %v1675_v53 = vsel %vm1668_vm2, %v1672_v29, 0.0  ;;  %v1687_v54 = vsel %vm1681_vm13, %v1685_v12, 0.0  ;;  %v1688_v51 = vsel %vm1682_vm14, %v1685_v12, 0.0 }
 0x7a6   : > { %v1676_v40 = vadd.f32 %v1674_v61, %v1662_v2  ;;  %v1677_v0 = vadd.f32 %v1675_v53, %v1663_v52  ;;  %vm1803_vm6 = vcmp.eq.s32.totalorder %v3582_v35, %v4197_v31  ;;  %vm1804_vm2 = vcmp.eq.s32.totalorder %v3594_v49, %v4197_v31 }
 0x7a7   : > { %v1754_v58 = vpop.permute.xlu2 %1753 }
 0x7a8   : > { %v1689_v8 = vadd.f32 %v1687_v54, %v1676_v40  ;;  %v1690_v36 = vadd.f32 %v1688_v51, %v1677_v0  ;;  %v1756_v15 = vsel %vm1749_vm8, %v1754_v58, 0.0  ;;  %v1757_v59 = vsel %vm1750_vm15, %v1754_v58, 0.0 }
 0x7aa   : > { %v1703_v34 = vadd.f32 %v1701_v7, %v1689_v8  ;;  %v1704_v24 = vadd.f32 %v1702_v48, %v1690_v36 }
 0x7ac   : > { %v1716_v55 = vadd.f32 %v1714_v5, %v1703_v34  ;;  %v1717_v32 = vadd.f32 %v1715_v45, %v1704_v24 }
 0x7ad   : > { %v1781_v60 = vpop.permute.xlu0 %1780 }
 0x7ae   : > { %v1767_v17 = vpop.permute.xlu1 %1766  ;;  %v1718_v39 = vpack.c.bf16 %v1716_v55, %v1716_v55  ;;  %v1719_v44 = vpack.c.bf16 %v1717_v32, %v1717_v32  ;;  %v1783_v43 = vsel %vm1776_vm12, %v1781_v60, 0.0  ;;  %v1784_v13 = vsel %vm1777_vm5, %v1781_v60, 0.0  ;;  %v2769_v55 = vld [vmem:[%s4498_s3 + $0x58] sm:$0xff]  ;;  %v2768_v32 = vld [vmem:[%s4498_s3 + $0x50] sm:$0xff]  ;;  %v3036_v60 = vld [vmem:[%s3527_s13 + $0xc8] sm:$0xff] }
 0x7af   : > { %v1769_v19 = vsel %vm1763_vm3, %v1767_v17, 0.0  ;;  %v1770_v47 = vsel %vm1764_vm4, %v1767_v17, 0.0  ;;  %vm4593_vm4 = vcmask 48160   ;;  %1994 = vmatpush.msra.mxu2 %v2769_v55  ;;  %vm4595_vm12 = vcmask 261120  }
 0x7b0   : > { %1728 = vmatmul.bf16.vlgmr.msrb.gmra.mxu2 %v1718_v39  ;;  %1741 = vmatmul.bf16.vlgmr.msrb.gmra.mxu3 %v1719_v44  ;;  %v1794_v16 = vpop.permute.xlu2 %1793  ;;  %v1771_v18 = vadd.f32 %v1769_v19, %v1756_v15  ;;  %v1772_v38 = vadd.f32 %v1770_v47, %v1757_v59  ;;  %vm4594_vm15 = vmmov %vm4593_vm4  ;;  %v2767_v19 = vld [vmem:[%s4498_s3 + $0x48] sm:$0xff]  ;;  %v2766_v47 = vld [vmem:[%s4498_s3 + $0x40] sm:$0xff] }
 0x7b1   : > { %v1796_v6 = vsel %vm1790_vm7, %v1794_v16, 0.0  ;;  %v1797_v63 = vsel %vm1791_vm11, %v1794_v16, 0.0  ;;  %1995 = vmatpush.msra.mxu2 %v2768_v32  ;;  %v3032_v15 = vld [vmem:[%s3527_s13 + $0xe8] sm:$0xff]  ;;  %v3033_v59 = vld [vmem:[%s3527_s13 + $0xe0] sm:$0xff]  ;;  %vm4596_vm5 = vmmov %vm4595_vm12 }
 0x7b2   : > { %v1785_v4 = vadd.f32 %v1783_v43, %v1771_v18  ;;  %v1786_v25 = vadd.f32 %v1784_v13, %v1772_v38  ;;  %v3034_v18 = vld [vmem:[%s3527_s13 + $0xd8] sm:$0xff]  ;;  %v3035_v38 = vld [vmem:[%s3527_s13 + $0xd0] sm:$0xff] }
 0x7b3   : > { %1996 = vmatpush.msra.mxu2 %v2767_v19 }
 0x7b4   : > { %v1798_v27 = vadd.f32 %v1796_v6, %v1785_v4  ;;  %v1799_v41 = vadd.f32 %v1797_v63, %v1786_v25  ;;  %v3037_v25 = vld [vmem:[%s3527_s13 + $0xc0] sm:$0xff] }
 0x7b5   : > { %1997 = vmatpush.msra.mxu2 %v2766_v47 }
 0x7b7   : > { %v1808_v14 = vpop.permute.xlu1 %1807  ;;  %v1821_v11 = vpop.permute.xlu0 %1820 }
 0x7b8   : > { %v1810_v21 = vsel %vm1803_vm6, %v1808_v14, 0.0  ;;  %v1811_v22 = vsel %vm1804_vm2, %v1808_v14, 0.0  ;;  %v1823_v31 = vsel %vm1817_vm1, %v1821_v11, 0.0  ;;  %v1824_v33 = vsel %vm1818_vm10, %v1821_v11, 0.0  ;;  %v3031_v14 = vld [vmem:[%s3527_s13 + $0xf0] sm:$0xff] }
 0x7b9   : > { %v1835_v9 = vpop.permute.xlu2 %1834  ;;  %v1812_v46 = vadd.f32 %v1810_v21, %v1798_v27  ;;  %v1813_v42 = vadd.f32 %v1811_v22, %v1799_v41 }
 0x7bb   : > { %v1825_v29 = vadd.f32 %v1823_v31, %v1812_v46  ;;  %v1826_v12 = vadd.f32 %v1824_v33, %v1813_v42 }
 0x7bf   : > { %v1829_v62 = vpop.permute.xlu1 %1828 }
 0x7c0   : > { %vm1830_vm13 = vcmp.eq.s32.totalorder %v3582_v35, %v1829_v62  ;;  %vm1831_vm14 = vcmp.eq.s32.totalorder %v3594_v49, %v1829_v62 }
 0x7c1   : > { %v1837_v2 = vsel %vm1830_vm13, %v1835_v9, 0.0  ;;  %v1838_v52 = vsel %vm1831_vm14, %v1835_v9, 0.0  ;;  %vm4597_vm13 = vcmask 15360  }
 0x7c2   : > { %v1839_v53 = vadd.f32 %v1837_v2, %v1825_v29  ;;  %v1840_v40 = vadd.f32 %v1838_v52, %v1826_v12  ;;  %v1848_v0 = vpop.permute.xlu2 %1847  ;;  %vm4598_vm14 = vmmov %vm4597_vm13 }
 0x7c3   : > { %vm4599_vm1 = vmmov %vm4597_vm13 }
 0x7c4   : > { %vm4600_vm10 = vmmov %vm4599_vm1 }
 0x7c8   : > { %v1843_v61 = vpop.permute.xlu1 %1842 }
 0x7c9   : > { %vm1844_vm0 = vcmp.eq.s32.totalorder %v3582_v35, %v1843_v61  ;;  %vm1845_vm9 = vcmp.eq.s32.totalorder %v3594_v49, %v1843_v61 }
 0x7ca   : > { %v1850_v54 = vsel %vm1844_vm0, %v1848_v0, 0.0  ;;  %v1851_v51 = vsel %vm1845_vm9, %v1848_v0, 0.0 }
 0x7cb   : > { %v1852_v8 = vadd.f32 %v1850_v54, %v1839_v53  ;;  %v1853_v36 = vadd.f32 %v1851_v51, %v1840_v40 }
 0x7cd   : > { %v1854_v7 = vpack.c.bf16 %v1852_v8, %v1852_v8  ;;  %v1855_v1 = vpack.c.bf16 %v1853_v36, %v1853_v36 }
 0x7cf   : > { %1864 = vmatmul.bf16.vlgmr.msra.gmra.mxu0 %v1854_v7  ;;  %1877 = vmatmul.bf16.vlgmr.msra.gmra.mxu1 %v1855_v1 }
 0x7d0   : > { %v1891_v48 = vpop.permute.xlu1 %1890 }
 0x7e2   : > { %v1884_v34 = vpop.xlane.xlu0 %1883 }
 0x7e3   : > { %vm1888_vm3 = vcmp.eq.f32.partialorder %v4125_v37, %v1884_v34 }
 0x7e4   : > { %v1892_v24 = vsel %vm1888_vm3, %v1891_v48, 2 }
 0x7e5   : > { %v1894_v5 = vsel %vm4593_vm4, %v1892_v24, 2147483647 }
 0x7e6   : > { %v1896_v45 = vshra.s32 %v1894_v5, 16  ;;  %v1895_v41 = vand.u32 65535, %v1894_v5 }
 0x7e8   : > { %v1898_v58 = vcvt.s32.f32 %v1896_v45  ;;  %v1897_v42 = vcvt.s32.f32 %v1895_v41 }
 0x7ea   : > { %1899 = vmin.xlane.f32.xlu1 %v1898_v58 }
 0x804   : > { %v1887_v37 = vpop.xlane.xlu2 %1886 }
 0x805   : > { %vm1889_vm8 = vcmp.eq.f32.partialorder %v4130_v56, %v1887_v37  ;;  %v3030_v56 = vld [vmem:[%s3527_s13 + $0xf8] sm:$0xff]  ;;  %s3112_s13 = smov 2  }
 0x806   : > { %v1893_v17 = vsel %vm1889_vm8, %v1891_v48, 2  ;;  %2348 = vmatpush.bf16.msrb.mxu2 %v3030_v56  ;;  %v3005_v48 = vld [vmem:[%s4499_s4 + $0x2] ss:$0 sm:$0xff] }
 0x807   : > { %v1909_v39 = vsel %vm4594_vm15, %v1893_v17, 2147483647 }
 0x808   : > { %v1911_v44 = vshra.s32 %v1909_v39, 16  ;;  %v1910_v31 = vand.u32 65535, %v1909_v39 }
 0x80a   : > { %v1913_v16 = vcvt.s32.f32 %v1911_v44  ;;  %2349 = vmatpush.bf16.msrb.mxu2 %v3031_v14  ;;  %v1912_v2 = vcvt.s32.f32 %v1910_v31 }
 0x80c   : > { %1914 = vmin.xlane.f32.xlu0 %v1913_v16 }
 0x80e   : > { %2350 = vmatpush.bf16.msrb.mxu2 %v3032_v15 }
 0x812   : > { %2351 = vmatpush.bf16.msrb.mxu2 %v3033_v59 }
 0x816   : > { %2352 = vmatpush.bf16.msrb.mxu2 %v3034_v18 }
 0x81a   : > { %2353 = vmatpush.bf16.msrb.mxu2 %v3035_v38 }
 0x81e   : > { %2354 = vmatpush.bf16.msrb.mxu2 %v3036_v60 }
 0x822   : > { %2355 = vmatpush.bf16.msrb.mxu2 %v3037_v25 }
 0x833   : > { %v1729_v43 = vpop.f32.mrf.mxu2  ;;  %v1742_v13 = vpop.f32.mrf.mxu3 }
 0x834   : > { %v1743_v4 = vadd.f32 %v1742_v13, %v1729_v43 }
 0x836   : > { %2771 = vmatmul.msk.f32.vlgmr.msra.gmra.mxu2 %vm4595_vm12, %v1743_v4 }
 0x83b   : > { %v1731_v6 = vpop.f32.mrf.mxu2  ;;  %v1744_v63 = vpop.f32.mrf.mxu3 }
 0x84c   : > { %v1865_v9 = vpop.f32.mrf.mxu0  ;;  %v1878_v62 = vpop.f32.mrf.mxu1 }
 0x84d   : > { %v1879_v21 = vadd.f32 %v1878_v62, %v1865_v9 }
 0x84f   : > { %2772 = vmatmul.msk.f32.gmra.mxu2 %vm4596_vm5, %v1879_v21 }
 0x854   : > { %v1867_v22 = vpop.f32.mrf.mxu0  ;;  %v1880_v27 = vpop.f32.mrf.mxu1 }
 0x855   : > { %v4601_v27 = vld [vmem:[#allocation5_spill] sm:$0xff] }
 0x85d   : > { %v1900_v46 = vpop.xlane.xlu1 %1899 }
 0x85e   : > { %vm1901_vm7 = vcmp.eq.f32.partialorder %v1898_v58, %v1900_v46  ;;  %v1906_v29 = vcvt.f32.s32 %v1900_v46 }
 0x85f   : > { %v1902_v11 = vsel %vm1901_vm7, %v1897_v42, inf }
 0x860   : > { %1903 = vmin.xlane.f32.xlu2 %v1902_v11  ;;  %v1907_v61 = vshll.u32 %v1906_v29, 16 }
 0x87f   : > { %v1915_v33 = vpop.xlane.xlu0 %1914 }
 0x880   : > { %vm1916_vm11 = vcmp.eq.f32.partialorder %v1913_v16, %v1915_v33  ;;  %v1921_v54 = vcvt.f32.s32 %v1915_v33 }
 0x881   : > { %v1917_v52 = vsel %vm1916_vm11, %v1912_v2, inf }
 0x882   : > { %1918 = vmin.xlane.f32.xlu0 %v1917_v52  ;;  %v1922_v8 = vshll.u32 %v1921_v54, 16 }
 0x8b9   : > { %v1999_v34 = vpop.f32.mrf.mxu2 }
 0x8ba   : > { %v4288_v24 = vadd.f32 %v3005_v48, %v1999_v34 }
 0x8bc   : > { %v2005_v45 = vsub.f32 %v4288_v24, %v4288_v24 }
 0x8be   : > { %v2007_v32 = vmul.f32 1.442695, %v2005_v45 }
 0x8c0   : > { %3022 = vpow2.f32 %v2007_v32 }
 0x8c6   : > { %v3023_v44 = vpop.eup %3022 }
 0x8d2   : > { %v2002_v58 = vpop.f32.mrf.mxu2 }
 0x8d3   : > { %v1904_v12 = vpop.xlane.xlu2 %1903  ;;  %v4294_v37 = vadd.f32 %v3005_v48, %v2002_v58 }
 0x8d4   : > { %v1905_v53 = vcvt.f32.s32 %v1904_v12  ;;  %v4602_v12 = vld [vmem:[#allocation6_spill] sm:$0xff] }
 0x8d5   : > { %v2006_v17 = vsub.f32 %v4294_v37, %v4294_v37 }
 0x8d6   : > { %v1908_v40 = vadd.s32 %v1907_v61, %v1905_v53 }
 0x8d7   : > { %v2009_v39 = vmul.f32 1.442695, %v2006_v17 }
 0x8d8   : > { %vm1924_vm6 = vcmp.eq.s32.totalorder %v3582_v35, %v1908_v40 }
 0x8d9   : > { %v2764_v0 = vsel %vm1924_vm6, 1.0, %v3109_v26  ;;  %3024 = vpow2.f32 %v2009_v39 }
 0x8da   : > { %1942 = vrot.lane.b32.xlu1 %v2764_v0, %s3112_s13  ;;  %3026 = vrcp.f32 %v3023_v44  ;;  %v1930_v60 = vmul.f32 %v2764_v0, %v3936_v23 }
 0x8dc   : > { %v1932_v43 = vsel %vm4598_vm14, %v1930_v60, 0.0 }
 0x8df   : > { %v3025_v16 = vpop.eup %3024 }
 0x8e0   : > { %v3027_v19 = vpop.eup %3026  ;;  %3028 = vrcp.f32 %v3025_v16 }
 0x8e1   : > { %v4298_v47 = vmul.f32 %v3027_v19, %v3023_v44 }
 0x8e6   : > { %v3029_v56 = vpop.eup %3028 }
 0x8e7   : > { %v4302_v14 = vmul.f32 %v3029_v56, %v3025_v16 }
 0x8f5   : > { %v1919_v51 = vpop.xlane.xlu0 %1918 }
 0x8f6   : > { %v1920_v36 = vcvt.f32.s32 %v1919_v51 }
 0x8f8   : > { %v1923_v7 = vadd.s32 %v1922_v8, %v1920_v36 }
 0x8fa   : > { %vm1925_vm2 = vcmp.eq.s32.totalorder %v3582_v35, %v1923_v7 }
 0x8fb   : > { %v2765_v1 = vsel %vm1925_vm2, 1.0, %v3109_v26 }
 0x8fc   : > { %1944 = vrot.lane.b32.xlu2 %v2765_v1, %s3112_s13  ;;  %v1931_v5 = vmul.f32 %v2765_v1, %v3940_v50 }
 0x8fe   : > { %v1935_v55 = vsel %vm4597_vm13, %v1931_v5, 0.0 }
 0x925   : > { %1936 = vadd.xlane.f32.xlu2 %v1935_v55 }
 0x93d   : > { %2113 = vrot.lane.b32.xlu2 %v4298_v47, %s3111_s11 }
 0x945   : > { %2115 = vrot.lane.b32.xlu2 %v4302_v14, %s3111_s11 }
 0x94c   : > { %v1943_v15 = vpop.permute.xlu1 %1942 }
 0x94d   : > { %v1948_v59 = vmul.f32 %v1943_v15, %v3936_v23 }
 0x94f   : > { %1952 = vrot.lane.b32.xlu0 %v1948_v59, %s3111_s11 }
 0x956   : > { %v1945_v18 = vpop.permute.xlu2 %1944 }
 0x957   : > { %v1949_v38 = vmul.f32 %v1945_v18, %v3940_v50 }
 0x959   : > { %1954 = vrot.lane.b32.xlu0 %v1949_v38, %s3111_s11 }
 0x983   : > { %1933 = vadd.xlane.f32.xlu0 %v1932_v43 }
 0x998   : > { %v4314_v63 = vpop.xlane.xlu2 %1936 }
 0x999   : > { %v4364_v43 = vadd.f32 %v4314_v63, %v3969_v10 }
 0x9a0   : > { %v4316_v9 = vpop.permute.xlu2 %2113 }
 0x9a8   : > { %v4321_v23 = vpop.permute.xlu2 %2115 }
 0x9c1   : > { %v1953_v13 = vpop.permute.xlu0 %1952 }
 0x9c2   : > { %v1958_v4 = vsel %vm4599_vm1, %v1953_v13, 0.0 }
 0x9c3   : > { %1959 = vadd.xlane.f32.xlu1 %v1958_v4  ;;  %v2018_v4 = vadd.f32 %v4294_v37, %v4364_v43 }
 0x9cb   : > { %v1955_v25 = vpop.permute.xlu0 %1954 }
 0x9cc   : > { %v1961_v6 = vsel %vm4600_vm10, %v1955_v25, 0.0 }
 0x9cd   : > { %1962 = vadd.xlane.f32.xlu2 %v1961_v6  ;;  %v2022_v6 = vmul.f32 0.00625, %v2018_v4 }
 0x9f6   : > { %v1934_v17 = vpop.xlane.xlu0 %1933 }
 0x9f7   : > { %v4357_v39 = vadd.f32 %v1934_v17, %v3973_v28 }
 0x9f9   : > { %v2017_v44 = vadd.f32 %v4288_v24, %v4357_v39 }
 0x9fb   : > { %v2021_v16 = vmul.f32 0.00625, %v2017_v44 }
 0x9fd   : > { %v2023_v19 = vadd.f32 %v2021_v16, %v4601_v27 }
 0x9ff   : > { %v2029_v56 = vmul.f32 16.0, %v2023_v19 }
 0xa01   : > { %v2773_v15 = vadd.f32 -0.5, %v2029_v56 }
 0xa03   : > { %v2037_v59 = vfloor.f32 %v2773_v15 }
 0xa05   : > { %v2845_v38 = vcvt.f32.s32 %v2037_v59 }
 0xa07   : > { %v2049_v28 = vadd.s32 1, %v2845_v38  ;;  %vm2081_vm7 = vcmp.ge.s32.totalorder %v2845_v38, 0  ;;  %vm2083_vm11 = vcmp.lt.s32.totalorder %v2845_v38, 16 }
 0xa08   : > { %vm4369_vm14 = vmand %vm2081_vm7, %vm2083_vm11 }
 0xa09   : > { %v2179_v25 = vmul.u32 16, %v2049_v28  ;;  %vm2165_vm6 = vcmp.ge.s32.totalorder %v2049_v28, 0  ;;  %vm2167_vm2 = vcmp.lt.s32.totalorder %v2049_v28, 16 }
 0xa0a   : > { %vm4373_vm1 = vmand %vm2165_vm6, %vm2167_vm2 }
 0xa36   : > { %v1960_v50 = vpop.xlane.xlu1 %1959 }
 0xa37   : > { %v4319_v62 = vadd.f32 %v1960_v50, %v3995_v3 }
 0xa39   : > { %v2019_v21 = vadd.f32 %v4288_v24, %v4319_v62 }
 0xa3b   : > { %v2025_v22 = vmul.f32 0.00625, %v2019_v21  ;;  %v2024_v21 = vadd.f32 %v2022_v6, %v4602_v12 }
 0xa3d   : > { %v2027_v41 = vadd.f32 %v2025_v22, %v4601_v27 }
 0xa3f   : > { %v2033_v46 = vmul.f32 16.0, %v2027_v41 }
 0xa40   : > { %v1963_v42 = vpop.xlane.xlu2 %1962 }
 0xa41   : > { %v2775_v11 = vadd.f32 -0.5, %v2033_v46  ;;  %v4327_v31 = vadd.f32 %v1963_v42, %v4005_v20  ;;  %v2030_v42 = vmul.f32 16.0, %v2024_v21 }
 0xa43   : > { %v2039_v33 = vfloor.f32 %v2775_v11  ;;  %v2020_v2 = vadd.f32 %v4294_v37, %v4327_v31  ;;  %v2774_v10 = vadd.f32 -0.5, %v2030_v42 }
 0xa45   : > { %v2026_v3 = vmul.f32 0.00625, %v2020_v2  ;;  %v2849_v52 = vcvt.f32.s32 %v2039_v33  ;;  %v2043_v29 = vsub.f32 %v2775_v11, %v2039_v33  ;;  %v2041_v11 = vsub.f32 %v2773_v15, %v2037_v59 }
 0xa47   : > { %v2028_v61 = vadd.f32 %v2026_v3, %v4602_v12  ;;  %2125 = vrot.lane.b32.xlu1 %v2849_v52, %s3113_s6  ;;  %2069 = vrot.lane.b32.xlu0 %v2043_v29, %s3113_s6  ;;  %vm2087_vm0 = vcmp.ge.s32.totalorder %v2849_v52, 0  ;;  %vm2099_vm9 = vcmp.lt.s32.totalorder %v2849_v52, 16  ;;  %v2055_v54 = vsub.f32 1.0, %v2043_v29 }
 0xa48   : > { %v2089_v53 = vsel %vm2087_vm0, 1, %v4565_v57  ;;  %v2101_v51 = vsel %vm2099_vm9, 1, %v4565_v57  ;;  %v2051_v8 = vadd.s32 1, %v2849_v52  ;;  %v2053_v33 = vsub.f32 1.0, %v2041_v11 }
 0xa49   : > { %v2034_v40 = vmul.f32 16.0, %v2028_v61  ;;  %2091 = vrot.lane.b32.xlu2 %v2089_v53, %s3113_s6  ;;  %v2038_v61 = vfloor.f32 %v2774_v10 }
 0xa4a   : > { %vm2143_vm3 = vcmp.lt.s32.totalorder %v2051_v8, 16  ;;  %vm2131_vm4 = vcmp.ge.s32.totalorder %v2051_v8, 0 }
 0xa4b   : > { %v2776_v20 = vadd.f32 -0.5, %v2034_v40  ;;  %v2145_v7 = vsel %vm2143_vm3, 1, %v4565_v57  ;;  %v2133_v1 = vsel %vm2131_vm4, 1, %v4565_v57  ;;  %v2042_v19 = vsub.f32 %v2774_v10, %v2038_v61 }
 0xa4d   : > { %v2040_v0 = vfloor.f32 %v2776_v20 }
 0xa4f   : > { %2103 = vrot.lane.b32.xlu0 %v2101_v51, %s3113_s6  ;;  %2059 = vrot.lane.b32.xlu1 %v2055_v54, %s3113_s6  ;;  %v2851_v36 = vcvt.f32.s32 %v2040_v0  ;;  %v2044_v34 = vsub.f32 %v2776_v20, %v2040_v0  ;;  %v2847_v54 = vcvt.f32.s32 %v2038_v61 }
 0xa51   : > { %2159 = vrot.lane.b32.xlu2 %v2051_v8, %s3113_s6  ;;  %vm2088_vm8 = vcmp.ge.s32.totalorder %v2851_v36, 0  ;;  %v2052_v5 = vadd.s32 1, %v2851_v36  ;;  %vm2100_vm15 = vcmp.lt.s32.totalorder %v2851_v36, 16  ;;  %v2056_v45 = vsub.f32 1.0, %v2044_v34 }
 0xa52   : > { %v2090_v48 = vsel %vm2088_vm8, 1, %v4565_v57  ;;  %v2102_v58 = vsel %vm2100_vm15, 1, %v4565_v57  ;;  %v2124_v16 = vmul.u32 16, %v2847_v54  ;;  %vm2082_vm6 = vcmp.ge.s32.totalorder %v2847_v54, 0 }
 0xa53   : > { %vm2144_vm12 = vcmp.lt.s32.totalorder %v2052_v5, 16  ;;  %vm2132_vm5 = vcmp.ge.s32.totalorder %v2052_v5, 0  ;;  %vm2084_vm2 = vcmp.lt.s32.totalorder %v2847_v54, 16 }
 0xa54   : > { %v2146_v55 = vsel %vm2144_vm12, 1, %v4565_v57  ;;  %v2134_v32 = vsel %vm2132_vm5, 1, %v4565_v57  ;;  %v2123_v57 = vmul.u32 16, %v2845_v38 }
 0xa57   : > { %2147 = vrot.lane.b32.xlu0 %v2145_v7, %s3113_s6  ;;  %2135 = vrot.lane.b32.xlu1 %v2133_v1, %s3113_s6  ;;  %v4385_v1 = vadd.s32 1, %v2847_v54 }
 0xa59   : > { %2093 = vrot.lane.b32.xlu2 %v2090_v48, %s3113_s6 }
 0xa5f   : > { %2127 = vrot.lane.b32.xlu1 %v2851_v36, %s3113_s6  ;;  %2071 = vrot.lane.b32.xlu0 %v2044_v34, %s3113_s6 }
 0xa61   : > { %2161 = vrot.lane.b32.xlu2 %v2052_v5, %s3113_s6 }
 0xa67   : > { %2105 = vrot.lane.b32.xlu0 %v2102_v58, %s3113_s6  ;;  %2061 = vrot.lane.b32.xlu1 %v2056_v45, %s3113_s6 }
 0xa6f   : > { %2149 = vrot.lane.b32.xlu0 %v2146_v55, %s3113_s6  ;;  %2137 = vrot.lane.b32.xlu1 %v2134_v32, %s3113_s6  ;;  %v2180_v55 = vmul.u32 16, %v4385_v1  ;;  %s3058_s6 = scalar_lea.hbm %s4500_s5, 32 }
 0xaa3   : > { %v2092_v18 = vpop.permute.xlu2 %2091 }
 0xaa4   : > { %vm2095_vm13 = vcmp.ne.s32.totalorder %v2092_v18, 0 }
 0xaa5   : > { %vm2097_vm10 = vmand %vm4369_vm14, %vm2095_vm13 }
 0xaa6   : > { %vm2171_vm9 = vmand %vm4373_vm1, %vm2095_vm13 }
 0xaab   : > { %v2160_v60 = vpop.permute.xlu2 %2159 }
 0xaac   : > { %v2163_v13 = vadd.s32 %v2160_v60, %v2123_v57  ;;  %v2191_v50 = vadd.s32 %v2179_v25, %v2160_v60 }
 0xaae   : > { %2208 = vperm.xlu0 %2994, %v2163_v13  }
 0xab3   : > { %v2094_v34 = vpop.permute.xlu2 %2093 }
 0xab4   : > { %vm2096_vm13 = vcmp.ne.s32.totalorder %v2094_v34, 0 }
 0xab6   : > { %2236 = vperm.xlu0 %2994, %v2191_v50  }
 0xab9   : > { %v2126_v22 = vpop.permute.xlu1 %2125  ;;  %v2070_v27 = vpop.permute.xlu0 %2069 }
 0xaba   : > { %v2129_v41 = vadd.s32 %v2126_v22, %v2123_v57  ;;  %v2181_v46 = vadd.s32 %v2179_v25, %v2126_v22  ;;  %v2075_v51 = vmul.f32 %v2070_v27, %v2053_v33  ;;  %v2079_v8 = vmul.f32 %v2070_v27, %v2041_v11 }
 0xabb   : > { %v2162_v15 = vpop.permute.xlu2 %2161 }
 0xabc   : > { %2194 = vperm.xlu1 %2992, %v2129_v41   ;;  %2222 = vperm.xlu2 %2993, %v2181_v46   ;;  %v2155_v48 = vmul.f32 %v4316_v9, %v2075_v51  ;;  %v2187_v5 = vmul.f32 %v4316_v9, %v2079_v8  ;;  %v2164_v38 = vadd.s32 %v2162_v15, %v2124_v16 }
 0xabd   : > { %v2192_v10 = vadd.s32 %v2180_v55, %v2162_v15 }
 0xac1   : > { %v2060_v3 = vpop.permute.xlu1 %2059  ;;  %v2104_v52 = vpop.permute.xlu0 %2103 }
 0xac2   : > { %v2065_v29 = vmul.f32 %v2060_v3, %v2053_v33  ;;  %v2077_v12 = vmul.f32 %v2060_v3, %v2041_v11  ;;  %vm2107_vm0 = vcmp.ne.s32.totalorder %v2104_v52, 0 }
 0xac3   : > { %vm2109_vm3 = vmand %vm2097_vm10, %vm2107_vm0 }
 0xac4   : > { %v2119_v53 = vmul.f32 %v4316_v9, %v2065_v29  ;;  %v2175_v40 = vmul.f32 %v4316_v9, %v2077_v12  ;;  %vm2173_vm4 = vmand %vm2171_vm9, %vm2107_vm0  ;;  %v2054_v9 = vsub.f32 1.0, %v2042_v19  ;;  %vm2166_vm0 = vcmp.ge.s32.totalorder %v4385_v1, 0 }
 0xac5   : > { %vm2168_vm9 = vcmp.lt.s32.totalorder %v4385_v1, 16 }
 0xac6   : > { %v2121_v20 = vsel %vm2109_vm3, %v2119_v53, 0.0  ;;  %v2177_v0 = vsel %vm2173_vm4, %v2175_v40, 0.0  ;;  %vm2170_vm4 = vmand %vm2166_vm0, %vm2168_vm9 }
 0xac7   : > { %2228 = vperm.xlu1 %2992, %v2177_v0   ;;  %2200 = vperm.xlu2 %2993, %v2121_v20  }
 0xac9   : > { %v2136_v36 = vpop.permute.xlu1 %2135  ;;  %v2148_v7 = vpop.permute.xlu0 %2147 }
 0xaca   : > { %vm2139_vm8 = vcmp.ne.s32.totalorder %v2136_v36, 0  ;;  %vm2151_vm15 = vcmp.ne.s32.totalorder %v2148_v7, 0 }
 0xacb   : > { %vm2141_vm12 = vmand %vm4369_vm14, %vm2139_vm8 }
 0xacc   : > { %vm2183_vm5 = vmand %vm4373_vm1, %vm2139_vm8 }
 0xacd   : > { %vm2153_vm7 = vmand %vm2141_vm12, %vm2151_vm15 }
 0xace   : > { %v2157_v45 = vsel %vm2153_vm7, %v2155_v48, 0.0  ;;  %vm2185_vm11 = vmand %vm2183_vm5, %vm2151_vm15 }
 0xacf   : > { %v2189_v58 = vsel %vm2185_vm11, %v2187_v5, 0.0  ;;  %2214 = vperm.xlu1 %2992, %v2157_v45   ;;  %vm4392_vm1 = vmand %vm2082_vm6, %vm2084_vm2 }
 0xad0   : > { %2242 = vperm.xlu2 %2993, %v2189_v58   ;;  %vm2098_vm10 = vmand %vm4392_vm1, %vm2096_vm13 }
 0xad1   : > { %v2128_v32 = vpop.permute.xlu1 %2127  ;;  %v2072_v17 = vpop.permute.xlu0 %2071  ;;  %vm2172_vm8 = vmand %vm2170_vm4, %vm2096_vm13 }
 0xad2   : > { %v2182_v44 = vadd.s32 %v2180_v55, %v2128_v32  ;;  %v2130_v56 = vadd.s32 %v2128_v32, %v2124_v16  ;;  %v2076_v25 = vmul.f32 %v2072_v17, %v2054_v9  ;;  %v2080_v6 = vmul.f32 %v2072_v17, %v2042_v19 }
 0xad4   : > { %2306 = vperm.xlu0 %2994, %v2182_v44   ;;  %v2156_v27 = vmul.f32 %v4321_v23, %v2076_v25  ;;  %v2188_v41 = vmul.f32 %v4321_v23, %v2080_v6 }
 0xad7   : > { %2278 = vperm.xlu1 %2992, %v2130_v56  }
 0xad9   : > { %v2062_v59 = vpop.permute.xlu1 %2061  ;;  %v2106_v18 = vpop.permute.xlu0 %2105 }
 0xada   : > { %v2066_v57 = vmul.f32 %v2062_v59, %v2054_v9  ;;  %vm2108_vm14 = vcmp.ne.s32.totalorder %v2106_v18, 0  ;;  %v2078_v28 = vmul.f32 %v2062_v59, %v2042_v19 }
 0xadb   : > { %vm2110_vm3 = vmand %vm2098_vm10, %vm2108_vm14 }
 0xadc   : > { %v2120_v13 = vmul.f32 %v4321_v23, %v2066_v57  ;;  %2292 = vperm.xlu0 %2994, %v2164_v38   ;;  %v2176_v22 = vmul.f32 %v4321_v23, %v2078_v28  ;;  %vm2174_vm15 = vmand %vm2172_vm8, %vm2108_vm14  ;;  %vm2361_vm8 = vcmp.eq.f32.partialorder %v4298_v47, %v4298_v47 }
 0xade   : > { %v2122_v4 = vsel %vm2110_vm3, %v2120_v13, 0.0  ;;  %v2178_v46 = vsel %vm2174_vm15, %v2176_v22, 0.0  ;;  %vm2362_vm15 = vcmp.eq.f32.partialorder %v4302_v14, %v4302_v14 }
 0xadf   : > { %2284 = vperm.xlu2 %2993, %v2122_v4  }
 0xae1   : > { %v2138_v50 = vpop.permute.xlu1 %2137  ;;  %v2150_v21 = vpop.permute.xlu0 %2149 }
 0xae2   : > { %vm2140_vm12 = vcmp.ne.s32.totalorder %v2138_v50, 0  ;;  %vm2152_vm5 = vcmp.ne.s32.totalorder %v2150_v21, 0 }
 0xae3   : > { %vm2142_vm7 = vmand %vm4392_vm1, %vm2140_vm12 }
 0xae4   : > { %vm2184_vm11 = vmand %vm2170_vm4, %vm2140_vm12 }
 0xae5   : > { %vm2154_vm6 = vmand %vm2142_vm7, %vm2152_vm5 }
 0xae6   : > { %v2158_v42 = vsel %vm2154_vm6, %v2156_v27, 0.0  ;;  %vm2186_vm2 = vmand %vm2184_vm11, %vm2152_vm5 }
 0xae7   : > { %v2190_v11 = vsel %vm2186_vm2, %v2188_v41, 0.0  ;;  %2298 = vperm.xlu1 %2992, %v2158_v42   ;;  %2312 = vperm.xlu2 %2993, %v2178_v46   ;;  %v4609_v42 = vlaneseq }
 0xae8   : > { %2326 = vperm.xlu0 %2994, %v2190_v11  }
 0xae9   : > { %v2398_v11 = vshrl.u32 %v4609_v42, 7 }
 0xaef   : > { %2320 = vperm.xlu1 %2992, %v2192_v10   ;;  %2363 = vrot.lane.b32.xlu2 %v3582_v35, %s3112_s13  ;;  %v2401_v10 = vadd.s32 24, %v2398_v11  ;;  %s3052_s13 = sshra.s32 %s2487_s23, 4  ;;  %s3053_s13 = int_to_ptr.hbm [resolvable:$true] %s3052_s13 }
 0xaf0   : > { %3000 = vset.pattern.permute.xlu2 %v4546_v30  ;;  %s3054_s22 = scalar_lea.hbm %s3053_s13, 16  ;;  %p3059_p0 = scmp.lt.s32.totalorder %s3053_s13, %s4500_s5 }
 0xaf1   : > { %p3055_p11 = scmp.ne.s32.totalorder %s3053_s13, %s3054_s22  ;;  %p3060_p1 = scmp.lt.s32.totalorder %s3058_s6, %s3054_s22 }
 0xaf3   : > { %p3056_p12 = pnand %p3055_p11, %p3185_p5  ;;  %p3061_p2 = por %p3060_p1, %p3059_p0 }
 0xaf5   : > { %p3057_p13 = pneg %p3056_p12 }
 0xaf7   : > { %p3062_p3 = pnand %p3061_p2, %p3057_p13 }
 0xb16   : > { %v2223_v63 = vpop.permute.xlu2 %2222 }
 0xb17   : > { %vm2224_vm1 = vcmp.eq.s32.totalorder %v3582_v35, %v2223_v63  ;;  %vm2225_vm10 = vcmp.eq.s32.totalorder %v3594_v49, %v2223_v63  ;;  %v2400_v63 = vadd.s32 16, %v2398_v11 }
 0xb20   : > { %v2209_v23 = vpop.permute.xlu0 %2208 }
 0xb21   : > { %v2201_v33 = vpop.permute.xlu2 %2200  ;;  %vm2210_vm0 = vcmp.eq.s32.totalorder %v3582_v35, %v2209_v23  ;;  %vm2211_vm9 = vcmp.eq.s32.totalorder %v3594_v49, %v2209_v23 }
 0xb28   : > { %v2237_v12 = vpop.permute.xlu0 %2236 }
 0xb29   : > { %vm2238_vm3 = vcmp.eq.s32.totalorder %v3582_v35, %v2237_v12  ;;  %vm2239_vm4 = vcmp.eq.s32.totalorder %v3594_v49, %v2237_v12 }
 0xb2a   : > { %v2243_v2 = vpop.permute.xlu2 %2242 }
 0xb2b   : > { %v2245_v34 = vsel %vm2238_vm3, %v2243_v2, 0.0  ;;  %v2246_v5 = vsel %vm2239_vm4, %v2243_v2, 0.0  ;;  %v2399_v2 = vadd.s32 8, %v2398_v11 }
 0xb2e   : > { %v2195_v3 = vpop.permute.xlu1 %2194 }
 0xb2f   : > { %vm2196_vm13 = vcmp.eq.s32.totalorder %v3582_v35, %v2195_v3  ;;  %vm2197_vm14 = vcmp.eq.s32.totalorder %v3594_v49, %v2195_v3 }
 0xb30   : > { %v2203_v40 = vsel %vm2196_vm13, %v2201_v33, 0.0  ;;  %v2204_v20 = vsel %vm2197_vm14, %v2201_v33, 0.0  ;;  %v3114_v33 = vmov 1.0  }
 0xb39   : > { %v2229_v52 = vpop.permute.xlu1 %2228  ;;  %v2285_v29 = vpop.permute.xlu2 %2284 }
 0xb3a   : > { %v2231_v36 = vsel %vm2224_vm1, %v2229_v52, 0.0  ;;  %v2232_v7 = vsel %vm2225_vm10, %v2229_v52, 0.0  ;;  %vm2405_vm1 = vcmp.eq.s32.totalorder %v2401_v10, %v3582_v35  ;;  %vm2404_vm10 = vcmp.eq.s32.totalorder %v2400_v63, %v3582_v35 }
 0xb3b   : > { %2783 = vmatpush.msk.msrb.mxu3 %vm2405_vm1, %v3114_v33 }
 0xb3d   : > { %2784 = vmatpush.msk.msrb.mxu3 %vm2404_vm10, %v3114_v33 }
 0xb41   : > { %v2215_v61 = vpop.permute.xlu1 %2214  ;;  %v2313_v53 = vpop.permute.xlu2 %2312 }
 0xb42   : > { %v2217_v0 = vsel %vm2210_vm0, %v2215_v61, 0.0  ;;  %v2218_v54 = vsel %vm2211_vm9, %v2215_v61, 0.0  ;;  %vm2403_vm0 = vcmp.eq.s32.totalorder %v2399_v2, %v3582_v35  ;;  %vm2402_vm9 = vcmp.eq.s32.totalorder %v2398_v11, %v3582_v35 }
 0xb43   : > { %v2219_v51 = vadd.f32 %v2217_v0, %v2203_v40  ;;  %v2220_v8 = vadd.f32 %v2218_v54, %v2204_v20  ;;  %2785 = vmatpush.msk.msrb.mxu3 %vm2403_vm0, %v3114_v33 }
 0xb45   : > { %v2233_v1 = vadd.f32 %v2231_v36, %v2219_v51  ;;  %v2234_v48 = vadd.f32 %v2232_v7, %v2220_v8  ;;  %2786 = vmatpush.msk.msrb.mxu3 %vm2402_vm9, %v3114_v33 }
 0xb46   : > { %v2307_v19 = vpop.permute.xlu0 %2306 }
 0xb47   : > { %v2247_v45 = vadd.f32 %v2245_v34, %v2233_v1  ;;  %v2248_v58 = vadd.f32 %v2246_v5, %v2234_v48  ;;  %vm2308_vm6 = vcmp.eq.s32.totalorder %v3582_v35, %v2307_v19  ;;  %vm2309_vm2 = vcmp.eq.s32.totalorder %v3594_v49, %v2307_v19 }
 0xb48   : > { %v2315_v60 = vsel %vm2308_vm6, %v2313_v53, 0.0  ;;  %v2316_v13 = vsel %vm2309_vm2, %v2313_v53, 0.0 }
 0xb49   : > { %v2249_v55 = vpack.c.bf16 %v2247_v45, %v2247_v45  ;;  %v2250_v32 = vpack.c.bf16 %v2248_v58, %v2248_v58  ;;  %v2364_v17 = vpop.permute.xlu2 %2363  ;;  %v2279_v56 = vpop.permute.xlu1 %2278 }
 0xb4a   : > { %v2365_v44 = vsel %vm2361_vm8, %v2364_v17, 1  ;;  %v2366_v16 = vsel %vm2362_vm15, %v2364_v17, 1  ;;  %vm2280_vm12 = vcmp.eq.s32.totalorder %v3582_v35, %v2279_v56  ;;  %vm2281_vm5 = vcmp.eq.s32.totalorder %v3594_v49, %v2279_v56 }
 0xb4b   : > { %2369 = vrot.lane.b32.xlu0 %v2366_v16, %s3111_s11  ;;  %2367 = vrot.lane.b32.xlu1 %v2365_v44, %s3111_s11  ;;  %v2287_v59 = vsel %vm2280_vm12, %v2285_v29, 0.0  ;;  %v2288_v18 = vsel %vm2281_vm5, %v2285_v29, 0.0  ;;  %vm4610_vm8 = vcmask 261120   ;;  %s2577_s11 = sshll.u32 %s250_s10, 4  ;;  %vm2443_vm12 = vcmp.eq.s32.totalorder %v3582_v35, 32 }
 0xb4c   : > { %2259 = vmatmul.bf16.vlgmr.msra.gmra.mxu3 %v2249_v55  ;;  %2272 = vmatmul.bf16.vlgmr.msrb.gmra.mxu0 %v2250_v32  ;;  %vm4611_vm15 = vmmov %vm4610_vm8  ;;  %vm2456_vm5 = vcmp.eq.s32.totalorder %v3582_v35, 33  ;;  %s252_s7 = scalar_lea.vmem [#allocation2], %s2577_s11 }
 0xb4d   : > { %s2484_s17 = sshll.u32 %s252_s7, 4  ;;  %s2485_s17 = int_to_ptr.vmem [resolvable:$true] %s2484_s17 }
 0xb4e   : > { %v2293_v15 = vpop.permute.xlu0 %2292 }
 0xb4f   : > { %vm2294_vm7 = vcmp.eq.s32.totalorder %v3582_v35, %v2293_v15  ;;  %vm2295_vm11 = vcmp.eq.s32.totalorder %v3594_v49, %v2293_v15 }
 0xb59   : > { %v2299_v9 = vpop.permute.xlu1 %2298 }
 0xb5a   : > { %v2301_v47 = vsel %vm2294_vm7, %v2299_v9, 0.0  ;;  %v2302_v14 = vsel %vm2295_vm11, %v2299_v9, 0.0  ;;  %v2327_v6 = vpop.permute.xlu0 %2326 }
 0xb5b   : > { %v2303_v38 = vadd.f32 %v2301_v47, %v2287_v59  ;;  %v2304_v57 = vadd.f32 %v2302_v14, %v2288_v18 }
 0xb5d   : > { %v2317_v4 = vadd.f32 %v2315_v60, %v2303_v38  ;;  %v2318_v25 = vadd.f32 %v2316_v13, %v2304_v57 }
 0xb61   : > { %v2321_v28 = vpop.permute.xlu1 %2320 }
 0xb62   : > { %vm2322_vm13 = vcmp.eq.s32.totalorder %v3582_v35, %v2321_v28  ;;  %vm2323_vm14 = vcmp.eq.s32.totalorder %v3594_v49, %v2321_v28 }
 0xb63   : > { %v2329_v50 = vsel %vm2322_vm13, %v2327_v6, 0.0  ;;  %v2330_v21 = vsel %vm2323_vm14, %v2327_v6, 0.0 }
 0xb64   : > { %v2331_v22 = vadd.f32 %v2329_v50, %v2317_v4  ;;  %v2332_v27 = vadd.f32 %v2330_v21, %v2318_v25 }
 0xb66   : > { %v2333_v41 = vpack.c.bf16 %v2331_v22, %v2331_v22  ;;  %v2334_v46 = vpack.c.bf16 %v2332_v27, %v2332_v27 }
 0xb68   : > { %2343 = vmatmul.bf16.vlgmr.msrb.gmra.mxu1 %v2333_v41  ;;  %2356 = vmatmul.bf16.vlgmr.msrb.gmra.mxu2 %v2334_v46 }
 0xbbd   : > { %v2368_v49 = vpop.permute.xlu1 %2367  ;;  %v2370_v3 = vpop.permute.xlu0 %2369 }
 0xbbe   : > { %vm2371_vm3 = vcmp.eq.s32.totalorder %v3582_v35, %v2368_v49  ;;  %vm2372_vm4 = vcmp.eq.s32.totalorder %v3582_v35, %v2370_v3 }
 0xbbf   : > { %v2777_v23 = vsel %vm2371_vm3, 1.0, %v3109_v26  ;;  %v2778_v52 = vsel %vm2372_vm4, 1.0, %v3109_v26 }
 0xbc0   : > { %v2377_v29 = vmul.f32 %v2777_v23, %v4288_v24  ;;  %v2995_v12 = vpack.i.bf16 %v2778_v52, %v2777_v23  ;;  %v2378_v61 = vmul.f32 %v2778_v52, %v4294_v37 }
 0xbc2   : > { %v2381_v53 = vadd.f32 %v2377_v29, %v4357_v39  ;;  %v2382_v40 = vadd.f32 %v2378_v61, %v4364_v43  ;;  %2996 = vrot.lane.b32.xlu2 %v2995_v12, %s3115_s8 }
 0xbc4   : > { %2446 = vperm.xlu1 %2992, %v2381_v53   ;;  %2451 = vperm.xlu0 %2994, %v2382_v40  }
 0xbc9   : > { %v2273_v20 = vpop.f32.mrf.mxu0 }
 0xbcc   : > { %3001 = vset.pattern.permute.xlu1 %v4546_v30  ;;  %3002 = vset.pattern.permute.xlu0 %v4546_v30 }
 0xbcf   : > { %v2260_v0 = vpop.f32.mrf.mxu3 }
 0xbd0   : > { %v2274_v26 = vadd.f32 %v2273_v20, %v2260_v0 }
 0xbd1   : > { %v2275_v54 = vpop.f32.mrf.mxu0 }
 0xbd2   : > { %2787 = vmatmul.msk.f32.vlgmr.msrb.gmra.mxu3 %vm4610_vm8, %v2274_v26 }
 0xbd7   : > { %v2262_v51 = vpop.f32.mrf.mxu3 }
 0xbe5   : > { %v2344_v8 = vpop.f32.mrf.mxu1 }
 0xbeb   : > { %v2357_v39 = vpop.f32.mrf.mxu2 }
 0xbec   : > { %v2358_v36 = vadd.f32 %v2357_v39, %v2344_v8 }
 0xbed   : > { %v2346_v43 = vpop.f32.mrf.mxu1 }
 0xbee   : > { %2788 = vmatmul.msk.f32.gmra.mxu3 %vm4611_vm15, %v2358_v36 }
 0xbf3   : > { %v2359_v7 = vpop.f32.mrf.mxu2 }
 0xc1c   : > { %v2997_v1 = vpop.permute.xlu2 %2996 }
 0xc1d   : > { %v2999_v48 = vunpack.i.h.bf16 %v2997_v1  ;;  %v2998_v34 = vunpack.i.l.bf16 %v2997_v1 }
 0xc1f   : > { %v2392_v5 = vmul.f32 %v2999_v48, %v4294_v37  ;;  %v2391_v30 = vmul.f32 %v2998_v34, %v4288_v24 }
 0xc21   : > { %v2396_v45 = vadd.f32 %v2392_v5, %v4327_v31  ;;  %v2395_v58 = vadd.f32 %v2391_v30, %v4319_v62 }
 0xc23   : > { %2464 = vperm.xlu1 %3001, %v2396_v45   ;;  %2459 = vperm.xlu2 %3000, %v2395_v58  }
 0xc36   : > { %v2447_v32 = vpop.permute.xlu1 %2446  ;;  %v2452_v62 = vpop.permute.xlu0 %2451 }
 0xc55   : > { %v2437_v55 = vpop.f32.mrf.mxu3 }
 0xc56   : > { %v2454_v17 = vsel %vm2443_vm12, %v2447_v32, %v2437_v55 }
 0xc71   : > { %v2440_v37 = vpop.f32.mrf.mxu3 }
 0xc72   : > { %v2455_v31 = vsel %vm2443_vm12, %v2452_v62, %v2440_v37 }
 0xc7d   : > { %v2460_v44 = vpop.permute.xlu2 %2459 }
 0xc7e   : > { %v2467_v24 = vsel %vm2456_vm5, %v2460_v44, %v2454_v17 }
 0xc7f   : > { %2469 = vst [vmem:[%s252_s7] sm:$0xff] %v2467_v24 }
 0xc95   : > { %v2465_v16 = vpop.permute.xlu1 %2464 }
 0xc96   : > { %v2468_v19 = vsel %vm2456_vm5, %v2465_v16, %v2455_v31 }
 0xc97   : > { %2470 = vst [vmem:[%s252_s7 + $0x8] sm:$0xff] %v2468_v19 }
 0xc98   : > { %3065 = shalt.err (!%p3062_p3)
}
 0xc99   : > { %s3116_s10 = smov 128  }
 0xc9a   : > { %2852 = dma.vmem_to_hbm [thread:$0]  (%p3185_p5), %s2485_s17, 256, %s2487_s23, %s2472_s25, %s3116_s10, %s3116_s10, %s3108_s9  }
 0xc9b PF: > { %p2858_p4 = scmp.ge.s32.totalorder %s3100_s21, 2  ;;  %s2501_s7 = sand.u32 1, %s3088_s18  }
 0xc9c   : > { %s2502_s12 = scalar_lea.sflag [#allocation3], %s2501_s7 }
 0xc9d   : > { %p2855_p7 = pnand %p2858_p4, %p3189_p6 }
 0xc9f   : > { %p2856_p8 = pneg %p2855_p7 }
 0xca1   : > { %3083 = dma.done.wait (%p2856_p8), %s2502_s12, 256  }
 0xca2   : > { %3085 = vsyncadd (%p2856_p8), %s2502_s12, 4294967040  ;;  %p15_p9 = scmp.ge.s32.totalorder %s3172_s24, 4   ;;  %s4612_s18 = smov %s3092_s19 }
 0xca3   : > { %s4613_s19 = smov %s3096_s20  ;;  %s4614_s20 = smov %s3183_s27 }
 0xca4   : > { %s4615_s21 = smov %s3172_s24  ;;  %17 = sbr.rel (!%p15_p9) target bundleno = 3 (0x3), region = 86 }
 0xca9   :  { %2508 = vsyncpa [#allocation3], 1 }
 0xcaa   :  { %2510 = vsyncpa [#allocation3 + $0x1], 1 }

</bundles_post_ra>
